<compile_context>
chip_gen: v7x
topology: tpu7x:2x2x1
jax: 0.10.0
libtpu: 0.0.40
codegen_flags: <defaults>
</compile_context>

<pallas_src>
import functools
import math

import jax
import jax.numpy as jnp
from jax.experimental import pallas as pl
from jax.experimental.pallas import tpu as pltpu

# ----- synthetic, scaled-down "trocr-small-printed" decoder config -----
VOCAB      = 64          # OCRTokenizer.length (synthetic)
VOCAB_PAD  = 128         # lane-dense padded vocab for the output projection
D_MODEL    = 32          # 256 in trocr-small
N_HEADS    = 4           # 8 in trocr-small
HEAD_D     = D_MODEL // N_HEADS
FFN_DIM    = 64          # 1024 in trocr-small
N_LAYERS   = 2           # 6 in trocr-small
ENC_DIM    = 48          # cross_attention_hidden_size (384 in trocr-small)
MAX_POS    = 64
POS_OFFSET = 2           # TrOCRLearnedPositionalEmbedding offset
EPS        = 1e-5        # torch LayerNorm default
SCALE_EMB  = math.sqrt(D_MODEL)     # scale_embedding=True
ATTN_SCALE = HEAD_D ** -0.5
NEG_BIG    = -1e9        # large finite additive mask

# packed-parameter row tables
N_BIAS_PER_LAYER = 7               # qkv, self_o, cross_q, cross_kv, cross_o, fc1, fc2
N_BIAS_ROWS_PAD  = 16              # 2*7 + 1 (out_b) -> padded to 16 rows
N_LN_PAD         = 8               # 1 + 3*N_LAYERS = 7 -> padded to 8 rows


# =====================  fused decoder kernel  =====================

def _decoder_kernel(x_ref, enc_ref,
                    w_qkv_ref, w_so_ref, w_cq_ref, w_ckv_ref, w_co_ref,
                    w_f1_ref, w_f2_ref, w_out_ref,
                    ln_g_ref, ln_b_ref, bias_ref,
                    o_ref, *, batch):
    """Whole-decoder forward, batch folded into rows.

    x_ref   : (B*T, D)      bf16  (token emb * sqrt(D) + positions)
    enc_ref : (B*S, ENC)    bf16
    weights : layer-stacked bf16 matrices; LN / biases packed f32 slabs
    o_ref   : (B*T, 128)    f32   (lane-dense padded logits)
    """
    B = batch
    T = x_ref.shape[0] // B
    S = enc_ref.shape[0] // B

    def dot_bf16(a, w):
        # bf16 operands, f32 accumulation (MXU-native)
        return jnp.dot(a.astype(jnp.bfloat16), w, preferred_element_type=jnp.float32)

    def bias_row(i, width):
        return bias_ref[i:i + 1, :width]                    # static slice -> (1, width) f32

    def layer_norm(y, idx):
        mu = jnp.mean(y, axis=-1, keepdims=True)
        var = jnp.mean(jnp.square(y - mu), axis=-1, keepdims=True)
        return ((y - mu) * jax.lax.rsqrt(var + EPS)
                * ln_g_ref[idx:idx + 1, :] + ln_b_ref[idx:idx + 1, :])

    def mha(q, k, v, tq, skv, attn_bias):
        """q:(B*tq,D) f32, k/v:(B*skv,D) f32 -> (B*tq,D) f32.  Heads stay in vregs."""
        qb = q.astype(jnp.bfloat16)                          # cast once, outside loops
        kT = k.T.astype(jnp.bfloat16)                        # one transpose per attention
        vb = v.astype(jnp.bfloat16)
        rows = []
        for b in range(B):                                   # short static batch loop
            qs  = qb[b * tq:(b + 1) * tq, :]
            kTs = kT[:, b * skv:(b + 1) * skv]
            vs  = vb[b * skv:(b + 1) * skv, :]
            heads = []
            for h in range(N_HEADS):
                hd = slice(h * HEAD_D, (h + 1) * HEAD_D)
                s = jnp.dot(qs[:, hd], kTs[hd, :], preferred_element_type=jnp.float32)
                if attn_bias is not None:
                    s = s + attn_bias
                s = s - jnp.max(s, axis=-1, keepdims=True)
                p = jnp.exp(s)
                # approx EUP reciprocal: ~1e-3 rel. tolerance vs exact softmax
                p = p * pl.reciprocal(jnp.sum(p, axis=-1, keepdims=True), approx=True)
                heads.append(jnp.dot(p.astype(jnp.bfloat16), vs[:, hd],
                                     preferred_element_type=jnp.float32))
            rows.append(jnp.concatenate(heads, axis=-1))     # (tq, D) f32, vregs only
        return jnp.concatenate(rows, axis=0)                 # (B*tq, D) f32

    # causal additive bias: computed ONCE, reused by every layer
    r = jax.lax.broadcasted_iota(jnp.int32, (T, T), 0)
    c = jax.lax.broadcasted_iota(jnp.int32, (T, T), 1)
    causal = jnp.where(r >= c, 0.0, NEG_BIG).astype(jnp.float32)

    x = x_ref[...].astype(jnp.float32)                       # (B*T, D) residual stream (f32)
    enc = enc_ref[...]                                       # (B*S, E) bf16

    # layernorm_embedding
    x = layer_norm(x, 0)

    for l in range(N_LAYERS):
        bb = l * N_BIAS_PER_LAYER
        # --- causal self-attention (fused QKV projection) + add & LN ---
        qkv = dot_bf16(x, w_qkv_ref[l]) + bias_row(bb + 0, 3 * D_MODEL)
        q = qkv[:, :D_MODEL] * ATTN_SCALE                    # HF TrOCR: scale q after bias
        k = qkv[:, D_MODEL:2 * D_MODEL]
        v = qkv[:, 2 * D_MODEL:]
        a = mha(q, k, v, T, T, causal)
        a = dot_bf16(a, w_so_ref[l]) + bias_row(bb + 1, D_MODEL)
        x = layer_norm(x + a, 1 + 3 * l)
        # --- cross-attention over encoder states (fused KV projection) + add & LN ---
        q = (dot_bf16(x, w_cq_ref[l]) + bias_row(bb + 2, D_MODEL)) * ATTN_SCALE
        kv = dot_bf16(enc, w_ckv_ref[l]) + bias_row(bb + 3, 2 * D_MODEL)
        cctx = mha(q, kv[:, :D_MODEL], kv[:, D_MODEL:], T, S, None)
        cctx = dot_bf16(cctx, w_co_ref[l]) + bias_row(bb + 4, D_MODEL)
        x = layer_norm(x + cctx, 2 + 3 * l)
        # --- ReLU feed-forward + add & LN ---
        h = jnp.maximum(dot_bf16(x, w_f1_ref[l]) + bias_row(bb + 5, FFN_DIM), 0.0)
        f = dot_bf16(h, w_f2_ref[l]) + bias_row(bb + 6, D_MODEL)
        x = layer_norm(x + f, 3 + 3 * l)

    # output projection: lane-dense (vocab padded 64 -> 128), unmasked stores
    o_ref[...] = dot_bf16(x, w_out_ref[...]) + bias_row(N_LAYERS * N_BIAS_PER_LAYER, VOCAB_PAD)


# =====================  parameters (deterministic synthetic init, packed layout)  =====================

def init_params(key):
    def mat(k, shape, scale=0.02):
        # matmul weights stored bf16 (MXU-native); accumulation stays f32 in-kernel
        return (scale * jax.random.normal(k, shape)).astype(jnp.bfloat16)

    ks = iter(jax.random.split(key, 3 + N_LAYERS * 10))

    w_qkv, w_so, w_cq, w_ckv, w_co, w_f1, w_f2 = ([] for _ in range(7))
    for _ in range(N_LAYERS):
        wq, wk, wv = (mat(next(ks), (D_MODEL, D_MODEL)) for _ in range(3))
        w_qkv.append(jnp.concatenate([wq, wk, wv], axis=1))          # fused (D, 3D)
        w_so.append(mat(next(ks), (D_MODEL, D_MODEL)))
        w_cq.append(mat(next(ks), (D_MODEL, D_MODEL)))
        cwk, cwv = (mat(next(ks), (ENC_DIM, D_MODEL)) for _ in range(2))
        w_ckv.append(jnp.concatenate([cwk, cwv], axis=1))            # fused (E, 2D)
        w_co.append(mat(next(ks), (D_MODEL, D_MODEL)))
        w_f1.append(mat(next(ks), (D_MODEL, FFN_DIM)))
        w_f2.append(mat(next(ks), (FFN_DIM, D_MODEL)))

    # output embedding Linear(D, VOCAB), padded to 128 lanes (padding cols are zero)
    out_w = jnp.zeros((D_MODEL, VOCAB_PAD), jnp.bfloat16).at[:, :VOCAB].set(
        mat(next(ks), (D_MODEL, VOCAB)))

    return {
        "tok_emb": (0.02 * jax.random.normal(next(ks), (VOCAB, D_MODEL))).astype(jnp.float32),
        "pos_emb": (0.02 * jax.random.normal(next(ks), (MAX_POS + POS_OFFSET, D_MODEL))).astype(jnp.float32),
        # per-layer weight stacks (leading layer axis)
        "w_qkv": jnp.stack(w_qkv),   # (L, D, 3D)
        "w_so":  jnp.stack(w_so),    # (L, D, D)
        "w_cq":  jnp.stack(w_cq),    # (L, D, D)
        "w_ckv": jnp.stack(w_ckv),   # (L, E, 2D)
        "w_co":  jnp.stack(w_co),    # (L, D, D)
        "w_f1":  jnp.stack(w_f1),    # (L, D, F)
        "w_f2":  jnp.stack(w_f2),    # (L, F, D)
        "w_out": out_w,              # (D, 128)
        # LayerNorm gains/biases packed: row 0 = embedding LN; rows 1+3l..3+3l = self/cross/final LN of layer l
        "ln_g": jnp.ones((N_LN_PAD, D_MODEL), jnp.float32),
        "ln_b": jnp.zeros((N_LN_PAD, D_MODEL), jnp.float32),
        # all Linear biases packed into one lane-dense slab (zero-init, as in the synthetic reference)
        "bias": jnp.zeros((N_BIAS_ROWS_PAD, VOCAB_PAD), jnp.float32),
    }


# =====================  full forward (one fused pallas_call)  =====================

def trocr_decoder_forward(params, input_ids, encoder_hidden_states):
    """Equivalent of TrOCRDecoder.forward(..., use_cache=False) -> logits (B, T, VOCAB)."""
    B, T = input_ids.shape
    S = encoder_hidden_states.shape[1]

    # token + learned positional embeddings (gather / static slice stays as XLA glue)
    x = jnp.take(params["tok_emb"], input_ids, axis=0) * SCALE_EMB       # (B, T, D) f32
    pos = params["pos_emb"][POS_OFFSET:POS_OFFSET + T]                   # (T, D)
    # fold batch into rows, enter the kernel as bf16 (halves activation DMA bytes)
    x = (x + pos[None, :, :]).reshape(B * T, D_MODEL).astype(jnp.bfloat16)
    enc = encoder_hidden_states.astype(jnp.bfloat16).reshape(B * S, ENC_DIM)

    operands = (x, enc,
                params["w_qkv"], params["w_so"], params["w_cq"], params["w_ckv"],
                params["w_co"], params["w_f1"], params["w_f2"], params["w_out"],
                params["ln_g"], params["ln_b"], params["bias"])

    in_specs = [pl.BlockSpec(a.shape, lambda i, nd=a.ndim: (0,) * nd) for a in operands]

    logits_pad = pl.pallas_call(
        functools.partial(_decoder_kernel, batch=B),
        out_shape=jax.ShapeDtypeStruct((B * T, VOCAB_PAD), jnp.float32),
        grid=(1,),                                    # whole decoder in one grid step
        in_specs=in_specs,
        out_specs=pl.BlockSpec((B * T, VOCAB_PAD), lambda i: (0, 0)),
        compiler_params=pltpu.CompilerParams(dimension_semantics=("arbitrary",)),
    )(*operands)

    # strip the vocab lane padding
    return logits_pad.reshape(B, T, VOCAB_PAD)[:, :, :VOCAB]


# =====================  main  =====================

if __name__ == "__main__":
    key = jax.random.PRNGKey(0)
    kp, kids, kenc = jax.random.split(key, 3)

    params = init_params(kp)

    B, T, S = 2, 8, 16
    input_ids = jax.random.randint(kids, (B, T), 0, VOCAB, dtype=jnp.int32)
    encoder_hidden_states = jax.random.normal(kenc, (B, S, ENC_DIM), dtype=jnp.float32)

    logits = jax.jit(trocr_decoder_forward)(params, input_ids, encoder_hidden_states)
    logits = jax.block_until_ready(logits)

    assert logits.shape == (B, T, VOCAB), logits.shape
    assert bool(jnp.all(jnp.isfinite(logits)))
    print("KERNEL_OK")
</pallas_src>

<mosaic_0001>
module attributes {stable_mosaic.version = 11 : i64} {
  func.func @_decoder_kernel(%arg0: i32, %arg1: memref<16x32xbf16, #tpu.memory_space<vmem>>, %arg2: memref<32x48xbf16, #tpu.memory_space<vmem>>, %arg3: memref<2x32x96xbf16, #tpu.memory_space<vmem>>, %arg4: memref<2x32x32xbf16, #tpu.memory_space<vmem>>, %arg5: memref<2x32x32xbf16, #tpu.memory_space<vmem>>, %arg6: memref<2x48x64xbf16, #tpu.memory_space<vmem>>, %arg7: memref<2x32x32xbf16, #tpu.memory_space<vmem>>, %arg8: memref<2x32x64xbf16, #tpu.memory_space<vmem>>, %arg9: memref<2x64x32xbf16, #tpu.memory_space<vmem>>, %arg10: memref<32x128xbf16, #tpu.memory_space<vmem>>, %arg11: memref<8x32xf32, #tpu.memory_space<vmem>>, %arg12: memref<8x32xf32, #tpu.memory_space<vmem>>, %arg13: memref<16x128xf32, #tpu.memory_space<vmem>>, %arg14: memref<16x128xf32, #tpu.memory_space<vmem>>) attributes {dimension_semantics = [#tpu.dimension_semantics<arbitrary>], iteration_bounds = array<i64: 1>, scalar_prefetch = 0 : i64, scratch_operands = 0 : i64, tpu.core_type = #tpu.core_type<tc>, window_params = [{pipeline_mode = #tpu.pipeline_mode<synchronous>, transform_indices = @transform_0, window_bounds = array<i64: 16, 32>}, {pipeline_mode = #tpu.pipeline_mode<synchronous>, transform_indices = @transform_1, window_bounds = array<i64: 32, 48>}, {pipeline_mode = #tpu.pipeline_mode<synchronous>, transform_indices = @transform_2, window_bounds = array<i64: 2, 32, 96>}, {pipeline_mode = #tpu.pipeline_mode<synchronous>, transform_indices = @transform_3, window_bounds = array<i64: 2, 32, 32>}, {pipeline_mode = #tpu.pipeline_mode<synchronous>, transform_indices = @transform_4, window_bounds = array<i64: 2, 32, 32>}, {pipeline_mode = #tpu.pipeline_mode<synchronous>, transform_indices = @transform_5, window_bounds = array<i64: 2, 48, 64>}, {pipeline_mode = #tpu.pipeline_mode<synchronous>, transform_indices = @transform_6, window_bounds = array<i64: 2, 32, 32>}, {pipeline_mode = #tpu.pipeline_mode<synchronous>, transform_indices = @transform_7, window_bounds = array<i64: 2, 32, 64>}, {pipeline_mode = #tpu.pipeline_mode<synchronous>, transform_indices = @transform_8, window_bounds = array<i64: 2, 64, 32>}, {pipeline_mode = #tpu.pipeline_mode<synchronous>, transform_indices = @transform_9, window_bounds = array<i64: 32, 128>}, {pipeline_mode = #tpu.pipeline_mode<synchronous>, transform_indices = @transform_10, window_bounds = array<i64: 8, 32>}, {pipeline_mode = #tpu.pipeline_mode<synchronous>, transform_indices = @transform_11, window_bounds = array<i64: 8, 32>}, {pipeline_mode = #tpu.pipeline_mode<synchronous>, transform_indices = @transform_12, window_bounds = array<i64: 16, 128>}, {pipeline_mode = #tpu.pipeline_mode<synchronous>, transform_indices = @transform_13, window_bounds = array<i64: 16, 128>}]} {
    %0 = tpu.iota {dimensions = array<i32: 0>} : vector<8x8xi32>
    %1 = tpu.iota {dimensions = array<i32: 1>} : vector<8x8xi32>
    %2 = arith.cmpi sge, %0, %1 : vector<8x8xi32>
    %cst = arith.constant 0.000000e+00 : f32
    %cst_0 = arith.constant -1.000000e+09 : f32
    %3 = vector.broadcast %cst : f32 to vector<8x8xf32>
    %4 = vector.broadcast %cst_0 : f32 to vector<8x8xf32>
    %5 = arith.select %2, %3, %4 : vector<8x8xi1>, vector<8x8xf32>
    %c0 = arith.constant 0 : index
    %c0_1 = arith.constant 0 : index
    %6 = vector.load %arg1[%c0, %c0_1] : memref<16x32xbf16, #tpu.memory_space<vmem>>, vector<16x32xbf16>
    %7 = arith.extf %6 : vector<16x32xbf16> to vector<16x32xf32>
    %c0_2 = arith.constant 0 : index
    %c0_3 = arith.constant 0 : index
    %8 = vector.load %arg2[%c0_2, %c0_3] : memref<32x48xbf16, #tpu.memory_space<vmem>>, vector<32x48xbf16>
    %cst_4 = arith.constant dense<0.000000e+00> : vector<16xf32>
    %9 = vector.multi_reduction <add>, %7, %cst_4 [1] : vector<16x32xf32> to vector<16xf32>
    %10 = vector.shape_cast %9 : vector<16xf32> to vector<16x1xf32>
    %cst_5 = arith.constant 3.200000e+01 : f32
    %11 = vector.broadcast %cst_5 : f32 to vector<16x1xf32>
    %12 = arith.divf %10, %11 : vector<16x1xf32>
    %13 = vector.broadcast %12 : vector<16x1xf32> to vector<16x32xf32>
    %14 = arith.subf %7, %13 : vector<16x32xf32>
    %15 = arith.mulf %14, %14 : vector<16x32xf32>
    %cst_6 = arith.constant dense<0.000000e+00> : vector<16xf32>
    %16 = vector.multi_reduction <add>, %15, %cst_6 [1] : vector<16x32xf32> to vector<16xf32>
    %17 = vector.shape_cast %16 : vector<16xf32> to vector<16x1xf32>
    %cst_7 = arith.constant 3.200000e+01 : f32
    %18 = vector.broadcast %cst_7 : f32 to vector<16x1xf32>
    %19 = arith.divf %17, %18 : vector<16x1xf32>
    %20 = vector.broadcast %12 : vector<16x1xf32> to vector<16x32xf32>
    %21 = arith.subf %7, %20 : vector<16x32xf32>
    %cst_8 = arith.constant 9.99999974E-6 : f32
    %22 = vector.broadcast %cst_8 : f32 to vector<16x1xf32>
    %23 = arith.addf %19, %22 : vector<16x1xf32>
    %24 = math.rsqrt %23 : vector<16x1xf32>
    %25 = vector.broadcast %24 : vector<16x1xf32> to vector<16x32xf32>
    %26 = arith.mulf %21, %25 : vector<16x32xf32>
    %c0_9 = arith.constant 0 : index
    %c0_10 = arith.constant 0 : index
    %27 = vector.load %arg11[%c0_9, %c0_10] : memref<8x32xf32, #tpu.memory_space<vmem>>, vector<1x32xf32>
    %28 = vector.broadcast %27 : vector<1x32xf32> to vector<16x32xf32>
    %29 = arith.mulf %26, %28 : vector<16x32xf32>
    %c0_11 = arith.constant 0 : index
    %c0_12 = arith.constant 0 : index
    %30 = vector.load %arg12[%c0_11, %c0_12] : memref<8x32xf32, #tpu.memory_space<vmem>>, vector<1x32xf32>
    %31 = vector.broadcast %30 : vector<1x32xf32> to vector<16x32xf32>
    %32 = arith.addf %29, %31 : vector<16x32xf32>
    %c0_13 = arith.constant 0 : index
    %c0_14 = arith.constant 0 : index
    %c0_15 = arith.constant 0 : index
    %33 = vector.load %arg3[%c0_13, %c0_14, %c0_15] : memref<2x32x96xbf16, #tpu.memory_space<vmem>>, vector<1x32x96xbf16>
    %34 = vector.shape_cast %33 : vector<1x32x96xbf16> to vector<32x96xbf16>
    %35 = arith.truncf %32 : vector<16x32xf32> to vector<16x32xbf16>
    %cst_16 = arith.constant dense<0.000000e+00> : vector<16x96xf32>
    %36 = tpu.matmul %35, %34, %cst_16 {dimension_numbers = #tpu.dot_dimension_numbers<[1], [0], [0], [1], [0, 0, 1, 1], [], []>} : vector<16x32xbf16>, vector<32x96xbf16>, vector<16x96xf32> -> vector<16x96xf32>
    %c0_17 = arith.constant 0 : index
    %c0_18 = arith.constant 0 : index
    %37 = vector.load %arg13[%c0_17, %c0_18] : memref<16x128xf32, #tpu.memory_space<vmem>>, vector<1x96xf32>
    %38 = vector.broadcast %37 : vector<1x96xf32> to vector<16x96xf32>
    %39 = arith.addf %36, %38 : vector<16x96xf32>
    %40 = vector.extract_strided_slice %39 {offsets = [0, 0], sizes = [16, 32], strides = [1, 1]} : vector<16x96xf32> to vector<16x32xf32>
    %cst_19 = arith.constant 0.353553385 : f32
    %41 = vector.broadcast %cst_19 : f32 to vector<16x32xf32>
    %42 = arith.mulf %40, %41 : vector<16x32xf32>
    %43 = vector.extract_strided_slice %39 {offsets = [0, 32], sizes = [16, 32], strides = [1, 1]} : vector<16x96xf32> to vector<16x32xf32>
    %44 = vector.extract_strided_slice %39 {offsets = [0, 64], sizes = [16, 32], strides = [1, 1]} : vector<16x96xf32> to vector<16x32xf32>
    %45 = arith.truncf %42 : vector<16x32xf32> to vector<16x32xbf16>
    %46 = tpu.transpose %43, [1, 0] : vector<16x32xf32> -> vector<32x16xf32>
    %47 = arith.truncf %46 : vector<32x16xf32> to vector<32x16xbf16>
    %48 = arith.truncf %44 : vector<16x32xf32> to vector<16x32xbf16>
    %49 = vector.extract_strided_slice %45 {offsets = [0, 0], sizes = [8, 32], strides = [1, 1]} : vector<16x32xbf16> to vector<8x32xbf16>
    %50 = vector.extract_strided_slice %47 {offsets = [0, 0], sizes = [32, 8], strides = [1, 1]} : vector<32x16xbf16> to vector<32x8xbf16>
    %51 = vector.extract_strided_slice %48 {offsets = [0, 0], sizes = [8, 32], strides = [1, 1]} : vector<16x32xbf16> to vector<8x32xbf16>
    %52 = vector.extract_strided_slice %49 {offsets = [0, 0], sizes = [8, 8], strides = [1, 1]} : vector<8x32xbf16> to vector<8x8xbf16>
    %53 = vector.extract_strided_slice %50 {offsets = [0, 0], sizes = [8, 8], strides = [1, 1]} : vector<32x8xbf16> to vector<8x8xbf16>
    %cst_20 = arith.constant dense<0.000000e+00> : vector<8x8xf32>
    %54 = tpu.matmul %52, %53, %cst_20 {dimension_numbers = #tpu.dot_dimension_numbers<[1], [0], [0], [1], [0, 0, 1, 1], [], []>} : vector<8x8xbf16>, vector<8x8xbf16>, vector<8x8xf32> -> vector<8x8xf32>
    %55 = arith.addf %54, %5 : vector<8x8xf32>
    %cst_21 = arith.constant dense<0xFF800000> : vector<8xf32>
    %56 = vector.multi_reduction <maximumf>, %55, %cst_21 [1] : vector<8x8xf32> to vector<8xf32>
    %57 = vector.shape_cast %56 : vector<8xf32> to vector<8x1xf32>
    %58 = vector.broadcast %57 : vector<8x1xf32> to vector<8x8xf32>
    %59 = arith.subf %55, %58 : vector<8x8xf32>
    %60 = math.exp %59 : vector<8x8xf32>
    %cst_22 = arith.constant dense<0.000000e+00> : vector<8xf32>
    %61 = vector.multi_reduction <add>, %60, %cst_22 [1] : vector<8x8xf32> to vector<8xf32>
    %62 = vector.shape_cast %61 : vector<8xf32> to vector<8x1xf32>
    %63 = tpu.reciprocal %62 {approx = true} : vector<8x1xf32> -> vector<8x1xf32>
    %64 = vector.broadcast %63 : vector<8x1xf32> to vector<8x8xf32>
    %65 = arith.mulf %60, %64 : vector<8x8xf32>
    %66 = arith.truncf %65 : vector<8x8xf32> to vector<8x8xbf16>
    %67 = vector.extract_strided_slice %51 {offsets = [0, 0], sizes = [8, 8], strides = [1, 1]} : vector<8x32xbf16> to vector<8x8xbf16>
    %cst_23 = arith.constant dense<0.000000e+00> : vector<8x8xf32>
    %68 = tpu.matmul %66, %67, %cst_23 {dimension_numbers = #tpu.dot_dimension_numbers<[1], [0], [0], [1], [0, 0, 1, 1], [], []>} : vector<8x8xbf16>, vector<8x8xbf16>, vector<8x8xf32> -> vector<8x8xf32>
    %69 = vector.extract_strided_slice %49 {offsets = [0, 8], sizes = [8, 8], strides = [1, 1]} : vector<8x32xbf16> to vector<8x8xbf16>
    %70 = vector.extract_strided_slice %50 {offsets = [8, 0], sizes = [8, 8], strides = [1, 1]} : vector<32x8xbf16> to vector<8x8xbf16>
    %cst_24 = arith.constant dense<0.000000e+00> : vector<8x8xf32>
    %71 = tpu.matmul %69, %70, %cst_24 {dimension_numbers = #tpu.dot_dimension_numbers<[1], [0], [0], [1], [0, 0, 1, 1], [], []>} : vector<8x8xbf16>, vector<8x8xbf16>, vector<8x8xf32> -> vector<8x8xf32>
    %72 = arith.addf %71, %5 : vector<8x8xf32>
    %cst_25 = arith.constant dense<0xFF800000> : vector<8xf32>
    %73 = vector.multi_reduction <maximumf>, %72, %cst_25 [1] : vector<8x8xf32> to vector<8xf32>
    %74 = vector.shape_cast %73 : vector<8xf32> to vector<8x1xf32>
    %75 = vector.broadcast %74 : vector<8x1xf32> to vector<8x8xf32>
    %76 = arith.subf %72, %75 : vector<8x8xf32>
    %77 = math.exp %76 : vector<8x8xf32>
    %cst_26 = arith.constant dense<0.000000e+00> : vector<8xf32>
    %78 = vector.multi_reduction <add>, %77, %cst_26 [1] : vector<8x8xf32> to vector<8xf32>
    %79 = vector.shape_cast %78 : vector<8xf32> to vector<8x1xf32>
    %80 = tpu.reciprocal %79 {approx = true} : vector<8x1xf32> -> vector<8x1xf32>
    %81 = vector.broadcast %80 : vector<8x1xf32> to vector<8x8xf32>
    %82 = arith.mulf %77, %81 : vector<8x8xf32>
    %83 = arith.truncf %82 : vector<8x8xf32> to vector<8x8xbf16>
    %84 = vector.extract_strided_slice %51 {offsets = [0, 8], sizes = [8, 8], strides = [1, 1]} : vector<8x32xbf16> to vector<8x8xbf16>
    %cst_27 = arith.constant dense<0.000000e+00> : vector<8x8xf32>
    %85 = tpu.matmul %83, %84, %cst_27 {dimension_numbers = #tpu.dot_dimension_numbers<[1], [0], [0], [1], [0, 0, 1, 1], [], []>} : vector<8x8xbf16>, vector<8x8xbf16>, vector<8x8xf32> -> vector<8x8xf32>
    %86 = vector.extract_strided_slice %49 {offsets = [0, 16], sizes = [8, 8], strides = [1, 1]} : vector<8x32xbf16> to vector<8x8xbf16>
    %87 = vector.extract_strided_slice %50 {offsets = [16, 0], sizes = [8, 8], strides = [1, 1]} : vector<32x8xbf16> to vector<8x8xbf16>
    %cst_28 = arith.constant dense<0.000000e+00> : vector<8x8xf32>
    %88 = tpu.matmul %86, %87, %cst_28 {dimension_numbers = #tpu.dot_dimension_numbers<[1], [0], [0], [1], [0, 0, 1, 1], [], []>} : vector<8x8xbf16>, vector<8x8xbf16>, vector<8x8xf32> -> vector<8x8xf32>
    %89 = arith.addf %88, %5 : vector<8x8xf32>
    %cst_29 = arith.constant dense<0xFF800000> : vector<8xf32>
    %90 = vector.multi_reduction <maximumf>, %89, %cst_29 [1] : vector<8x8xf32> to vector<8xf32>
    %91 = vector.shape_cast %90 : vector<8xf32> to vector<8x1xf32>
    %92 = vector.broadcast %91 : vector<8x1xf32> to vector<8x8xf32>
    %93 = arith.subf %89, %92 : vector<8x8xf32>
    %94 = math.exp %93 : vector<8x8xf32>
    %cst_30 = arith.constant dense<0.000000e+00> : vector<8xf32>
    %95 = vector.multi_reduction <add>, %94, %cst_30 [1] : vector<8x8xf32> to vector<8xf32>
    %96 = vector.shape_cast %95 : vector<8xf32> to vector<8x1xf32>
    %97 = tpu.reciprocal %96 {approx = true} : vector<8x1xf32> -> vector<8x1xf32>
    %98 = vector.broadcast %97 : vector<8x1xf32> to vector<8x8xf32>
    %99 = arith.mulf %94, %98 : vector<8x8xf32>
    %100 = arith.truncf %99 : vector<8x8xf32> to vector<8x8xbf16>
    %101 = vector.extract_strided_slice %51 {offsets = [0, 16], sizes = [8, 8], strides = [1, 1]} : vector<8x32xbf16> to vector<8x8xbf16>
    %cst_31 = arith.constant dense<0.000000e+00> : vector<8x8xf32>
    %102 = tpu.matmul %100, %101, %cst_31 {dimension_numbers = #tpu.dot_dimension_numbers<[1], [0], [0], [1], [0, 0, 1, 1], [], []>} : vector<8x8xbf16>, vector<8x8xbf16>, vector<8x8xf32> -> vector<8x8xf32>
    %103 = vector.extract_strided_slice %49 {offsets = [0, 24], sizes = [8, 8], strides = [1, 1]} : vector<8x32xbf16> to vector<8x8xbf16>
    %104 = vector.extract_strided_slice %50 {offsets = [24, 0], sizes = [8, 8], strides = [1, 1]} : vector<32x8xbf16> to vector<8x8xbf16>
    %cst_32 = arith.constant dense<0.000000e+00> : vector<8x8xf32>
    %105 = tpu.matmul %103, %104, %cst_32 {dimension_numbers = #tpu.dot_dimension_numbers<[1], [0], [0], [1], [0, 0, 1, 1], [], []>} : vector<8x8xbf16>, vector<8x8xbf16>, vector<8x8xf32> -> vector<8x8xf32>
    %106 = arith.addf %105, %5 : vector<8x8xf32>
    %cst_33 = arith.constant dense<0xFF800000> : vector<8xf32>
    %107 = vector.multi_reduction <maximumf>, %106, %cst_33 [1] : vector<8x8xf32> to vector<8xf32>
    %108 = vector.shape_cast %107 : vector<8xf32> to vector<8x1xf32>
    %109 = vector.broadcast %108 : vector<8x1xf32> to vector<8x8xf32>
    %110 = arith.subf %106, %109 : vector<8x8xf32>
    %111 = math.exp %110 : vector<8x8xf32>
    %cst_34 = arith.constant dense<0.000000e+00> : vector<8xf32>
    %112 = vector.multi_reduction <add>, %111, %cst_34 [1] : vector<8x8xf32> to vector<8xf32>
    %113 = vector.shape_cast %112 : vector<8xf32> to vector<8x1xf32>
    %114 = tpu.reciprocal %113 {approx = true} : vector<8x1xf32> -> vector<8x1xf32>
    %115 = vector.broadcast %114 : vector<8x1xf32> to vector<8x8xf32>
    %116 = arith.mulf %111, %115 : vector<8x8xf32>
    %117 = arith.truncf %116 : vector<8x8xf32> to vector<8x8xbf16>
    %118 = vector.extract_strided_slice %51 {offsets = [0, 24], sizes = [8, 8], strides = [1, 1]} : vector<8x32xbf16> to vector<8x8xbf16>
    %cst_35 = arith.constant dense<0.000000e+00> : vector<8x8xf32>
    %119 = tpu.matmul %117, %118, %cst_35 {dimension_numbers = #tpu.dot_dimension_numbers<[1], [0], [0], [1], [0, 0, 1, 1], [], []>} : vector<8x8xbf16>, vector<8x8xbf16>, vector<8x8xf32> -> vector<8x8xf32>
    %120 = tpu.concatenate %68, %85, %102, %119 in 1 : vector<8x8xf32>, vector<8x8xf32>, vector<8x8xf32>, vector<8x8xf32> -> vector<8x32xf32>
    %121 = vector.extract_strided_slice %45 {offsets = [8, 0], sizes = [8, 32], strides = [1, 1]} : vector<16x32xbf16> to vector<8x32xbf16>
    %122 = vector.extract_strided_slice %47 {offsets = [0, 8], sizes = [32, 8], strides = [1, 1]} : vector<32x16xbf16> to vector<32x8xbf16>
    %123 = vector.extract_strided_slice %48 {offsets = [8, 0], sizes = [8, 32], strides = [1, 1]} : vector<16x32xbf16> to vector<8x32xbf16>
    %124 = vector.extract_strided_slice %121 {offsets = [0, 0], sizes = [8, 8], strides = [1, 1]} : vector<8x32xbf16> to vector<8x8xbf16>
    %125 = vector.extract_strided_slice %122 {offsets = [0, 0], sizes = [8, 8], strides = [1, 1]} : vector<32x8xbf16> to vector<8x8xbf16>
    %cst_36 = arith.constant dense<0.000000e+00> : vector<8x8xf32>
    %126 = tpu.matmul %124, %125, %cst_36 {dimension_numbers = #tpu.dot_dimension_numbers<[1], [0], [0], [1], [0, 0, 1, 1], [], []>} : vector<8x8xbf16>, vector<8x8xbf16>, vector<8x8xf32> -> vector<8x8xf32>
    %127 = arith.addf %126, %5 : vector<8x8xf32>
    %cst_37 = arith.constant dense<0xFF800000> : vector<8xf32>
    %128 = vector.multi_reduction <maximumf>, %127, %cst_37 [1] : vector<8x8xf32> to vector<8xf32>
    %129 = vector.shape_cast %128 : vector<8xf32> to vector<8x1xf32>
    %130 = vector.broadcast %129 : vector<8x1xf32> to vector<8x8xf32>
    %131 = arith.subf %127, %130 : vector<8x8xf32>
    %132 = math.exp %131 : vector<8x8xf32>
    %cst_38 = arith.constant dense<0.000000e+00> : vector<8xf32>
    %133 = vector.multi_reduction <add>, %132, %cst_38 [1] : vector<8x8xf32> to vector<8xf32>
    %134 = vector.shape_cast %133 : vector<8xf32> to vector<8x1xf32>
    %135 = tpu.reciprocal %134 {approx = true} : vector<8x1xf32> -> vector<8x1xf32>
    %136 = vector.broadcast %135 : vector<8x1xf32> to vector<8x8xf32>
    %137 = arith.mulf %132, %136 : vector<8x8xf32>
    %138 = arith.truncf %137 : vector<8x8xf32> to vector<8x8xbf16>
    %139 = vector.extract_strided_slice %123 {offsets = [0, 0], sizes = [8, 8], strides = [1, 1]} : vector<8x32xbf16> to vector<8x8xbf16>
    %cst_39 = arith.constant dense<0.000000e+00> : vector<8x8xf32>
    %140 = tpu.matmul %138, %139, %cst_39 {dimension_numbers = #tpu.dot_dimension_numbers<[1], [0], [0], [1], [0, 0, 1, 1], [], []>} : vector<8x8xbf16>, vector<8x8xbf16>, vector<8x8xf32> -> vector<8x8xf32>
    %141 = vector.extract_strided_slice %121 {offsets = [0, 8], sizes = [8, 8], strides = [1, 1]} : vector<8x32xbf16> to vector<8x8xbf16>
    %142 = vector.extract_strided_slice %122 {offsets = [8, 0], sizes = [8, 8], strides = [1, 1]} : vector<32x8xbf16> to vector<8x8xbf16>
    %cst_40 = arith.constant dense<0.000000e+00> : vector<8x8xf32>
    %143 = tpu.matmul %141, %142, %cst_40 {dimension_numbers = #tpu.dot_dimension_numbers<[1], [0], [0], [1], [0, 0, 1, 1], [], []>} : vector<8x8xbf16>, vector<8x8xbf16>, vector<8x8xf32> -> vector<8x8xf32>
    %144 = arith.addf %143, %5 : vector<8x8xf32>
    %cst_41 = arith.constant dense<0xFF800000> : vector<8xf32>
    %145 = vector.multi_reduction <maximumf>, %144, %cst_41 [1] : vector<8x8xf32> to vector<8xf32>
    %146 = vector.shape_cast %145 : vector<8xf32> to vector<8x1xf32>
    %147 = vector.broadcast %146 : vector<8x1xf32> to vector<8x8xf32>
    %148 = arith.subf %144, %147 : vector<8x8xf32>
    %149 = math.exp %148 : vector<8x8xf32>
    %cst_42 = arith.constant dense<0.000000e+00> : vector<8xf32>
    %150 = vector.multi_reduction <add>, %149, %cst_42 [1] : vector<8x8xf32> to vector<8xf32>
    %151 = vector.shape_cast %150 : vector<8xf32> to vector<8x1xf32>
    %152 = tpu.reciprocal %151 {approx = true} : vector<8x1xf32> -> vector<8x1xf32>
    %153 = vector.broadcast %152 : vector<8x1xf32> to vector<8x8xf32>
    %154 = arith.mulf %149, %153 : vector<8x8xf32>
    %155 = arith.truncf %154 : vector<8x8xf32> to vector<8x8xbf16>
    %156 = vector.extract_strided_slice %123 {offsets = [0, 8], sizes = [8, 8], strides = [1, 1]} : vector<8x32xbf16> to vector<8x8xbf16>
    %cst_43 = arith.constant dense<0.000000e+00> : vector<8x8xf32>
    %157 = tpu.matmul %155, %156, %cst_43 {dimension_numbers = #tpu.dot_dimension_numbers<[1], [0], [0], [1], [0, 0, 1, 1], [], []>} : vector<8x8xbf16>, vector<8x8xbf16>, vector<8x8xf32> -> vector<8x8xf32>
    %158 = vector.extract_strided_slice %121 {offsets = [0, 16], sizes = [8, 8], strides = [1, 1]} : vector<8x32xbf16> to vector<8x8xbf16>
    %159 = vector.extract_strided_slice %122 {offsets = [16, 0], sizes = [8, 8], strides = [1, 1]} : vector<32x8xbf16> to vector<8x8xbf16>
    %cst_44 = arith.constant dense<0.000000e+00> : vector<8x8xf32>
    %160 = tpu.matmul %158, %159, %cst_44 {dimension_numbers = #tpu.dot_dimension_numbers<[1], [0], [0], [1], [0, 0, 1, 1], [], []>} : vector<8x8xbf16>, vector<8x8xbf16>, vector<8x8xf32> -> vector<8x8xf32>
    %161 = arith.addf %160, %5 : vector<8x8xf32>
    %cst_45 = arith.constant dense<0xFF800000> : vector<8xf32>
    %162 = vector.multi_reduction <maximumf>, %161, %cst_45 [1] : vector<8x8xf32> to vector<8xf32>
    %163 = vector.shape_cast %162 : vector<8xf32> to vector<8x1xf32>
    %164 = vector.broadcast %163 : vector<8x1xf32> to vector<8x8xf32>
    %165 = arith.subf %161, %164 : vector<8x8xf32>
    %166 = math.exp %165 : vector<8x8xf32>
    %cst_46 = arith.constant dense<0.000000e+00> : vector<8xf32>
    %167 = vector.multi_reduction <add>, %166, %cst_46 [1] : vector<8x8xf32> to vector<8xf32>
    %168 = vector.shape_cast %167 : vector<8xf32> to vector<8x1xf32>
    %169 = tpu.reciprocal %168 {approx = true} : vector<8x1xf32> -> vector<8x1xf32>
    %170 = vector.broadcast %169 : vector<8x1xf32> to vector<8x8xf32>
    %171 = arith.mulf %166, %170 : vector<8x8xf32>
    %172 = arith.truncf %171 : vector<8x8xf32> to vector<8x8xbf16>
    %173 = vector.extract_strided_slice %123 {offsets = [0, 16], sizes = [8, 8], strides = [1, 1]} : vector<8x32xbf16> to vector<8x8xbf16>
    %cst_47 = arith.constant dense<0.000000e+00> : vector<8x8xf32>
    %174 = tpu.matmul %172, %173, %cst_47 {dimension_numbers = #tpu.dot_dimension_numbers<[1], [0], [0], [1], [0, 0, 1, 1], [], []>} : vector<8x8xbf16>, vector<8x8xbf16>, vector<8x8xf32> -> vector<8x8xf32>
    %175 = vector.extract_strided_slice %121 {offsets = [0, 24], sizes = [8, 8], strides = [1, 1]} : vector<8x32xbf16> to vector<8x8xbf16>
    %176 = vector.extract_strided_slice %122 {offsets = [24, 0], sizes = [8, 8], strides = [1, 1]} : vector<32x8xbf16> to vector<8x8xbf16>
    %cst_48 = arith.constant dense<0.000000e+00> : vector<8x8xf32>
    %177 = tpu.matmul %175, %176, %cst_48 {dimension_numbers = #tpu.dot_dimension_numbers<[1], [0], [0], [1], [0, 0, 1, 1], [], []>} : vector<8x8xbf16>, vector<8x8xbf16>, vector<8x8xf32> -> vector<8x8xf32>
    %178 = arith.addf %177, %5 : vector<8x8xf32>
    %cst_49 = arith.constant dense<0xFF800000> : vector<8xf32>
    %179 = vector.multi_reduction <maximumf>, %178, %cst_49 [1] : vector<8x8xf32> to vector<8xf32>
    %180 = vector.shape_cast %179 : vector<8xf32> to vector<8x1xf32>
    %181 = vector.broadcast %180 : vector<8x1xf32> to vector<8x8xf32>
    %182 = arith.subf %178, %181 : vector<8x8xf32>
    %183 = math.exp %182 : vector<8x8xf32>
    %cst_50 = arith.constant dense<0.000000e+00> : vector<8xf32>
    %184 = vector.multi_reduction <add>, %183, %cst_50 [1] : vector<8x8xf32> to vector<8xf32>
    %185 = vector.shape_cast %184 : vector<8xf32> to vector<8x1xf32>
    %186 = tpu.reciprocal %185 {approx = true} : vector<8x1xf32> -> vector<8x1xf32>
    %187 = vector.broadcast %186 : vector<8x1xf32> to vector<8x8xf32>
    %188 = arith.mulf %183, %187 : vector<8x8xf32>
    %189 = arith.truncf %188 : vector<8x8xf32> to vector<8x8xbf16>
    %190 = vector.extract_strided_slice %123 {offsets = [0, 24], sizes = [8, 8], strides = [1, 1]} : vector<8x32xbf16> to vector<8x8xbf16>
    %cst_51 = arith.constant dense<0.000000e+00> : vector<8x8xf32>
    %191 = tpu.matmul %189, %190, %cst_51 {dimension_numbers = #tpu.dot_dimension_numbers<[1], [0], [0], [1], [0, 0, 1, 1], [], []>} : vector<8x8xbf16>, vector<8x8xbf16>, vector<8x8xf32> -> vector<8x8xf32>
    %192 = tpu.concatenate %140, %157, %174, %191 in 1 : vector<8x8xf32>, vector<8x8xf32>, vector<8x8xf32>, vector<8x8xf32> -> vector<8x32xf32>
    %193 = tpu.concatenate %120, %192 in 0 : vector<8x32xf32>, vector<8x32xf32> -> vector<16x32xf32>
    %c0_52 = arith.constant 0 : index
    %c0_53 = arith.constant 0 : index
    %c0_54 = arith.constant 0 : index
    %194 = vector.load %arg4[%c0_52, %c0_53, %c0_54] : memref<2x32x32xbf16, #tpu.memory_space<vmem>>, vector<1x32x32xbf16>
    %195 = vector.shape_cast %194 : vector<1x32x32xbf16> to vector<32x32xbf16>
    %196 = arith.truncf %193 : vector<16x32xf32> to vector<16x32xbf16>
    %cst_55 = arith.constant dense<0.000000e+00> : vector<16x32xf32>
    %197 = tpu.matmul %196, %195, %cst_55 {dimension_numbers = #tpu.dot_dimension_numbers<[1], [0], [0], [1], [0, 0, 1, 1], [], []>} : vector<16x32xbf16>, vector<32x32xbf16>, vector<16x32xf32> -> vector<16x32xf32>
    %c1 = arith.constant 1 : index
    %c0_56 = arith.constant 0 : index
    %198 = vector.load %arg13[%c1, %c0_56] : memref<16x128xf32, #tpu.memory_space<vmem>>, vector<1x32xf32>
    %199 = vector.broadcast %198 : vector<1x32xf32> to vector<16x32xf32>
    %200 = arith.addf %197, %199 : vector<16x32xf32>
    %201 = arith.addf %32, %200 : vector<16x32xf32>
    %cst_57 = arith.constant dense<0.000000e+00> : vector<16xf32>
    %202 = vector.multi_reduction <add>, %201, %cst_57 [1] : vector<16x32xf32> to vector<16xf32>
    %203 = vector.shape_cast %202 : vector<16xf32> to vector<16x1xf32>
    %cst_58 = arith.constant 3.200000e+01 : f32
    %204 = vector.broadcast %cst_58 : f32 to vector<16x1xf32>
    %205 = arith.divf %203, %204 : vector<16x1xf32>
    %206 = vector.broadcast %205 : vector<16x1xf32> to vector<16x32xf32>
    %207 = arith.subf %201, %206 : vector<16x32xf32>
    %208 = arith.mulf %207, %207 : vector<16x32xf32>
    %cst_59 = arith.constant dense<0.000000e+00> : vector<16xf32>
    %209 = vector.multi_reduction <add>, %208, %cst_59 [1] : vector<16x32xf32> to vector<16xf32>
    %210 = vector.shape_cast %209 : vector<16xf32> to vector<16x1xf32>
    %cst_60 = arith.constant 3.200000e+01 : f32
    %211 = vector.broadcast %cst_60 : f32 to vector<16x1xf32>
    %212 = arith.divf %210, %211 : vector<16x1xf32>
    %213 = vector.broadcast %205 : vector<16x1xf32> to vector<16x32xf32>
    %214 = arith.subf %201, %213 : vector<16x32xf32>
    %cst_61 = arith.constant 9.99999974E-6 : f32
    %215 = vector.broadcast %cst_61 : f32 to vector<16x1xf32>
    %216 = arith.addf %212, %215 : vector<16x1xf32>
    %217 = math.rsqrt %216 : vector<16x1xf32>
    %218 = vector.broadcast %217 : vector<16x1xf32> to vector<16x32xf32>
    %219 = arith.mulf %214, %218 : vector<16x32xf32>
    %c1_62 = arith.constant 1 : index
    %c0_63 = arith.constant 0 : index
    %220 = vector.load %arg11[%c1_62, %c0_63] : memref<8x32xf32, #tpu.memory_space<vmem>>, vector<1x32xf32>
    %221 = vector.broadcast %220 : vector<1x32xf32> to vector<16x32xf32>
    %222 = arith.mulf %219, %221 : vector<16x32xf32>
    %c1_64 = arith.constant 1 : index
    %c0_65 = arith.constant 0 : index
    %223 = vector.load %arg12[%c1_64, %c0_65] : memref<8x32xf32, #tpu.memory_space<vmem>>, vector<1x32xf32>
    %224 = vector.broadcast %223 : vector<1x32xf32> to vector<16x32xf32>
    %225 = arith.addf %222, %224 : vector<16x32xf32>
    %c0_66 = arith.constant 0 : index
    %c0_67 = arith.constant 0 : index
    %c0_68 = arith.constant 0 : index
    %226 = vector.load %arg5[%c0_66, %c0_67, %c0_68] : memref<2x32x32xbf16, #tpu.memory_space<vmem>>, vector<1x32x32xbf16>
    %227 = vector.shape_cast %226 : vector<1x32x32xbf16> to vector<32x32xbf16>
    %228 = arith.truncf %225 : vector<16x32xf32> to vector<16x32xbf16>
    %cst_69 = arith.constant dense<0.000000e+00> : vector<16x32xf32>
    %229 = tpu.matmul %228, %227, %cst_69 {dimension_numbers = #tpu.dot_dimension_numbers<[1], [0], [0], [1], [0, 0, 1, 1], [], []>} : vector<16x32xbf16>, vector<32x32xbf16>, vector<16x32xf32> -> vector<16x32xf32>
    %c2 = arith.constant 2 : index
    %c0_70 = arith.constant 0 : index
    %230 = vector.load %arg13[%c2, %c0_70] : memref<16x128xf32, #tpu.memory_space<vmem>>, vector<1x32xf32>
    %231 = vector.broadcast %230 : vector<1x32xf32> to vector<16x32xf32>
    %232 = arith.addf %229, %231 : vector<16x32xf32>
    %cst_71 = arith.constant 0.353553385 : f32
    %233 = vector.broadcast %cst_71 : f32 to vector<16x32xf32>
    %234 = arith.mulf %232, %233 : vector<16x32xf32>
    %c0_72 = arith.constant 0 : index
    %c0_73 = arith.constant 0 : index
    %c0_74 = arith.constant 0 : index
    %235 = vector.load %arg6[%c0_72, %c0_73, %c0_74] : memref<2x48x64xbf16, #tpu.memory_space<vmem>>, vector<1x48x64xbf16>
    %236 = vector.shape_cast %235 : vector<1x48x64xbf16> to vector<48x64xbf16>
    %cst_75 = arith.constant dense<0.000000e+00> : vector<32x64xf32>
    %237 = tpu.matmul %8, %236, %cst_75 {dimension_numbers = #tpu.dot_dimension_numbers<[1], [0], [0], [1], [0, 0, 1, 1], [], []>} : vector<32x48xbf16>, vector<48x64xbf16>, vector<32x64xf32> -> vector<32x64xf32>
    %c3 = arith.constant 3 : index
    %c0_76 = arith.constant 0 : index
    %238 = vector.load %arg13[%c3, %c0_76] : memref<16x128xf32, #tpu.memory_space<vmem>>, vector<1x64xf32>
    %239 = vector.broadcast %238 : vector<1x64xf32> to vector<32x64xf32>
    %240 = arith.addf %237, %239 : vector<32x64xf32>
    %241 = vector.extract_strided_slice %240 {offsets = [0, 0], sizes = [32, 32], strides = [1, 1]} : vector<32x64xf32> to vector<32x32xf32>
    %242 = vector.extract_strided_slice %240 {offsets = [0, 32], sizes = [32, 32], strides = [1, 1]} : vector<32x64xf32> to vector<32x32xf32>
    %243 = arith.truncf %234 : vector<16x32xf32> to vector<16x32xbf16>
    %244 = tpu.transpose %241, [1, 0] : vector<32x32xf32> -> vector<32x32xf32>
    %245 = arith.truncf %244 : vector<32x32xf32> to vector<32x32xbf16>
    %246 = arith.truncf %242 : vector<32x32xf32> to vector<32x32xbf16>
    %247 = vector.extract_strided_slice %243 {offsets = [0, 0], sizes = [8, 32], strides = [1, 1]} : vector<16x32xbf16> to vector<8x32xbf16>
    %248 = vector.extract_strided_slice %245 {offsets = [0, 0], sizes = [32, 16], strides = [1, 1]} : vector<32x32xbf16> to vector<32x16xbf16>
    %249 = vector.extract_strided_slice %246 {offsets = [0, 0], sizes = [16, 32], strides = [1, 1]} : vector<32x32xbf16> to vector<16x32xbf16>
    %250 = vector.extract_strided_slice %247 {offsets = [0, 0], sizes = [8, 8], strides = [1, 1]} : vector<8x32xbf16> to vector<8x8xbf16>
    %251 = vector.extract_strided_slice %248 {offsets = [0, 0], sizes = [8, 16], strides = [1, 1]} : vector<32x16xbf16> to vector<8x16xbf16>
    %cst_77 = arith.constant dense<0.000000e+00> : vector<8x16xf32>
    %252 = tpu.matmul %250, %251, %cst_77 {dimension_numbers = #tpu.dot_dimension_numbers<[1], [0], [0], [1], [0, 0, 1, 1], [], []>} : vector<8x8xbf16>, vector<8x16xbf16>, vector<8x16xf32> -> vector<8x16xf32>
    %cst_78 = arith.constant dense<0xFF800000> : vector<8xf32>
    %253 = vector.multi_reduction <maximumf>, %252, %cst_78 [1] : vector<8x16xf32> to vector<8xf32>
    %254 = vector.shape_cast %253 : vector<8xf32> to vector<8x1xf32>
    %255 = vector.broadcast %254 : vector<8x1xf32> to vector<8x16xf32>
    %256 = arith.subf %252, %255 : vector<8x16xf32>
    %257 = math.exp %256 : vector<8x16xf32>
    %cst_79 = arith.constant dense<0.000000e+00> : vector<8xf32>
    %258 = vector.multi_reduction <add>, %257, %cst_79 [1] : vector<8x16xf32> to vector<8xf32>
    %259 = vector.shape_cast %258 : vector<8xf32> to vector<8x1xf32>
    %260 = tpu.reciprocal %259 {approx = true} : vector<8x1xf32> -> vector<8x1xf32>
    %261 = vector.broadcast %260 : vector<8x1xf32> to vector<8x16xf32>
    %262 = arith.mulf %257, %261 : vector<8x16xf32>
    %263 = arith.truncf %262 : vector<8x16xf32> to vector<8x16xbf16>
    %264 = vector.extract_strided_slice %249 {offsets = [0, 0], sizes = [16, 8], strides = [1, 1]} : vector<16x32xbf16> to vector<16x8xbf16>
    %cst_80 = arith.constant dense<0.000000e+00> : vector<8x8xf32>
    %265 = tpu.matmul %263, %264, %cst_80 {dimension_numbers = #tpu.dot_dimension_numbers<[1], [0], [0], [1], [0, 0, 1, 1], [], []>} : vector<8x16xbf16>, vector<16x8xbf16>, vector<8x8xf32> -> vector<8x8xf32>
    %266 = vector.extract_strided_slice %247 {offsets = [0, 8], sizes = [8, 8], strides = [1, 1]} : vector<8x32xbf16> to vector<8x8xbf16>
    %267 = vector.extract_strided_slice %248 {offsets = [8, 0], sizes = [8, 16], strides = [1, 1]} : vector<32x16xbf16> to vector<8x16xbf16>
    %cst_81 = arith.constant dense<0.000000e+00> : vector<8x16xf32>
    %268 = tpu.matmul %266, %267, %cst_81 {dimension_numbers = #tpu.dot_dimension_numbers<[1], [0], [0], [1], [0, 0, 1, 1], [], []>} : vector<8x8xbf16>, vector<8x16xbf16>, vector<8x16xf32> -> vector<8x16xf32>
    %cst_82 = arith.constant dense<0xFF800000> : vector<8xf32>
    %269 = vector.multi_reduction <maximumf>, %268, %cst_82 [1] : vector<8x16xf32> to vector<8xf32>
    %270 = vector.shape_cast %269 : vector<8xf32> to vector<8x1xf32>
    %271 = vector.broadcast %270 : vector<8x1xf32> to vector<8x16xf32>
    %272 = arith.subf %268, %271 : vector<8x16xf32>
    %273 = math.exp %272 : vector<8x16xf32>
    %cst_83 = arith.constant dense<0.000000e+00> : vector<8xf32>
    %274 = vector.multi_reduction <add>, %273, %cst_83 [1] : vector<8x16xf32> to vector<8xf32>
    %275 = vector.shape_cast %274 : vector<8xf32> to vector<8x1xf32>
    %276 = tpu.reciprocal %275 {approx = true} : vector<8x1xf32> -> vector<8x1xf32>
    %277 = vector.broadcast %276 : vector<8x1xf32> to vector<8x16xf32>
    %278 = arith.mulf %273, %277 : vector<8x16xf32>
    %279 = arith.truncf %278 : vector<8x16xf32> to vector<8x16xbf16>
    %280 = vector.extract_strided_slice %249 {offsets = [0, 8], sizes = [16, 8], strides = [1, 1]} : vector<16x32xbf16> to vector<16x8xbf16>
    %cst_84 = arith.constant dense<0.000000e+00> : vector<8x8xf32>
    %281 = tpu.matmul %279, %280, %cst_84 {dimension_numbers = #tpu.dot_dimension_numbers<[1], [0], [0], [1], [0, 0, 1, 1], [], []>} : vector<8x16xbf16>, vector<16x8xbf16>, vector<8x8xf32> -> vector<8x8xf32>
    %282 = vector.extract_strided_slice %247 {offsets = [0, 16], sizes = [8, 8], strides = [1, 1]} : vector<8x32xbf16> to vector<8x8xbf16>
    %283 = vector.extract_strided_slice %248 {offsets = [16, 0], sizes = [8, 16], strides = [1, 1]} : vector<32x16xbf16> to vector<8x16xbf16>
    %cst_85 = arith.constant dense<0.000000e+00> : vector<8x16xf32>
    %284 = tpu.matmul %282, %283, %cst_85 {dimension_numbers = #tpu.dot_dimension_numbers<[1], [0], [0], [1], [0, 0, 1, 1], [], []>} : vector<8x8xbf16>, vector<8x16xbf16>, vector<8x16xf32> -> vector<8x16xf32>
    %cst_86 = arith.constant dense<0xFF800000> : vector<8xf32>
    %285 = vector.multi_reduction <maximumf>, %284, %cst_86 [1] : vector<8x16xf32> to vector<8xf32>
    %286 = vector.shape_cast %285 : vector<8xf32> to vector<8x1xf32>
    %287 = vector.broadcast %286 : vector<8x1xf32> to vector<8x16xf32>
    %288 = arith.subf %284, %287 : vector<8x16xf32>
    %289 = math.exp %288 : vector<8x16xf32>
    %cst_87 = arith.constant dense<0.000000e+00> : vector<8xf32>
    %290 = vector.multi_reduction <add>, %289, %cst_87 [1] : vector<8x16xf32> to vector<8xf32>
    %291 = vector.shape_cast %290 : vector<8xf32> to vector<8x1xf32>
    %292 = tpu.reciprocal %291 {approx = true} : vector<8x1xf32> -> vector<8x1xf32>
    %293 = vector.broadcast %292 : vector<8x1xf32> to vector<8x16xf32>
    %294 = arith.mulf %289, %293 : vector<8x16xf32>
    %295 = arith.truncf %294 : vector<8x16xf32> to vector<8x16xbf16>
    %296 = vector.extract_strided_slice %249 {offsets = [0, 16], sizes = [16, 8], strides = [1, 1]} : vector<16x32xbf16> to vector<16x8xbf16>
    %cst_88 = arith.constant dense<0.000000e+00> : vector<8x8xf32>
    %297 = tpu.matmul %295, %296, %cst_88 {dimension_numbers = #tpu.dot_dimension_numbers<[1], [0], [0], [1], [0, 0, 1, 1], [], []>} : vector<8x16xbf16>, vector<16x8xbf16>, vector<8x8xf32> -> vector<8x8xf32>
    %298 = vector.extract_strided_slice %247 {offsets = [0, 24], sizes = [8, 8], strides = [1, 1]} : vector<8x32xbf16> to vector<8x8xbf16>
    %299 = vector.extract_strided_slice %248 {offsets = [24, 0], sizes = [8, 16], strides = [1, 1]} : vector<32x16xbf16> to vector<8x16xbf16>
    %cst_89 = arith.constant dense<0.000000e+00> : vector<8x16xf32>
    %300 = tpu.matmul %298, %299, %cst_89 {dimension_numbers = #tpu.dot_dimension_numbers<[1], [0], [0], [1], [0, 0, 1, 1], [], []>} : vector<8x8xbf16>, vector<8x16xbf16>, vector<8x16xf32> -> vector<8x16xf32>
    %cst_90 = arith.constant dense<0xFF800000> : vector<8xf32>
    %301 = vector.multi_reduction <maximumf>, %300, %cst_90 [1] : vector<8x16xf32> to vector<8xf32>
    %302 = vector.shape_cast %301 : vector<8xf32> to vector<8x1xf32>
    %303 = vector.broadcast %302 : vector<8x1xf32> to vector<8x16xf32>
    %304 = arith.subf %300, %303 : vector<8x16xf32>
    %305 = math.exp %304 : vector<8x16xf32>
    %cst_91 = arith.constant dense<0.000000e+00> : vector<8xf32>
    %306 = vector.multi_reduction <add>, %305, %cst_91 [1] : vector<8x16xf32> to vector<8xf32>
    %307 = vector.shape_cast %306 : vector<8xf32> to vector<8x1xf32>
    %308 = tpu.reciprocal %307 {approx = true} : vector<8x1xf32> -> vector<8x1xf32>
    %309 = vector.broadcast %308 : vector<8x1xf32> to vector<8x16xf32>
    %310 = arith.mulf %305, %309 : vector<8x16xf32>
    %311 = arith.truncf %310 : vector<8x16xf32> to vector<8x16xbf16>
    %312 = vector.extract_strided_slice %249 {offsets = [0, 24], sizes = [16, 8], strides = [1, 1]} : vector<16x32xbf16> to vector<16x8xbf16>
    %cst_92 = arith.constant dense<0.000000e+00> : vector<8x8xf32>
    %313 = tpu.matmul %311, %312, %cst_92 {dimension_numbers = #tpu.dot_dimension_numbers<[1], [0], [0], [1], [0, 0, 1, 1], [], []>} : vector<8x16xbf16>, vector<16x8xbf16>, vector<8x8xf32> -> vector<8x8xf32>
    %314 = tpu.concatenate %265, %281, %297, %313 in 1 : vector<8x8xf32>, vector<8x8xf32>, vector<8x8xf32>, vector<8x8xf32> -> vector<8x32xf32>
    %315 = vector.extract_strided_slice %243 {offsets = [8, 0], sizes = [8, 32], strides = [1, 1]} : vector<16x32xbf16> to vector<8x32xbf16>
    %316 = vector.extract_strided_slice %245 {offsets = [0, 16], sizes = [32, 16], strides = [1, 1]} : vector<32x32xbf16> to vector<32x16xbf16>
    %317 = vector.extract_strided_slice %246 {offsets = [16, 0], sizes = [16, 32], strides = [1, 1]} : vector<32x32xbf16> to vector<16x32xbf16>
    %318 = vector.extract_strided_slice %315 {offsets = [0, 0], sizes = [8, 8], strides = [1, 1]} : vector<8x32xbf16> to vector<8x8xbf16>
    %319 = vector.extract_strided_slice %316 {offsets = [0, 0], sizes = [8, 16], strides = [1, 1]} : vector<32x16xbf16> to vector<8x16xbf16>
    %cst_93 = arith.constant dense<0.000000e+00> : vector<8x16xf32>
    %320 = tpu.matmul %318, %319, %cst_93 {dimension_numbers = #tpu.dot_dimension_numbers<[1], [0], [0], [1], [0, 0, 1, 1], [], []>} : vector<8x8xbf16>, vector<8x16xbf16>, vector<8x16xf32> -> vector<8x16xf32>
    %cst_94 = arith.constant dense<0xFF800000> : vector<8xf32>
    %321 = vector.multi_reduction <maximumf>, %320, %cst_94 [1] : vector<8x16xf32> to vector<8xf32>
    %322 = vector.shape_cast %321 : vector<8xf32> to vector<8x1xf32>
    %323 = vector.broadcast %322 : vector<8x1xf32> to vector<8x16xf32>
    %324 = arith.subf %320, %323 : vector<8x16xf32>
    %325 = math.exp %324 : vector<8x16xf32>
    %cst_95 = arith.constant dense<0.000000e+00> : vector<8xf32>
    %326 = vector.multi_reduction <add>, %325, %cst_95 [1] : vector<8x16xf32> to vector<8xf32>
    %327 = vector.shape_cast %326 : vector<8xf32> to vector<8x1xf32>
    %328 = tpu.reciprocal %327 {approx = true} : vector<8x1xf32> -> vector<8x1xf32>
    %329 = vector.broadcast %328 : vector<8x1xf32> to vector<8x16xf32>
    %330 = arith.mulf %325, %329 : vector<8x16xf32>
    %331 = arith.truncf %330 : vector<8x16xf32> to vector<8x16xbf16>
    %332 = vector.extract_strided_slice %317 {offsets = [0, 0], sizes = [16, 8], strides = [1, 1]} : vector<16x32xbf16> to vector<16x8xbf16>
    %cst_96 = arith.constant dense<0.000000e+00> : vector<8x8xf32>
    %333 = tpu.matmul %331, %332, %cst_96 {dimension_numbers = #tpu.dot_dimension_numbers<[1], [0], [0], [1], [0, 0, 1, 1], [], []>} : vector<8x16xbf16>, vector<16x8xbf16>, vector<8x8xf32> -> vector<8x8xf32>
    %334 = vector.extract_strided_slice %315 {offsets = [0, 8], sizes = [8, 8], strides = [1, 1]} : vector<8x32xbf16> to vector<8x8xbf16>
    %335 = vector.extract_strided_slice %316 {offsets = [8, 0], sizes = [8, 16], strides = [1, 1]} : vector<32x16xbf16> to vector<8x16xbf16>
    %cst_97 = arith.constant dense<0.000000e+00> : vector<8x16xf32>
    %336 = tpu.matmul %334, %335, %cst_97 {dimension_numbers = #tpu.dot_dimension_numbers<[1], [0], [0], [1], [0, 0, 1, 1], [], []>} : vector<8x8xbf16>, vector<8x16xbf16>, vector<8x16xf32> -> vector<8x16xf32>
    %cst_98 = arith.constant dense<0xFF800000> : vector<8xf32>
    %337 = vector.multi_reduction <maximumf>, %336, %cst_98 [1] : vector<8x16xf32> to vector<8xf32>
    %338 = vector.shape_cast %337 : vector<8xf32> to vector<8x1xf32>
    %339 = vector.broadcast %338 : vector<8x1xf32> to vector<8x16xf32>
    %340 = arith.subf %336, %339 : vector<8x16xf32>
    %341 = math.exp %340 : vector<8x16xf32>
    %cst_99 = arith.constant dense<0.000000e+00> : vector<8xf32>
    %342 = vector.multi_reduction <add>, %341, %cst_99 [1] : vector<8x16xf32> to vector<8xf32>
    %343 = vector.shape_cast %342 : vector<8xf32> to vector<8x1xf32>
    %344 = tpu.reciprocal %343 {approx = true} : vector<8x1xf32> -> vector<8x1xf32>
    %345 = vector.broadcast %344 : vector<8x1xf32> to vector<8x16xf32>
    %346 = arith.mulf %341, %345 : vector<8x16xf32>
    %347 = arith.truncf %346 : vector<8x16xf32> to vector<8x16xbf16>
    %348 = vector.extract_strided_slice %317 {offsets = [0, 8], sizes = [16, 8], strides = [1, 1]} : vector<16x32xbf16> to vector<16x8xbf16>
    %cst_100 = arith.constant dense<0.000000e+00> : vector<8x8xf32>
    %349 = tpu.matmul %347, %348, %cst_100 {dimension_numbers = #tpu.dot_dimension_numbers<[1], [0], [0], [1], [0, 0, 1, 1], [], []>} : vector<8x16xbf16>, vector<16x8xbf16>, vector<8x8xf32> -> vector<8x8xf32>
    %350 = vector.extract_strided_slice %315 {offsets = [0, 16], sizes = [8, 8], strides = [1, 1]} : vector<8x32xbf16> to vector<8x8xbf16>
    %351 = vector.extract_strided_slice %316 {offsets = [16, 0], sizes = [8, 16], strides = [1, 1]} : vector<32x16xbf16> to vector<8x16xbf16>
    %cst_101 = arith.constant dense<0.000000e+00> : vector<8x16xf32>
    %352 = tpu.matmul %350, %351, %cst_101 {dimension_numbers = #tpu.dot_dimension_numbers<[1], [0], [0], [1], [0, 0, 1, 1], [], []>} : vector<8x8xbf16>, vector<8x16xbf16>, vector<8x16xf32> -> vector<8x16xf32>
    %cst_102 = arith.constant dense<0xFF800000> : vector<8xf32>
    %353 = vector.multi_reduction <maximumf>, %352, %cst_102 [1] : vector<8x16xf32> to vector<8xf32>
    %354 = vector.shape_cast %353 : vector<8xf32> to vector<8x1xf32>
    %355 = vector.broadcast %354 : vector<8x1xf32> to vector<8x16xf32>
    %356 = arith.subf %352, %355 : vector<8x16xf32>
    %357 = math.exp %356 : vector<8x16xf32>
    %cst_103 = arith.constant dense<0.000000e+00> : vector<8xf32>
    %358 = vector.multi_reduction <add>, %357, %cst_103 [1] : vector<8x16xf32> to vector<8xf32>
    %359 = vector.shape_cast %358 : vector<8xf32> to vector<8x1xf32>
    %360 = tpu.reciprocal %359 {approx = true} : vector<8x1xf32> -> vector<8x1xf32>
    %361 = vector.broadcast %360 : vector<8x1xf32> to vector<8x16xf32>
    %362 = arith.mulf %357, %361 : vector<8x16xf32>
    %363 = arith.truncf %362 : vector<8x16xf32> to vector<8x16xbf16>
    %364 = vector.extract_strided_slice %317 {offsets = [0, 16], sizes = [16, 8], strides = [1, 1]} : vector<16x32xbf16> to vector<16x8xbf16>
    %cst_104 = arith.constant dense<0.000000e+00> : vector<8x8xf32>
    %365 = tpu.matmul %363, %364, %cst_104 {dimension_numbers = #tpu.dot_dimension_numbers<[1], [0], [0], [1], [0, 0, 1, 1], [], []>} : vector<8x16xbf16>, vector<16x8xbf16>, vector<8x8xf32> -> vector<8x8xf32>
    %366 = vector.extract_strided_slice %315 {offsets = [0, 24], sizes = [8, 8], strides = [1, 1]} : vector<8x32xbf16> to vector<8x8xbf16>
    %367 = vector.extract_strided_slice %316 {offsets = [24, 0], sizes = [8, 16], strides = [1, 1]} : vector<32x16xbf16> to vector<8x16xbf16>
    %cst_105 = arith.constant dense<0.000000e+00> : vector<8x16xf32>
    %368 = tpu.matmul %366, %367, %cst_105 {dimension_numbers = #tpu.dot_dimension_numbers<[1], [0], [0], [1], [0, 0, 1, 1], [], []>} : vector<8x8xbf16>, vector<8x16xbf16>, vector<8x16xf32> -> vector<8x16xf32>
    %cst_106 = arith.constant dense<0xFF800000> : vector<8xf32>
    %369 = vector.multi_reduction <maximumf>, %368, %cst_106 [1] : vector<8x16xf32> to vector<8xf32>
    %370 = vector.shape_cast %369 : vector<8xf32> to vector<8x1xf32>
    %371 = vector.broadcast %370 : vector<8x1xf32> to vector<8x16xf32>
    %372 = arith.subf %368, %371 : vector<8x16xf32>
    %373 = math.exp %372 : vector<8x16xf32>
    %cst_107 = arith.constant dense<0.000000e+00> : vector<8xf32>
    %374 = vector.multi_reduction <add>, %373, %cst_107 [1] : vector<8x16xf32> to vector<8xf32>
    %375 = vector.shape_cast %374 : vector<8xf32> to vector<8x1xf32>
    %376 = tpu.reciprocal %375 {approx = true} : vector<8x1xf32> -> vector<8x1xf32>
    %377 = vector.broadcast %376 : vector<8x1xf32> to vector<8x16xf32>
    %378 = arith.mulf %373, %377 : vector<8x16xf32>
    %379 = arith.truncf %378 : vector<8x16xf32> to vector<8x16xbf16>
    %380 = vector.extract_strided_slice %317 {offsets = [0, 24], sizes = [16, 8], strides = [1, 1]} : vector<16x32xbf16> to vector<16x8xbf16>
    %cst_108 = arith.constant dense<0.000000e+00> : vector<8x8xf32>
    %381 = tpu.matmul %379, %380, %cst_108 {dimension_numbers = #tpu.dot_dimension_numbers<[1], [0], [0], [1], [0, 0, 1, 1], [], []>} : vector<8x16xbf16>, vector<16x8xbf16>, vector<8x8xf32> -> vector<8x8xf32>
    %382 = tpu.concatenate %333, %349, %365, %381 in 1 : vector<8x8xf32>, vector<8x8xf32>, vector<8x8xf32>, vector<8x8xf32> -> vector<8x32xf32>
    %383 = tpu.concatenate %314, %382 in 0 : vector<8x32xf32>, vector<8x32xf32> -> vector<16x32xf32>
    %c0_109 = arith.constant 0 : index
    %c0_110 = arith.constant 0 : index
    %c0_111 = arith.constant 0 : index
    %384 = vector.load %arg7[%c0_109, %c0_110, %c0_111] : memref<2x32x32xbf16, #tpu.memory_space<vmem>>, vector<1x32x32xbf16>
    %385 = vector.shape_cast %384 : vector<1x32x32xbf16> to vector<32x32xbf16>
    %386 = arith.truncf %383 : vector<16x32xf32> to vector<16x32xbf16>
    %cst_112 = arith.constant dense<0.000000e+00> : vector<16x32xf32>
    %387 = tpu.matmul %386, %385, %cst_112 {dimension_numbers = #tpu.dot_dimension_numbers<[1], [0], [0], [1], [0, 0, 1, 1], [], []>} : vector<16x32xbf16>, vector<32x32xbf16>, vector<16x32xf32> -> vector<16x32xf32>
    %c4 = arith.constant 4 : index
    %c0_113 = arith.constant 0 : index
    %388 = vector.load %arg13[%c4, %c0_113] : memref<16x128xf32, #tpu.memory_space<vmem>>, vector<1x32xf32>
    %389 = vector.broadcast %388 : vector<1x32xf32> to vector<16x32xf32>
    %390 = arith.addf %387, %389 : vector<16x32xf32>
    %391 = arith.addf %225, %390 : vector<16x32xf32>
    %cst_114 = arith.constant dense<0.000000e+00> : vector<16xf32>
    %392 = vector.multi_reduction <add>, %391, %cst_114 [1] : vector<16x32xf32> to vector<16xf32>
    %393 = vector.shape_cast %392 : vector<16xf32> to vector<16x1xf32>
    %cst_115 = arith.constant 3.200000e+01 : f32
    %394 = vector.broadcast %cst_115 : f32 to vector<16x1xf32>
    %395 = arith.divf %393, %394 : vector<16x1xf32>
    %396 = vector.broadcast %395 : vector<16x1xf32> to vector<16x32xf32>
    %397 = arith.subf %391, %396 : vector<16x32xf32>
    %398 = arith.mulf %397, %397 : vector<16x32xf32>
    %cst_116 = arith.constant dense<0.000000e+00> : vector<16xf32>
    %399 = vector.multi_reduction <add>, %398, %cst_116 [1] : vector<16x32xf32> to vector<16xf32>
    %400 = vector.shape_cast %399 : vector<16xf32> to vector<16x1xf32>
    %cst_117 = arith.constant 3.200000e+01 : f32
    %401 = vector.broadcast %cst_117 : f32 to vector<16x1xf32>
    %402 = arith.divf %400, %401 : vector<16x1xf32>
    %403 = vector.broadcast %395 : vector<16x1xf32> to vector<16x32xf32>
    %404 = arith.subf %391, %403 : vector<16x32xf32>
    %cst_118 = arith.constant 9.99999974E-6 : f32
    %405 = vector.broadcast %cst_118 : f32 to vector<16x1xf32>
    %406 = arith.addf %402, %405 : vector<16x1xf32>
    %407 = math.rsqrt %406 : vector<16x1xf32>
    %408 = vector.broadcast %407 : vector<16x1xf32> to vector<16x32xf32>
    %409 = arith.mulf %404, %408 : vector<16x32xf32>
    %c2_119 = arith.constant 2 : index
    %c0_120 = arith.constant 0 : index
    %410 = vector.load %arg11[%c2_119, %c0_120] : memref<8x32xf32, #tpu.memory_space<vmem>>, vector<1x32xf32>
    %411 = vector.broadcast %410 : vector<1x32xf32> to vector<16x32xf32>
    %412 = arith.mulf %409, %411 : vector<16x32xf32>
    %c2_121 = arith.constant 2 : index
    %c0_122 = arith.constant 0 : index
    %413 = vector.load %arg12[%c2_121, %c0_122] : memref<8x32xf32, #tpu.memory_space<vmem>>, vector<1x32xf32>
    %414 = vector.broadcast %413 : vector<1x32xf32> to vector<16x32xf32>
    %415 = arith.addf %412, %414 : vector<16x32xf32>
    %c0_123 = arith.constant 0 : index
    %c0_124 = arith.constant 0 : index
    %c0_125 = arith.constant 0 : index
    %416 = vector.load %arg8[%c0_123, %c0_124, %c0_125] : memref<2x32x64xbf16, #tpu.memory_space<vmem>>, vector<1x32x64xbf16>
    %417 = vector.shape_cast %416 : vector<1x32x64xbf16> to vector<32x64xbf16>
    %418 = arith.truncf %415 : vector<16x32xf32> to vector<16x32xbf16>
    %cst_126 = arith.constant dense<0.000000e+00> : vector<16x64xf32>
    %419 = tpu.matmul %418, %417, %cst_126 {dimension_numbers = #tpu.dot_dimension_numbers<[1], [0], [0], [1], [0, 0, 1, 1], [], []>} : vector<16x32xbf16>, vector<32x64xbf16>, vector<16x64xf32> -> vector<16x64xf32>
    %c5 = arith.constant 5 : index
    %c0_127 = arith.constant 0 : index
    %420 = vector.load %arg13[%c5, %c0_127] : memref<16x128xf32, #tpu.memory_space<vmem>>, vector<1x64xf32>
    %421 = vector.broadcast %420 : vector<1x64xf32> to vector<16x64xf32>
    %422 = arith.addf %419, %421 : vector<16x64xf32>
    %cst_128 = arith.constant 0.000000e+00 : f32
    %423 = vector.broadcast %cst_128 : f32 to vector<16x64xf32>
    %424 = arith.maximumf %422, %423 : vector<16x64xf32>
    %c0_129 = arith.constant 0 : index
    %c0_130 = arith.constant 0 : index
    %c0_131 = arith.constant 0 : index
    %425 = vector.load %arg9[%c0_129, %c0_130, %c0_131] : memref<2x64x32xbf16, #tpu.memory_space<vmem>>, vector<1x64x32xbf16>
    %426 = vector.shape_cast %425 : vector<1x64x32xbf16> to vector<64x32xbf16>
    %427 = arith.truncf %424 : vector<16x64xf32> to vector<16x64xbf16>
    %cst_132 = arith.constant dense<0.000000e+00> : vector<16x32xf32>
    %428 = tpu.matmul %427, %426, %cst_132 {dimension_numbers = #tpu.dot_dimension_numbers<[1], [0], [0], [1], [0, 0, 1, 1], [], []>} : vector<16x64xbf16>, vector<64x32xbf16>, vector<16x32xf32> -> vector<16x32xf32>
    %c6 = arith.constant 6 : index
    %c0_133 = arith.constant 0 : index
    %429 = vector.load %arg13[%c6, %c0_133] : memref<16x128xf32, #tpu.memory_space<vmem>>, vector<1x32xf32>
    %430 = vector.broadcast %429 : vector<1x32xf32> to vector<16x32xf32>
    %431 = arith.addf %428, %430 : vector<16x32xf32>
    %432 = arith.addf %415, %431 : vector<16x32xf32>
    %cst_134 = arith.constant dense<0.000000e+00> : vector<16xf32>
    %433 = vector.multi_reduction <add>, %432, %cst_134 [1] : vector<16x32xf32> to vector<16xf32>
    %434 = vector.shape_cast %433 : vector<16xf32> to vector<16x1xf32>
    %cst_135 = arith.constant 3.200000e+01 : f32
    %435 = vector.broadcast %cst_135 : f32 to vector<16x1xf32>
    %436 = arith.divf %434, %435 : vector<16x1xf32>
    %437 = vector.broadcast %436 : vector<16x1xf32> to vector<16x32xf32>
    %438 = arith.subf %432, %437 : vector<16x32xf32>
    %439 = arith.mulf %438, %438 : vector<16x32xf32>
    %cst_136 = arith.constant dense<0.000000e+00> : vector<16xf32>
    %440 = vector.multi_reduction <add>, %439, %cst_136 [1] : vector<16x32xf32> to vector<16xf32>
    %441 = vector.shape_cast %440 : vector<16xf32> to vector<16x1xf32>
    %cst_137 = arith.constant 3.200000e+01 : f32
    %442 = vector.broadcast %cst_137 : f32 to vector<16x1xf32>
    %443 = arith.divf %441, %442 : vector<16x1xf32>
    %444 = vector.broadcast %436 : vector<16x1xf32> to vector<16x32xf32>
    %445 = arith.subf %432, %444 : vector<16x32xf32>
    %cst_138 = arith.constant 9.99999974E-6 : f32
    %446 = vector.broadcast %cst_138 : f32 to vector<16x1xf32>
    %447 = arith.addf %443, %446 : vector<16x1xf32>
    %448 = math.rsqrt %447 : vector<16x1xf32>
    %449 = vector.broadcast %448 : vector<16x1xf32> to vector<16x32xf32>
    %450 = arith.mulf %445, %449 : vector<16x32xf32>
    %c3_139 = arith.constant 3 : index
    %c0_140 = arith.constant 0 : index
    %451 = vector.load %arg11[%c3_139, %c0_140] : memref<8x32xf32, #tpu.memory_space<vmem>>, vector<1x32xf32>
    %452 = vector.broadcast %451 : vector<1x32xf32> to vector<16x32xf32>
    %453 = arith.mulf %450, %452 : vector<16x32xf32>
    %c3_141 = arith.constant 3 : index
    %c0_142 = arith.constant 0 : index
    %454 = vector.load %arg12[%c3_141, %c0_142] : memref<8x32xf32, #tpu.memory_space<vmem>>, vector<1x32xf32>
    %455 = vector.broadcast %454 : vector<1x32xf32> to vector<16x32xf32>
    %456 = arith.addf %453, %455 : vector<16x32xf32>
    %c1_143 = arith.constant 1 : index
    %c0_144 = arith.constant 0 : index
    %c0_145 = arith.constant 0 : index
    %457 = vector.load %arg3[%c1_143, %c0_144, %c0_145] : memref<2x32x96xbf16, #tpu.memory_space<vmem>>, vector<1x32x96xbf16>
    %458 = vector.shape_cast %457 : vector<1x32x96xbf16> to vector<32x96xbf16>
    %459 = arith.truncf %456 : vector<16x32xf32> to vector<16x32xbf16>
    %cst_146 = arith.constant dense<0.000000e+00> : vector<16x96xf32>
    %460 = tpu.matmul %459, %458, %cst_146 {dimension_numbers = #tpu.dot_dimension_numbers<[1], [0], [0], [1], [0, 0, 1, 1], [], []>} : vector<16x32xbf16>, vector<32x96xbf16>, vector<16x96xf32> -> vector<16x96xf32>
    %c7 = arith.constant 7 : index
    %c0_147 = arith.constant 0 : index
    %461 = vector.load %arg13[%c7, %c0_147] : memref<16x128xf32, #tpu.memory_space<vmem>>, vector<1x96xf32>
    %462 = vector.broadcast %461 : vector<1x96xf32> to vector<16x96xf32>
    %463 = arith.addf %460, %462 : vector<16x96xf32>
    %464 = vector.extract_strided_slice %463 {offsets = [0, 0], sizes = [16, 32], strides = [1, 1]} : vector<16x96xf32> to vector<16x32xf32>
    %cst_148 = arith.constant 0.353553385 : f32
    %465 = vector.broadcast %cst_148 : f32 to vector<16x32xf32>
    %466 = arith.mulf %464, %465 : vector<16x32xf32>
    %467 = vector.extract_strided_slice %463 {offsets = [0, 32], sizes = [16, 32], strides = [1, 1]} : vector<16x96xf32> to vector<16x32xf32>
    %468 = vector.extract_strided_slice %463 {offsets = [0, 64], sizes = [16, 32], strides = [1, 1]} : vector<16x96xf32> to vector<16x32xf32>
    %469 = arith.truncf %466 : vector<16x32xf32> to vector<16x32xbf16>
    %470 = tpu.transpose %467, [1, 0] : vector<16x32xf32> -> vector<32x16xf32>
    %471 = arith.truncf %470 : vector<32x16xf32> to vector<32x16xbf16>
    %472 = arith.truncf %468 : vector<16x32xf32> to vector<16x32xbf16>
    %473 = vector.extract_strided_slice %469 {offsets = [0, 0], sizes = [8, 32], strides = [1, 1]} : vector<16x32xbf16> to vector<8x32xbf16>
    %474 = vector.extract_strided_slice %471 {offsets = [0, 0], sizes = [32, 8], strides = [1, 1]} : vector<32x16xbf16> to vector<32x8xbf16>
    %475 = vector.extract_strided_slice %472 {offsets = [0, 0], sizes = [8, 32], strides = [1, 1]} : vector<16x32xbf16> to vector<8x32xbf16>
    %476 = vector.extract_strided_slice %473 {offsets = [0, 0], sizes = [8, 8], strides = [1, 1]} : vector<8x32xbf16> to vector<8x8xbf16>
    %477 = vector.extract_strided_slice %474 {offsets = [0, 0], sizes = [8, 8], strides = [1, 1]} : vector<32x8xbf16> to vector<8x8xbf16>
    %cst_149 = arith.constant dense<0.000000e+00> : vector<8x8xf32>
    %478 = tpu.matmul %476, %477, %cst_149 {dimension_numbers = #tpu.dot_dimension_numbers<[1], [0], [0], [1], [0, 0, 1, 1], [], []>} : vector<8x8xbf16>, vector<8x8xbf16>, vector<8x8xf32> -> vector<8x8xf32>
    %479 = arith.addf %478, %5 : vector<8x8xf32>
    %cst_150 = arith.constant dense<0xFF800000> : vector<8xf32>
    %480 = vector.multi_reduction <maximumf>, %479, %cst_150 [1] : vector<8x8xf32> to vector<8xf32>
    %481 = vector.shape_cast %480 : vector<8xf32> to vector<8x1xf32>
    %482 = vector.broadcast %481 : vector<8x1xf32> to vector<8x8xf32>
    %483 = arith.subf %479, %482 : vector<8x8xf32>
    %484 = math.exp %483 : vector<8x8xf32>
    %cst_151 = arith.constant dense<0.000000e+00> : vector<8xf32>
    %485 = vector.multi_reduction <add>, %484, %cst_151 [1] : vector<8x8xf32> to vector<8xf32>
    %486 = vector.shape_cast %485 : vector<8xf32> to vector<8x1xf32>
    %487 = tpu.reciprocal %486 {approx = true} : vector<8x1xf32> -> vector<8x1xf32>
    %488 = vector.broadcast %487 : vector<8x1xf32> to vector<8x8xf32>
    %489 = arith.mulf %484, %488 : vector<8x8xf32>
    %490 = arith.truncf %489 : vector<8x8xf32> to vector<8x8xbf16>
    %491 = vector.extract_strided_slice %475 {offsets = [0, 0], sizes = [8, 8], strides = [1, 1]} : vector<8x32xbf16> to vector<8x8xbf16>
    %cst_152 = arith.constant dense<0.000000e+00> : vector<8x8xf32>
    %492 = tpu.matmul %490, %491, %cst_152 {dimension_numbers = #tpu.dot_dimension_numbers<[1], [0], [0], [1], [0, 0, 1, 1], [], []>} : vector<8x8xbf16>, vector<8x8xbf16>, vector<8x8xf32> -> vector<8x8xf32>
    %493 = vector.extract_strided_slice %473 {offsets = [0, 8], sizes = [8, 8], strides = [1, 1]} : vector<8x32xbf16> to vector<8x8xbf16>
    %494 = vector.extract_strided_slice %474 {offsets = [8, 0], sizes = [8, 8], strides = [1, 1]} : vector<32x8xbf16> to vector<8x8xbf16>
    %cst_153 = arith.constant dense<0.000000e+00> : vector<8x8xf32>
    %495 = tpu.matmul %493, %494, %cst_153 {dimension_numbers = #tpu.dot_dimension_numbers<[1], [0], [0], [1], [0, 0, 1, 1], [], []>} : vector<8x8xbf16>, vector<8x8xbf16>, vector<8x8xf32> -> vector<8x8xf32>
    %496 = arith.addf %495, %5 : vector<8x8xf32>
    %cst_154 = arith.constant dense<0xFF800000> : vector<8xf32>
    %497 = vector.multi_reduction <maximumf>, %496, %cst_154 [1] : vector<8x8xf32> to vector<8xf32>
    %498 = vector.shape_cast %497 : vector<8xf32> to vector<8x1xf32>
    %499 = vector.broadcast %498 : vector<8x1xf32> to vector<8x8xf32>
    %500 = arith.subf %496, %499 : vector<8x8xf32>
    %501 = math.exp %500 : vector<8x8xf32>
    %cst_155 = arith.constant dense<0.000000e+00> : vector<8xf32>
    %502 = vector.multi_reduction <add>, %501, %cst_155 [1] : vector<8x8xf32> to vector<8xf32>
    %503 = vector.shape_cast %502 : vector<8xf32> to vector<8x1xf32>
    %504 = tpu.reciprocal %503 {approx = true} : vector<8x1xf32> -> vector<8x1xf32>
    %505 = vector.broadcast %504 : vector<8x1xf32> to vector<8x8xf32>
    %506 = arith.mulf %501, %505 : vector<8x8xf32>
    %507 = arith.truncf %506 : vector<8x8xf32> to vector<8x8xbf16>
    %508 = vector.extract_strided_slice %475 {offsets = [0, 8], sizes = [8, 8], strides = [1, 1]} : vector<8x32xbf16> to vector<8x8xbf16>
    %cst_156 = arith.constant dense<0.000000e+00> : vector<8x8xf32>
    %509 = tpu.matmul %507, %508, %cst_156 {dimension_numbers = #tpu.dot_dimension_numbers<[1], [0], [0], [1], [0, 0, 1, 1], [], []>} : vector<8x8xbf16>, vector<8x8xbf16>, vector<8x8xf32> -> vector<8x8xf32>
    %510 = vector.extract_strided_slice %473 {offsets = [0, 16], sizes = [8, 8], strides = [1, 1]} : vector<8x32xbf16> to vector<8x8xbf16>
    %511 = vector.extract_strided_slice %474 {offsets = [16, 0], sizes = [8, 8], strides = [1, 1]} : vector<32x8xbf16> to vector<8x8xbf16>
    %cst_157 = arith.constant dense<0.000000e+00> : vector<8x8xf32>
    %512 = tpu.matmul %510, %511, %cst_157 {dimension_numbers = #tpu.dot_dimension_numbers<[1], [0], [0], [1], [0, 0, 1, 1], [], []>} : vector<8x8xbf16>, vector<8x8xbf16>, vector<8x8xf32> -> vector<8x8xf32>
    %513 = arith.addf %512, %5 : vector<8x8xf32>
    %cst_158 = arith.constant dense<0xFF800000> : vector<8xf32>
    %514 = vector.multi_reduction <maximumf>, %513, %cst_158 [1] : vector<8x8xf32> to vector<8xf32>
    %515 = vector.shape_cast %514 : vector<8xf32> to vector<8x1xf32>
    %516 = vector.broadcast %515 : vector<8x1xf32> to vector<8x8xf32>
    %517 = arith.subf %513, %516 : vector<8x8xf32>
    %518 = math.exp %517 : vector<8x8xf32>
    %cst_159 = arith.constant dense<0.000000e+00> : vector<8xf32>
    %519 = vector.multi_reduction <add>, %518, %cst_159 [1] : vector<8x8xf32> to vector<8xf32>
    %520 = vector.shape_cast %519 : vector<8xf32> to vector<8x1xf32>
    %521 = tpu.reciprocal %520 {approx = true} : vector<8x1xf32> -> vector<8x1xf32>
    %522 = vector.broadcast %521 : vector<8x1xf32> to vector<8x8xf32>
    %523 = arith.mulf %518, %522 : vector<8x8xf32>
    %524 = arith.truncf %523 : vector<8x8xf32> to vector<8x8xbf16>
    %525 = vector.extract_strided_slice %475 {offsets = [0, 16], sizes = [8, 8], strides = [1, 1]} : vector<8x32xbf16> to vector<8x8xbf16>
    %cst_160 = arith.constant dense<0.000000e+00> : vector<8x8xf32>
    %526 = tpu.matmul %524, %525, %cst_160 {dimension_numbers = #tpu.dot_dimension_numbers<[1], [0], [0], [1], [0, 0, 1, 1], [], []>} : vector<8x8xbf16>, vector<8x8xbf16>, vector<8x8xf32> -> vector<8x8xf32>
    %527 = vector.extract_strided_slice %473 {offsets = [0, 24], sizes = [8, 8], strides = [1, 1]} : vector<8x32xbf16> to vector<8x8xbf16>
    %528 = vector.extract_strided_slice %474 {offsets = [24, 0], sizes = [8, 8], strides = [1, 1]} : vector<32x8xbf16> to vector<8x8xbf16>
    %cst_161 = arith.constant dense<0.000000e+00> : vector<8x8xf32>
    %529 = tpu.matmul %527, %528, %cst_161 {dimension_numbers = #tpu.dot_dimension_numbers<[1], [0], [0], [1], [0, 0, 1, 1], [], []>} : vector<8x8xbf16>, vector<8x8xbf16>, vector<8x8xf32> -> vector<8x8xf32>
    %530 = arith.addf %529, %5 : vector<8x8xf32>
    %cst_162 = arith.constant dense<0xFF800000> : vector<8xf32>
    %531 = vector.multi_reduction <maximumf>, %530, %cst_162 [1] : vector<8x8xf32> to vector<8xf32>
    %532 = vector.shape_cast %531 : vector<8xf32> to vector<8x1xf32>
    %533 = vector.broadcast %532 : vector<8x1xf32> to vector<8x8xf32>
    %534 = arith.subf %530, %533 : vector<8x8xf32>
    %535 = math.exp %534 : vector<8x8xf32>
    %cst_163 = arith.constant dense<0.000000e+00> : vector<8xf32>
    %536 = vector.multi_reduction <add>, %535, %cst_163 [1] : vector<8x8xf32> to vector<8xf32>
    %537 = vector.shape_cast %536 : vector<8xf32> to vector<8x1xf32>
    %538 = tpu.reciprocal %537 {approx = true} : vector<8x1xf32> -> vector<8x1xf32>
    %539 = vector.broadcast %538 : vector<8x1xf32> to vector<8x8xf32>
    %540 = arith.mulf %535, %539 : vector<8x8xf32>
    %541 = arith.truncf %540 : vector<8x8xf32> to vector<8x8xbf16>
    %542 = vector.extract_strided_slice %475 {offsets = [0, 24], sizes = [8, 8], strides = [1, 1]} : vector<8x32xbf16> to vector<8x8xbf16>
    %cst_164 = arith.constant dense<0.000000e+00> : vector<8x8xf32>
    %543 = tpu.matmul %541, %542, %cst_164 {dimension_numbers = #tpu.dot_dimension_numbers<[1], [0], [0], [1], [0, 0, 1, 1], [], []>} : vector<8x8xbf16>, vector<8x8xbf16>, vector<8x8xf32> -> vector<8x8xf32>
    %544 = tpu.concatenate %492, %509, %526, %543 in 1 : vector<8x8xf32>, vector<8x8xf32>, vector<8x8xf32>, vector<8x8xf32> -> vector<8x32xf32>
    %545 = vector.extract_strided_slice %469 {offsets = [8, 0], sizes = [8, 32], strides = [1, 1]} : vector<16x32xbf16> to vector<8x32xbf16>
    %546 = vector.extract_strided_slice %471 {offsets = [0, 8], sizes = [32, 8], strides = [1, 1]} : vector<32x16xbf16> to vector<32x8xbf16>
    %547 = vector.extract_strided_slice %472 {offsets = [8, 0], sizes = [8, 32], strides = [1, 1]} : vector<16x32xbf16> to vector<8x32xbf16>
    %548 = vector.extract_strided_slice %545 {offsets = [0, 0], sizes = [8, 8], strides = [1, 1]} : vector<8x32xbf16> to vector<8x8xbf16>
    %549 = vector.extract_strided_slice %546 {offsets = [0, 0], sizes = [8, 8], strides = [1, 1]} : vector<32x8xbf16> to vector<8x8xbf16>
    %cst_165 = arith.constant dense<0.000000e+00> : vector<8x8xf32>
    %550 = tpu.matmul %548, %549, %cst_165 {dimension_numbers = #tpu.dot_dimension_numbers<[1], [0], [0], [1], [0, 0, 1, 1], [], []>} : vector<8x8xbf16>, vector<8x8xbf16>, vector<8x8xf32> -> vector<8x8xf32>
    %551 = arith.addf %550, %5 : vector<8x8xf32>
    %cst_166 = arith.constant dense<0xFF800000> : vector<8xf32>
    %552 = vector.multi_reduction <maximumf>, %551, %cst_166 [1] : vector<8x8xf32> to vector<8xf32>
    %553 = vector.shape_cast %552 : vector<8xf32> to vector<8x1xf32>
    %554 = vector.broadcast %553 : vector<8x1xf32> to vector<8x8xf32>
    %555 = arith.subf %551, %554 : vector<8x8xf32>
    %556 = math.exp %555 : vector<8x8xf32>
    %cst_167 = arith.constant dense<0.000000e+00> : vector<8xf32>
    %557 = vector.multi_reduction <add>, %556, %cst_167 [1] : vector<8x8xf32> to vector<8xf32>
    %558 = vector.shape_cast %557 : vector<8xf32> to vector<8x1xf32>
    %559 = tpu.reciprocal %558 {approx = true} : vector<8x1xf32> -> vector<8x1xf32>
    %560 = vector.broadcast %559 : vector<8x1xf32> to vector<8x8xf32>
    %561 = arith.mulf %556, %560 : vector<8x8xf32>
    %562 = arith.truncf %561 : vector<8x8xf32> to vector<8x8xbf16>
    %563 = vector.extract_strided_slice %547 {offsets = [0, 0], sizes = [8, 8], strides = [1, 1]} : vector<8x32xbf16> to vector<8x8xbf16>
    %cst_168 = arith.constant dense<0.000000e+00> : vector<8x8xf32>
    %564 = tpu.matmul %562, %563, %cst_168 {dimension_numbers = #tpu.dot_dimension_numbers<[1], [0], [0], [1], [0, 0, 1, 1], [], []>} : vector<8x8xbf16>, vector<8x8xbf16>, vector<8x8xf32> -> vector<8x8xf32>
    %565 = vector.extract_strided_slice %545 {offsets = [0, 8], sizes = [8, 8], strides = [1, 1]} : vector<8x32xbf16> to vector<8x8xbf16>
    %566 = vector.extract_strided_slice %546 {offsets = [8, 0], sizes = [8, 8], strides = [1, 1]} : vector<32x8xbf16> to vector<8x8xbf16>
    %cst_169 = arith.constant dense<0.000000e+00> : vector<8x8xf32>
    %567 = tpu.matmul %565, %566, %cst_169 {dimension_numbers = #tpu.dot_dimension_numbers<[1], [0], [0], [1], [0, 0, 1, 1], [], []>} : vector<8x8xbf16>, vector<8x8xbf16>, vector<8x8xf32> -> vector<8x8xf32>
    %568 = arith.addf %567, %5 : vector<8x8xf32>
    %cst_170 = arith.constant dense<0xFF800000> : vector<8xf32>
    %569 = vector.multi_reduction <maximumf>, %568, %cst_170 [1] : vector<8x8xf32> to vector<8xf32>
    %570 = vector.shape_cast %569 : vector<8xf32> to vector<8x1xf32>
    %571 = vector.broadcast %570 : vector<8x1xf32> to vector<8x8xf32>
    %572 = arith.subf %568, %571 : vector<8x8xf32>
    %573 = math.exp %572 : vector<8x8xf32>
    %cst_171 = arith.constant dense<0.000000e+00> : vector<8xf32>
    %574 = vector.multi_reduction <add>, %573, %cst_171 [1] : vector<8x8xf32> to vector<8xf32>
    %575 = vector.shape_cast %574 : vector<8xf32> to vector<8x1xf32>
    %576 = tpu.reciprocal %575 {approx = true} : vector<8x1xf32> -> vector<8x1xf32>
    %577 = vector.broadcast %576 : vector<8x1xf32> to vector<8x8xf32>
    %578 = arith.mulf %573, %577 : vector<8x8xf32>
    %579 = arith.truncf %578 : vector<8x8xf32> to vector<8x8xbf16>
    %580 = vector.extract_strided_slice %547 {offsets = [0, 8], sizes = [8, 8], strides = [1, 1]} : vector<8x32xbf16> to vector<8x8xbf16>
    %cst_172 = arith.constant dense<0.000000e+00> : vector<8x8xf32>
    %581 = tpu.matmul %579, %580, %cst_172 {dimension_numbers = #tpu.dot_dimension_numbers<[1], [0], [0], [1], [0, 0, 1, 1], [], []>} : vector<8x8xbf16>, vector<8x8xbf16>, vector<8x8xf32> -> vector<8x8xf32>
    %582 = vector.extract_strided_slice %545 {offsets = [0, 16], sizes = [8, 8], strides = [1, 1]} : vector<8x32xbf16> to vector<8x8xbf16>
    %583 = vector.extract_strided_slice %546 {offsets = [16, 0], sizes = [8, 8], strides = [1, 1]} : vector<32x8xbf16> to vector<8x8xbf16>
    %cst_173 = arith.constant dense<0.000000e+00> : vector<8x8xf32>
    %584 = tpu.matmul %582, %583, %cst_173 {dimension_numbers = #tpu.dot_dimension_numbers<[1], [0], [0], [1], [0, 0, 1, 1], [], []>} : vector<8x8xbf16>, vector<8x8xbf16>, vector<8x8xf32> -> vector<8x8xf32>
    %585 = arith.addf %584, %5 : vector<8x8xf32>
    %cst_174 = arith.constant dense<0xFF800000> : vector<8xf32>
    %586 = vector.multi_reduction <maximumf>, %585, %cst_174 [1] : vector<8x8xf32> to vector<8xf32>
    %587 = vector.shape_cast %586 : vector<8xf32> to vector<8x1xf32>
    %588 = vector.broadcast %587 : vector<8x1xf32> to vector<8x8xf32>
    %589 = arith.subf %585, %588 : vector<8x8xf32>
    %590 = math.exp %589 : vector<8x8xf32>
    %cst_175 = arith.constant dense<0.000000e+00> : vector<8xf32>
    %591 = vector.multi_reduction <add>, %590, %cst_175 [1] : vector<8x8xf32> to vector<8xf32>
    %592 = vector.shape_cast %591 : vector<8xf32> to vector<8x1xf32>
    %593 = tpu.reciprocal %592 {approx = true} : vector<8x1xf32> -> vector<8x1xf32>
    %594 = vector.broadcast %593 : vector<8x1xf32> to vector<8x8xf32>
    %595 = arith.mulf %590, %594 : vector<8x8xf32>
    %596 = arith.truncf %595 : vector<8x8xf32> to vector<8x8xbf16>
    %597 = vector.extract_strided_slice %547 {offsets = [0, 16], sizes = [8, 8], strides = [1, 1]} : vector<8x32xbf16> to vector<8x8xbf16>
    %cst_176 = arith.constant dense<0.000000e+00> : vector<8x8xf32>
    %598 = tpu.matmul %596, %597, %cst_176 {dimension_numbers = #tpu.dot_dimension_numbers<[1], [0], [0], [1], [0, 0, 1, 1], [], []>} : vector<8x8xbf16>, vector<8x8xbf16>, vector<8x8xf32> -> vector<8x8xf32>
    %599 = vector.extract_strided_slice %545 {offsets = [0, 24], sizes = [8, 8], strides = [1, 1]} : vector<8x32xbf16> to vector<8x8xbf16>
    %600 = vector.extract_strided_slice %546 {offsets = [24, 0], sizes = [8, 8], strides = [1, 1]} : vector<32x8xbf16> to vector<8x8xbf16>
    %cst_177 = arith.constant dense<0.000000e+00> : vector<8x8xf32>
    %601 = tpu.matmul %599, %600, %cst_177 {dimension_numbers = #tpu.dot_dimension_numbers<[1], [0], [0], [1], [0, 0, 1, 1], [], []>} : vector<8x8xbf16>, vector<8x8xbf16>, vector<8x8xf32> -> vector<8x8xf32>
    %602 = arith.addf %601, %5 : vector<8x8xf32>
    %cst_178 = arith.constant dense<0xFF800000> : vector<8xf32>
    %603 = vector.multi_reduction <maximumf>, %602, %cst_178 [1] : vector<8x8xf32> to vector<8xf32>
    %604 = vector.shape_cast %603 : vector<8xf32> to vector<8x1xf32>
    %605 = vector.broadcast %604 : vector<8x1xf32> to vector<8x8xf32>
    %606 = arith.subf %602, %605 : vector<8x8xf32>
    %607 = math.exp %606 : vector<8x8xf32>
    %cst_179 = arith.constant dense<0.000000e+00> : vector<8xf32>
    %608 = vector.multi_reduction <add>, %607, %cst_179 [1] : vector<8x8xf32> to vector<8xf32>
    %609 = vector.shape_cast %608 : vector<8xf32> to vector<8x1xf32>
    %610 = tpu.reciprocal %609 {approx = true} : vector<8x1xf32> -> vector<8x1xf32>
    %611 = vector.broadcast %610 : vector<8x1xf32> to vector<8x8xf32>
    %612 = arith.mulf %607, %611 : vector<8x8xf32>
    %613 = arith.truncf %612 : vector<8x8xf32> to vector<8x8xbf16>
    %614 = vector.extract_strided_slice %547 {offsets = [0, 24], sizes = [8, 8], strides = [1, 1]} : vector<8x32xbf16> to vector<8x8xbf16>
    %cst_180 = arith.constant dense<0.000000e+00> : vector<8x8xf32>
    %615 = tpu.matmul %613, %614, %cst_180 {dimension_numbers = #tpu.dot_dimension_numbers<[1], [0], [0], [1], [0, 0, 1, 1], [], []>} : vector<8x8xbf16>, vector<8x8xbf16>, vector<8x8xf32> -> vector<8x8xf32>
    %616 = tpu.concatenate %564, %581, %598, %615 in 1 : vector<8x8xf32>, vector<8x8xf32>, vector<8x8xf32>, vector<8x8xf32> -> vector<8x32xf32>
    %617 = tpu.concatenate %544, %616 in 0 : vector<8x32xf32>, vector<8x32xf32> -> vector<16x32xf32>
    %c1_181 = arith.constant 1 : index
    %c0_182 = arith.constant 0 : index
    %c0_183 = arith.constant 0 : index
    %618 = vector.load %arg4[%c1_181, %c0_182, %c0_183] : memref<2x32x32xbf16, #tpu.memory_space<vmem>>, vector<1x32x32xbf16>
    %619 = vector.shape_cast %618 : vector<1x32x32xbf16> to vector<32x32xbf16>
    %620 = arith.truncf %617 : vector<16x32xf32> to vector<16x32xbf16>
    %cst_184 = arith.constant dense<0.000000e+00> : vector<16x32xf32>
    %621 = tpu.matmul %620, %619, %cst_184 {dimension_numbers = #tpu.dot_dimension_numbers<[1], [0], [0], [1], [0, 0, 1, 1], [], []>} : vector<16x32xbf16>, vector<32x32xbf16>, vector<16x32xf32> -> vector<16x32xf32>
    %c8 = arith.constant 8 : index
    %c0_185 = arith.constant 0 : index
    %622 = vector.load %arg13[%c8, %c0_185] : memref<16x128xf32, #tpu.memory_space<vmem>>, vector<1x32xf32>
    %623 = vector.broadcast %622 : vector<1x32xf32> to vector<16x32xf32>
    %624 = arith.addf %621, %623 : vector<16x32xf32>
    %625 = arith.addf %456, %624 : vector<16x32xf32>
    %cst_186 = arith.constant dense<0.000000e+00> : vector<16xf32>
    %626 = vector.multi_reduction <add>, %625, %cst_186 [1] : vector<16x32xf32> to vector<16xf32>
    %627 = vector.shape_cast %626 : vector<16xf32> to vector<16x1xf32>
    %cst_187 = arith.constant 3.200000e+01 : f32
    %628 = vector.broadcast %cst_187 : f32 to vector<16x1xf32>
    %629 = arith.divf %627, %628 : vector<16x1xf32>
    %630 = vector.broadcast %629 : vector<16x1xf32> to vector<16x32xf32>
    %631 = arith.subf %625, %630 : vector<16x32xf32>
    %632 = arith.mulf %631, %631 : vector<16x32xf32>
    %cst_188 = arith.constant dense<0.000000e+00> : vector<16xf32>
    %633 = vector.multi_reduction <add>, %632, %cst_188 [1] : vector<16x32xf32> to vector<16xf32>
    %634 = vector.shape_cast %633 : vector<16xf32> to vector<16x1xf32>
    %cst_189 = arith.constant 3.200000e+01 : f32
    %635 = vector.broadcast %cst_189 : f32 to vector<16x1xf32>
    %636 = arith.divf %634, %635 : vector<16x1xf32>
    %637 = vector.broadcast %629 : vector<16x1xf32> to vector<16x32xf32>
    %638 = arith.subf %625, %637 : vector<16x32xf32>
    %cst_190 = arith.constant 9.99999974E-6 : f32
    %639 = vector.broadcast %cst_190 : f32 to vector<16x1xf32>
    %640 = arith.addf %636, %639 : vector<16x1xf32>
    %641 = math.rsqrt %640 : vector<16x1xf32>
    %642 = vector.broadcast %641 : vector<16x1xf32> to vector<16x32xf32>
    %643 = arith.mulf %638, %642 : vector<16x32xf32>
    %c4_191 = arith.constant 4 : index
    %c0_192 = arith.constant 0 : index
    %644 = vector.load %arg11[%c4_191, %c0_192] : memref<8x32xf32, #tpu.memory_space<vmem>>, vector<1x32xf32>
    %645 = vector.broadcast %644 : vector<1x32xf32> to vector<16x32xf32>
    %646 = arith.mulf %643, %645 : vector<16x32xf32>
    %c4_193 = arith.constant 4 : index
    %c0_194 = arith.constant 0 : index
    %647 = vector.load %arg12[%c4_193, %c0_194] : memref<8x32xf32, #tpu.memory_space<vmem>>, vector<1x32xf32>
    %648 = vector.broadcast %647 : vector<1x32xf32> to vector<16x32xf32>
    %649 = arith.addf %646, %648 : vector<16x32xf32>
    %c1_195 = arith.constant 1 : index
    %c0_196 = arith.constant 0 : index
    %c0_197 = arith.constant 0 : index
    %650 = vector.load %arg5[%c1_195, %c0_196, %c0_197] : memref<2x32x32xbf16, #tpu.memory_space<vmem>>, vector<1x32x32xbf16>
    %651 = vector.shape_cast %650 : vector<1x32x32xbf16> to vector<32x32xbf16>
    %652 = arith.truncf %649 : vector<16x32xf32> to vector<16x32xbf16>
    %cst_198 = arith.constant dense<0.000000e+00> : vector<16x32xf32>
    %653 = tpu.matmul %652, %651, %cst_198 {dimension_numbers = #tpu.dot_dimension_numbers<[1], [0], [0], [1], [0, 0, 1, 1], [], []>} : vector<16x32xbf16>, vector<32x32xbf16>, vector<16x32xf32> -> vector<16x32xf32>
    %c9 = arith.constant 9 : index
    %c0_199 = arith.constant 0 : index
    %654 = vector.load %arg13[%c9, %c0_199] : memref<16x128xf32, #tpu.memory_space<vmem>>, vector<1x32xf32>
    %655 = vector.broadcast %654 : vector<1x32xf32> to vector<16x32xf32>
    %656 = arith.addf %653, %655 : vector<16x32xf32>
    %cst_200 = arith.constant 0.353553385 : f32
    %657 = vector.broadcast %cst_200 : f32 to vector<16x32xf32>
    %658 = arith.mulf %656, %657 : vector<16x32xf32>
    %c1_201 = arith.constant 1 : index
    %c0_202 = arith.constant 0 : index
    %c0_203 = arith.constant 0 : index
    %659 = vector.load %arg6[%c1_201, %c0_202, %c0_203] : memref<2x48x64xbf16, #tpu.memory_space<vmem>>, vector<1x48x64xbf16>
    %660 = vector.shape_cast %659 : vector<1x48x64xbf16> to vector<48x64xbf16>
    %cst_204 = arith.constant dense<0.000000e+00> : vector<32x64xf32>
    %661 = tpu.matmul %8, %660, %cst_204 {dimension_numbers = #tpu.dot_dimension_numbers<[1], [0], [0], [1], [0, 0, 1, 1], [], []>} : vector<32x48xbf16>, vector<48x64xbf16>, vector<32x64xf32> -> vector<32x64xf32>
    %c10 = arith.constant 10 : index
    %c0_205 = arith.constant 0 : index
    %662 = vector.load %arg13[%c10, %c0_205] : memref<16x128xf32, #tpu.memory_space<vmem>>, vector<1x64xf32>
    %663 = vector.broadcast %662 : vector<1x64xf32> to vector<32x64xf32>
    %664 = arith.addf %661, %663 : vector<32x64xf32>
    %665 = vector.extract_strided_slice %664 {offsets = [0, 0], sizes = [32, 32], strides = [1, 1]} : vector<32x64xf32> to vector<32x32xf32>
    %666 = vector.extract_strided_slice %664 {offsets = [0, 32], sizes = [32, 32], strides = [1, 1]} : vector<32x64xf32> to vector<32x32xf32>
    %667 = arith.truncf %658 : vector<16x32xf32> to vector<16x32xbf16>
    %668 = tpu.transpose %665, [1, 0] : vector<32x32xf32> -> vector<32x32xf32>
    %669 = arith.truncf %668 : vector<32x32xf32> to vector<32x32xbf16>
    %670 = arith.truncf %666 : vector<32x32xf32> to vector<32x32xbf16>
    %671 = vector.extract_strided_slice %667 {offsets = [0, 0], sizes = [8, 32], strides = [1, 1]} : vector<16x32xbf16> to vector<8x32xbf16>
    %672 = vector.extract_strided_slice %669 {offsets = [0, 0], sizes = [32, 16], strides = [1, 1]} : vector<32x32xbf16> to vector<32x16xbf16>
    %673 = vector.extract_strided_slice %670 {offsets = [0, 0], sizes = [16, 32], strides = [1, 1]} : vector<32x32xbf16> to vector<16x32xbf16>
    %674 = vector.extract_strided_slice %671 {offsets = [0, 0], sizes = [8, 8], strides = [1, 1]} : vector<8x32xbf16> to vector<8x8xbf16>
    %675 = vector.extract_strided_slice %672 {offsets = [0, 0], sizes = [8, 16], strides = [1, 1]} : vector<32x16xbf16> to vector<8x16xbf16>
    %cst_206 = arith.constant dense<0.000000e+00> : vector<8x16xf32>
    %676 = tpu.matmul %674, %675, %cst_206 {dimension_numbers = #tpu.dot_dimension_numbers<[1], [0], [0], [1], [0, 0, 1, 1], [], []>} : vector<8x8xbf16>, vector<8x16xbf16>, vector<8x16xf32> -> vector<8x16xf32>
    %cst_207 = arith.constant dense<0xFF800000> : vector<8xf32>
    %677 = vector.multi_reduction <maximumf>, %676, %cst_207 [1] : vector<8x16xf32> to vector<8xf32>
    %678 = vector.shape_cast %677 : vector<8xf32> to vector<8x1xf32>
    %679 = vector.broadcast %678 : vector<8x1xf32> to vector<8x16xf32>
    %680 = arith.subf %676, %679 : vector<8x16xf32>
    %681 = math.exp %680 : vector<8x16xf32>
    %cst_208 = arith.constant dense<0.000000e+00> : vector<8xf32>
    %682 = vector.multi_reduction <add>, %681, %cst_208 [1] : vector<8x16xf32> to vector<8xf32>
    %683 = vector.shape_cast %682 : vector<8xf32> to vector<8x1xf32>
    %684 = tpu.reciprocal %683 {approx = true} : vector<8x1xf32> -> vector<8x1xf32>
    %685 = vector.broadcast %684 : vector<8x1xf32> to vector<8x16xf32>
    %686 = arith.mulf %681, %685 : vector<8x16xf32>
    %687 = arith.truncf %686 : vector<8x16xf32> to vector<8x16xbf16>
    %688 = vector.extract_strided_slice %673 {offsets = [0, 0], sizes = [16, 8], strides = [1, 1]} : vector<16x32xbf16> to vector<16x8xbf16>
    %cst_209 = arith.constant dense<0.000000e+00> : vector<8x8xf32>
    %689 = tpu.matmul %687, %688, %cst_209 {dimension_numbers = #tpu.dot_dimension_numbers<[1], [0], [0], [1], [0, 0, 1, 1], [], []>} : vector<8x16xbf16>, vector<16x8xbf16>, vector<8x8xf32> -> vector<8x8xf32>
    %690 = vector.extract_strided_slice %671 {offsets = [0, 8], sizes = [8, 8], strides = [1, 1]} : vector<8x32xbf16> to vector<8x8xbf16>
    %691 = vector.extract_strided_slice %672 {offsets = [8, 0], sizes = [8, 16], strides = [1, 1]} : vector<32x16xbf16> to vector<8x16xbf16>
    %cst_210 = arith.constant dense<0.000000e+00> : vector<8x16xf32>
    %692 = tpu.matmul %690, %691, %cst_210 {dimension_numbers = #tpu.dot_dimension_numbers<[1], [0], [0], [1], [0, 0, 1, 1], [], []>} : vector<8x8xbf16>, vector<8x16xbf16>, vector<8x16xf32> -> vector<8x16xf32>
    %cst_211 = arith.constant dense<0xFF800000> : vector<8xf32>
    %693 = vector.multi_reduction <maximumf>, %692, %cst_211 [1] : vector<8x16xf32> to vector<8xf32>
    %694 = vector.shape_cast %693 : vector<8xf32> to vector<8x1xf32>
    %695 = vector.broadcast %694 : vector<8x1xf32> to vector<8x16xf32>
    %696 = arith.subf %692, %695 : vector<8x16xf32>
    %697 = math.exp %696 : vector<8x16xf32>
    %cst_212 = arith.constant dense<0.000000e+00> : vector<8xf32>
    %698 = vector.multi_reduction <add>, %697, %cst_212 [1] : vector<8x16xf32> to vector<8xf32>
    %699 = vector.shape_cast %698 : vector<8xf32> to vector<8x1xf32>
    %700 = tpu.reciprocal %699 {approx = true} : vector<8x1xf32> -> vector<8x1xf32>
    %701 = vector.broadcast %700 : vector<8x1xf32> to vector<8x16xf32>
    %702 = arith.mulf %697, %701 : vector<8x16xf32>
    %703 = arith.truncf %702 : vector<8x16xf32> to vector<8x16xbf16>
    %704 = vector.extract_strided_slice %673 {offsets = [0, 8], sizes = [16, 8], strides = [1, 1]} : vector<16x32xbf16> to vector<16x8xbf16>
    %cst_213 = arith.constant dense<0.000000e+00> : vector<8x8xf32>
    %705 = tpu.matmul %703, %704, %cst_213 {dimension_numbers = #tpu.dot_dimension_numbers<[1], [0], [0], [1], [0, 0, 1, 1], [], []>} : vector<8x16xbf16>, vector<16x8xbf16>, vector<8x8xf32> -> vector<8x8xf32>
    %706 = vector.extract_strided_slice %671 {offsets = [0, 16], sizes = [8, 8], strides = [1, 1]} : vector<8x32xbf16> to vector<8x8xbf16>
    %707 = vector.extract_strided_slice %672 {offsets = [16, 0], sizes = [8, 16], strides = [1, 1]} : vector<32x16xbf16> to vector<8x16xbf16>
    %cst_214 = arith.constant dense<0.000000e+00> : vector<8x16xf32>
    %708 = tpu.matmul %706, %707, %cst_214 {dimension_numbers = #tpu.dot_dimension_numbers<[1], [0], [0], [1], [0, 0, 1, 1], [], []>} : vector<8x8xbf16>, vector<8x16xbf16>, vector<8x16xf32> -> vector<8x16xf32>
    %cst_215 = arith.constant dense<0xFF800000> : vector<8xf32>
    %709 = vector.multi_reduction <maximumf>, %708, %cst_215 [1] : vector<8x16xf32> to vector<8xf32>
    %710 = vector.shape_cast %709 : vector<8xf32> to vector<8x1xf32>
    %711 = vector.broadcast %710 : vector<8x1xf32> to vector<8x16xf32>
    %712 = arith.subf %708, %711 : vector<8x16xf32>
    %713 = math.exp %712 : vector<8x16xf32>
    %cst_216 = arith.constant dense<0.000000e+00> : vector<8xf32>
    %714 = vector.multi_reduction <add>, %713, %cst_216 [1] : vector<8x16xf32> to vector<8xf32>
    %715 = vector.shape_cast %714 : vector<8xf32> to vector<8x1xf32>
    %716 = tpu.reciprocal %715 {approx = true} : vector<8x1xf32> -> vector<8x1xf32>
    %717 = vector.broadcast %716 : vector<8x1xf32> to vector<8x16xf32>
    %718 = arith.mulf %713, %717 : vector<8x16xf32>
    %719 = arith.truncf %718 : vector<8x16xf32> to vector<8x16xbf16>
    %720 = vector.extract_strided_slice %673 {offsets = [0, 16], sizes = [16, 8], strides = [1, 1]} : vector<16x32xbf16> to vector<16x8xbf16>
    %cst_217 = arith.constant dense<0.000000e+00> : vector<8x8xf32>
    %721 = tpu.matmul %719, %720, %cst_217 {dimension_numbers = #tpu.dot_dimension_numbers<[1], [0], [0], [1], [0, 0, 1, 1], [], []>} : vector<8x16xbf16>, vector<16x8xbf16>, vector<8x8xf32> -> vector<8x8xf32>
    %722 = vector.extract_strided_slice %671 {offsets = [0, 24], sizes = [8, 8], strides = [1, 1]} : vector<8x32xbf16> to vector<8x8xbf16>
    %723 = vector.extract_strided_slice %672 {offsets = [24, 0], sizes = [8, 16], strides = [1, 1]} : vector<32x16xbf16> to vector<8x16xbf16>
    %cst_218 = arith.constant dense<0.000000e+00> : vector<8x16xf32>
    %724 = tpu.matmul %722, %723, %cst_218 {dimension_numbers = #tpu.dot_dimension_numbers<[1], [0], [0], [1], [0, 0, 1, 1], [], []>} : vector<8x8xbf16>, vector<8x16xbf16>, vector<8x16xf32> -> vector<8x16xf32>
    %cst_219 = arith.constant dense<0xFF800000> : vector<8xf32>
    %725 = vector.multi_reduction <maximumf>, %724, %cst_219 [1] : vector<8x16xf32> to vector<8xf32>
    %726 = vector.shape_cast %725 : vector<8xf32> to vector<8x1xf32>
    %727 = vector.broadcast %726 : vector<8x1xf32> to vector<8x16xf32>
    %728 = arith.subf %724, %727 : vector<8x16xf32>
    %729 = math.exp %728 : vector<8x16xf32>
    %cst_220 = arith.constant dense<0.000000e+00> : vector<8xf32>
    %730 = vector.multi_reduction <add>, %729, %cst_220 [1] : vector<8x16xf32> to vector<8xf32>
    %731 = vector.shape_cast %730 : vector<8xf32> to vector<8x1xf32>
    %732 = tpu.reciprocal %731 {approx = true} : vector<8x1xf32> -> vector<8x1xf32>
    %733 = vector.broadcast %732 : vector<8x1xf32> to vector<8x16xf32>
    %734 = arith.mulf %729, %733 : vector<8x16xf32>
    %735 = arith.truncf %734 : vector<8x16xf32> to vector<8x16xbf16>
    %736 = vector.extract_strided_slice %673 {offsets = [0, 24], sizes = [16, 8], strides = [1, 1]} : vector<16x32xbf16> to vector<16x8xbf16>
    %cst_221 = arith.constant dense<0.000000e+00> : vector<8x8xf32>
    %737 = tpu.matmul %735, %736, %cst_221 {dimension_numbers = #tpu.dot_dimension_numbers<[1], [0], [0], [1], [0, 0, 1, 1], [], []>} : vector<8x16xbf16>, vector<16x8xbf16>, vector<8x8xf32> -> vector<8x8xf32>
    %738 = tpu.concatenate %689, %705, %721, %737 in 1 : vector<8x8xf32>, vector<8x8xf32>, vector<8x8xf32>, vector<8x8xf32> -> vector<8x32xf32>
    %739 = vector.extract_strided_slice %667 {offsets = [8, 0], sizes = [8, 32], strides = [1, 1]} : vector<16x32xbf16> to vector<8x32xbf16>
    %740 = vector.extract_strided_slice %669 {offsets = [0, 16], sizes = [32, 16], strides = [1, 1]} : vector<32x32xbf16> to vector<32x16xbf16>
    %741 = vector.extract_strided_slice %670 {offsets = [16, 0], sizes = [16, 32], strides = [1, 1]} : vector<32x32xbf16> to vector<16x32xbf16>
    %742 = vector.extract_strided_slice %739 {offsets = [0, 0], sizes = [8, 8], strides = [1, 1]} : vector<8x32xbf16> to vector<8x8xbf16>
    %743 = vector.extract_strided_slice %740 {offsets = [0, 0], sizes = [8, 16], strides = [1, 1]} : vector<32x16xbf16> to vector<8x16xbf16>
    %cst_222 = arith.constant dense<0.000000e+00> : vector<8x16xf32>
    %744 = tpu.matmul %742, %743, %cst_222 {dimension_numbers = #tpu.dot_dimension_numbers<[1], [0], [0], [1], [0, 0, 1, 1], [], []>} : vector<8x8xbf16>, vector<8x16xbf16>, vector<8x16xf32> -> vector<8x16xf32>
    %cst_223 = arith.constant dense<0xFF800000> : vector<8xf32>
    %745 = vector.multi_reduction <maximumf>, %744, %cst_223 [1] : vector<8x16xf32> to vector<8xf32>
    %746 = vector.shape_cast %745 : vector<8xf32> to vector<8x1xf32>
    %747 = vector.broadcast %746 : vector<8x1xf32> to vector<8x16xf32>
    %748 = arith.subf %744, %747 : vector<8x16xf32>
    %749 = math.exp %748 : vector<8x16xf32>
    %cst_224 = arith.constant dense<0.000000e+00> : vector<8xf32>
    %750 = vector.multi_reduction <add>, %749, %cst_224 [1] : vector<8x16xf32> to vector<8xf32>
    %751 = vector.shape_cast %750 : vector<8xf32> to vector<8x1xf32>
    %752 = tpu.reciprocal %751 {approx = true} : vector<8x1xf32> -> vector<8x1xf32>
    %753 = vector.broadcast %752 : vector<8x1xf32> to vector<8x16xf32>
    %754 = arith.mulf %749, %753 : vector<8x16xf32>
    %755 = arith.truncf %754 : vector<8x16xf32> to vector<8x16xbf16>
    %756 = vector.extract_strided_slice %741 {offsets = [0, 0], sizes = [16, 8], strides = [1, 1]} : vector<16x32xbf16> to vector<16x8xbf16>
    %cst_225 = arith.constant dense<0.000000e+00> : vector<8x8xf32>
    %757 = tpu.matmul %755, %756, %cst_225 {dimension_numbers = #tpu.dot_dimension_numbers<[1], [0], [0], [1], [0, 0, 1, 1], [], []>} : vector<8x16xbf16>, vector<16x8xbf16>, vector<8x8xf32> -> vector<8x8xf32>
    %758 = vector.extract_strided_slice %739 {offsets = [0, 8], sizes = [8, 8], strides = [1, 1]} : vector<8x32xbf16> to vector<8x8xbf16>
    %759 = vector.extract_strided_slice %740 {offsets = [8, 0], sizes = [8, 16], strides = [1, 1]} : vector<32x16xbf16> to vector<8x16xbf16>
    %cst_226 = arith.constant dense<0.000000e+00> : vector<8x16xf32>
    %760 = tpu.matmul %758, %759, %cst_226 {dimension_numbers = #tpu.dot_dimension_numbers<[1], [0], [0], [1], [0, 0, 1, 1], [], []>} : vector<8x8xbf16>, vector<8x16xbf16>, vector<8x16xf32> -> vector<8x16xf32>
    %cst_227 = arith.constant dense<0xFF800000> : vector<8xf32>
    %761 = vector.multi_reduction <maximumf>, %760, %cst_227 [1] : vector<8x16xf32> to vector<8xf32>
    %762 = vector.shape_cast %761 : vector<8xf32> to vector<8x1xf32>
    %763 = vector.broadcast %762 : vector<8x1xf32> to vector<8x16xf32>
    %764 = arith.subf %760, %763 : vector<8x16xf32>
    %765 = math.exp %764 : vector<8x16xf32>
    %cst_228 = arith.constant dense<0.000000e+00> : vector<8xf32>
    %766 = vector.multi_reduction <add>, %765, %cst_228 [1] : vector<8x16xf32> to vector<8xf32>
    %767 = vector.shape_cast %766 : vector<8xf32> to vector<8x1xf32>
    %768 = tpu.reciprocal %767 {approx = true} : vector<8x1xf32> -> vector<8x1xf32>
    %769 = vector.broadcast %768 : vector<8x1xf32> to vector<8x16xf32>
    %770 = arith.mulf %765, %769 : vector<8x16xf32>
    %771 = arith.truncf %770 : vector<8x16xf32> to vector<8x16xbf16>
    %772 = vector.extract_strided_slice %741 {offsets = [0, 8], sizes = [16, 8], strides = [1, 1]} : vector<16x32xbf16> to vector<16x8xbf16>
    %cst_229 = arith.constant dense<0.000000e+00> : vector<8x8xf32>
    %773 = tpu.matmul %771, %772, %cst_229 {dimension_numbers = #tpu.dot_dimension_numbers<[1], [0], [0], [1], [0, 0, 1, 1], [], []>} : vector<8x16xbf16>, vector<16x8xbf16>, vector<8x8xf32> -> vector<8x8xf32>
    %774 = vector.extract_strided_slice %739 {offsets = [0, 16], sizes = [8, 8], strides = [1, 1]} : vector<8x32xbf16> to vector<8x8xbf16>
    %775 = vector.extract_strided_slice %740 {offsets = [16, 0], sizes = [8, 16], strides = [1, 1]} : vector<32x16xbf16> to vector<8x16xbf16>
    %cst_230 = arith.constant dense<0.000000e+00> : vector<8x16xf32>
    %776 = tpu.matmul %774, %775, %cst_230 {dimension_numbers = #tpu.dot_dimension_numbers<[1], [0], [0], [1], [0, 0, 1, 1], [], []>} : vector<8x8xbf16>, vector<8x16xbf16>, vector<8x16xf32> -> vector<8x16xf32>
    %cst_231 = arith.constant dense<0xFF800000> : vector<8xf32>
    %777 = vector.multi_reduction <maximumf>, %776, %cst_231 [1] : vector<8x16xf32> to vector<8xf32>
    %778 = vector.shape_cast %777 : vector<8xf32> to vector<8x1xf32>
    %779 = vector.broadcast %778 : vector<8x1xf32> to vector<8x16xf32>
    %780 = arith.subf %776, %779 : vector<8x16xf32>
    %781 = math.exp %780 : vector<8x16xf32>
    %cst_232 = arith.constant dense<0.000000e+00> : vector<8xf32>
    %782 = vector.multi_reduction <add>, %781, %cst_232 [1] : vector<8x16xf32> to vector<8xf32>
    %783 = vector.shape_cast %782 : vector<8xf32> to vector<8x1xf32>
    %784 = tpu.reciprocal %783 {approx = true} : vector<8x1xf32> -> vector<8x1xf32>
    %785 = vector.broadcast %784 : vector<8x1xf32> to vector<8x16xf32>
    %786 = arith.mulf %781, %785 : vector<8x16xf32>
    %787 = arith.truncf %786 : vector<8x16xf32> to vector<8x16xbf16>
    %788 = vector.extract_strided_slice %741 {offsets = [0, 16], sizes = [16, 8], strides = [1, 1]} : vector<16x32xbf16> to vector<16x8xbf16>
    %cst_233 = arith.constant dense<0.000000e+00> : vector<8x8xf32>
    %789 = tpu.matmul %787, %788, %cst_233 {dimension_numbers = #tpu.dot_dimension_numbers<[1], [0], [0], [1], [0, 0, 1, 1], [], []>} : vector<8x16xbf16>, vector<16x8xbf16>, vector<8x8xf32> -> vector<8x8xf32>
    %790 = vector.extract_strided_slice %739 {offsets = [0, 24], sizes = [8, 8], strides = [1, 1]} : vector<8x32xbf16> to vector<8x8xbf16>
    %791 = vector.extract_strided_slice %740 {offsets = [24, 0], sizes = [8, 16], strides = [1, 1]} : vector<32x16xbf16> to vector<8x16xbf16>
    %cst_234 = arith.constant dense<0.000000e+00> : vector<8x16xf32>
    %792 = tpu.matmul %790, %791, %cst_234 {dimension_numbers = #tpu.dot_dimension_numbers<[1], [0], [0], [1], [0, 0, 1, 1], [], []>} : vector<8x8xbf16>, vector<8x16xbf16>, vector<8x16xf32> -> vector<8x16xf32>
    %cst_235 = arith.constant dense<0xFF800000> : vector<8xf32>
    %793 = vector.multi_reduction <maximumf>, %792, %cst_235 [1] : vector<8x16xf32> to vector<8xf32>
    %794 = vector.shape_cast %793 : vector<8xf32> to vector<8x1xf32>
    %795 = vector.broadcast %794 : vector<8x1xf32> to vector<8x16xf32>
    %796 = arith.subf %792, %795 : vector<8x16xf32>
    %797 = math.exp %796 : vector<8x16xf32>
    %cst_236 = arith.constant dense<0.000000e+00> : vector<8xf32>
    %798 = vector.multi_reduction <add>, %797, %cst_236 [1] : vector<8x16xf32> to vector<8xf32>
    %799 = vector.shape_cast %798 : vector<8xf32> to vector<8x1xf32>
    %800 = tpu.reciprocal %799 {approx = true} : vector<8x1xf32> -> vector<8x1xf32>
    %801 = vector.broadcast %800 : vector<8x1xf32> to vector<8x16xf32>
    %802 = arith.mulf %797, %801 : vector<8x16xf32>
    %803 = arith.truncf %802 : vector<8x16xf32> to vector<8x16xbf16>
    %804 = vector.extract_strided_slice %741 {offsets = [0, 24], sizes = [16, 8], strides = [1, 1]} : vector<16x32xbf16> to vector<16x8xbf16>
    %cst_237 = arith.constant dense<0.000000e+00> : vector<8x8xf32>
    %805 = tpu.matmul %803, %804, %cst_237 {dimension_numbers = #tpu.dot_dimension_numbers<[1], [0], [0], [1], [0, 0, 1, 1], [], []>} : vector<8x16xbf16>, vector<16x8xbf16>, vector<8x8xf32> -> vector<8x8xf32>
    %806 = tpu.concatenate %757, %773, %789, %805 in 1 : vector<8x8xf32>, vector<8x8xf32>, vector<8x8xf32>, vector<8x8xf32> -> vector<8x32xf32>
    %807 = tpu.concatenate %738, %806 in 0 : vector<8x32xf32>, vector<8x32xf32> -> vector<16x32xf32>
    %c1_238 = arith.constant 1 : index
    %c0_239 = arith.constant 0 : index
    %c0_240 = arith.constant 0 : index
    %808 = vector.load %arg7[%c1_238, %c0_239, %c0_240] : memref<2x32x32xbf16, #tpu.memory_space<vmem>>, vector<1x32x32xbf16>
    %809 = vector.shape_cast %808 : vector<1x32x32xbf16> to vector<32x32xbf16>
    %810 = arith.truncf %807 : vector<16x32xf32> to vector<16x32xbf16>
    %cst_241 = arith.constant dense<0.000000e+00> : vector<16x32xf32>
    %811 = tpu.matmul %810, %809, %cst_241 {dimension_numbers = #tpu.dot_dimension_numbers<[1], [0], [0], [1], [0, 0, 1, 1], [], []>} : vector<16x32xbf16>, vector<32x32xbf16>, vector<16x32xf32> -> vector<16x32xf32>
    %c11 = arith.constant 11 : index
    %c0_242 = arith.constant 0 : index
    %812 = vector.load %arg13[%c11, %c0_242] : memref<16x128xf32, #tpu.memory_space<vmem>>, vector<1x32xf32>
    %813 = vector.broadcast %812 : vector<1x32xf32> to vector<16x32xf32>
    %814 = arith.addf %811, %813 : vector<16x32xf32>
    %815 = arith.addf %649, %814 : vector<16x32xf32>
    %cst_243 = arith.constant dense<0.000000e+00> : vector<16xf32>
    %816 = vector.multi_reduction <add>, %815, %cst_243 [1] : vector<16x32xf32> to vector<16xf32>
    %817 = vector.shape_cast %816 : vector<16xf32> to vector<16x1xf32>
    %cst_244 = arith.constant 3.200000e+01 : f32
    %818 = vector.broadcast %cst_244 : f32 to vector<16x1xf32>
    %819 = arith.divf %817, %818 : vector<16x1xf32>
    %820 = vector.broadcast %819 : vector<16x1xf32> to vector<16x32xf32>
    %821 = arith.subf %815, %820 : vector<16x32xf32>
    %822 = arith.mulf %821, %821 : vector<16x32xf32>
    %cst_245 = arith.constant dense<0.000000e+00> : vector<16xf32>
    %823 = vector.multi_reduction <add>, %822, %cst_245 [1] : vector<16x32xf32> to vector<16xf32>
    %824 = vector.shape_cast %823 : vector<16xf32> to vector<16x1xf32>
    %cst_246 = arith.constant 3.200000e+01 : f32
    %825 = vector.broadcast %cst_246 : f32 to vector<16x1xf32>
    %826 = arith.divf %824, %825 : vector<16x1xf32>
    %827 = vector.broadcast %819 : vector<16x1xf32> to vector<16x32xf32>
    %828 = arith.subf %815, %827 : vector<16x32xf32>
    %cst_247 = arith.constant 9.99999974E-6 : f32
    %829 = vector.broadcast %cst_247 : f32 to vector<16x1xf32>
    %830 = arith.addf %826, %829 : vector<16x1xf32>
    %831 = math.rsqrt %830 : vector<16x1xf32>
    %832 = vector.broadcast %831 : vector<16x1xf32> to vector<16x32xf32>
    %833 = arith.mulf %828, %832 : vector<16x32xf32>
    %c5_248 = arith.constant 5 : index
    %c0_249 = arith.constant 0 : index
    %834 = vector.load %arg11[%c5_248, %c0_249] : memref<8x32xf32, #tpu.memory_space<vmem>>, vector<1x32xf32>
    %835 = vector.broadcast %834 : vector<1x32xf32> to vector<16x32xf32>
    %836 = arith.mulf %833, %835 : vector<16x32xf32>
    %c5_250 = arith.constant 5 : index
    %c0_251 = arith.constant 0 : index
    %837 = vector.load %arg12[%c5_250, %c0_251] : memref<8x32xf32, #tpu.memory_space<vmem>>, vector<1x32xf32>
    %838 = vector.broadcast %837 : vector<1x32xf32> to vector<16x32xf32>
    %839 = arith.addf %836, %838 : vector<16x32xf32>
    %c1_252 = arith.constant 1 : index
    %c0_253 = arith.constant 0 : index
    %c0_254 = arith.constant 0 : index
    %840 = vector.load %arg8[%c1_252, %c0_253, %c0_254] : memref<2x32x64xbf16, #tpu.memory_space<vmem>>, vector<1x32x64xbf16>
    %841 = vector.shape_cast %840 : vector<1x32x64xbf16> to vector<32x64xbf16>
    %842 = arith.truncf %839 : vector<16x32xf32> to vector<16x32xbf16>
    %cst_255 = arith.constant dense<0.000000e+00> : vector<16x64xf32>
    %843 = tpu.matmul %842, %841, %cst_255 {dimension_numbers = #tpu.dot_dimension_numbers<[1], [0], [0], [1], [0, 0, 1, 1], [], []>} : vector<16x32xbf16>, vector<32x64xbf16>, vector<16x64xf32> -> vector<16x64xf32>
    %c12 = arith.constant 12 : index
    %c0_256 = arith.constant 0 : index
    %844 = vector.load %arg13[%c12, %c0_256] : memref<16x128xf32, #tpu.memory_space<vmem>>, vector<1x64xf32>
    %845 = vector.broadcast %844 : vector<1x64xf32> to vector<16x64xf32>
    %846 = arith.addf %843, %845 : vector<16x64xf32>
    %cst_257 = arith.constant 0.000000e+00 : f32
    %847 = vector.broadcast %cst_257 : f32 to vector<16x64xf32>
    %848 = arith.maximumf %846, %847 : vector<16x64xf32>
    %c1_258 = arith.constant 1 : index
    %c0_259 = arith.constant 0 : index
    %c0_260 = arith.constant 0 : index
    %849 = vector.load %arg9[%c1_258, %c0_259, %c0_260] : memref<2x64x32xbf16, #tpu.memory_space<vmem>>, vector<1x64x32xbf16>
    %850 = vector.shape_cast %849 : vector<1x64x32xbf16> to vector<64x32xbf16>
    %851 = arith.truncf %848 : vector<16x64xf32> to vector<16x64xbf16>
    %cst_261 = arith.constant dense<0.000000e+00> : vector<16x32xf32>
    %852 = tpu.matmul %851, %850, %cst_261 {dimension_numbers = #tpu.dot_dimension_numbers<[1], [0], [0], [1], [0, 0, 1, 1], [], []>} : vector<16x64xbf16>, vector<64x32xbf16>, vector<16x32xf32> -> vector<16x32xf32>
    %c13 = arith.constant 13 : index
    %c0_262 = arith.constant 0 : index
    %853 = vector.load %arg13[%c13, %c0_262] : memref<16x128xf32, #tpu.memory_space<vmem>>, vector<1x32xf32>
    %854 = vector.broadcast %853 : vector<1x32xf32> to vector<16x32xf32>
    %855 = arith.addf %852, %854 : vector<16x32xf32>
    %856 = arith.addf %839, %855 : vector<16x32xf32>
    %cst_263 = arith.constant dense<0.000000e+00> : vector<16xf32>
    %857 = vector.multi_reduction <add>, %856, %cst_263 [1] : vector<16x32xf32> to vector<16xf32>
    %858 = vector.shape_cast %857 : vector<16xf32> to vector<16x1xf32>
    %cst_264 = arith.constant 3.200000e+01 : f32
    %859 = vector.broadcast %cst_264 : f32 to vector<16x1xf32>
    %860 = arith.divf %858, %859 : vector<16x1xf32>
    %861 = vector.broadcast %860 : vector<16x1xf32> to vector<16x32xf32>
    %862 = arith.subf %856, %861 : vector<16x32xf32>
    %863 = arith.mulf %862, %862 : vector<16x32xf32>
    %cst_265 = arith.constant dense<0.000000e+00> : vector<16xf32>
    %864 = vector.multi_reduction <add>, %863, %cst_265 [1] : vector<16x32xf32> to vector<16xf32>
    %865 = vector.shape_cast %864 : vector<16xf32> to vector<16x1xf32>
    %cst_266 = arith.constant 3.200000e+01 : f32
    %866 = vector.broadcast %cst_266 : f32 to vector<16x1xf32>
    %867 = arith.divf %865, %866 : vector<16x1xf32>
    %868 = vector.broadcast %860 : vector<16x1xf32> to vector<16x32xf32>
    %869 = arith.subf %856, %868 : vector<16x32xf32>
    %cst_267 = arith.constant 9.99999974E-6 : f32
    %870 = vector.broadcast %cst_267 : f32 to vector<16x1xf32>
    %871 = arith.addf %867, %870 : vector<16x1xf32>
    %872 = math.rsqrt %871 : vector<16x1xf32>
    %873 = vector.broadcast %872 : vector<16x1xf32> to vector<16x32xf32>
    %874 = arith.mulf %869, %873 : vector<16x32xf32>
    %c6_268 = arith.constant 6 : index
    %c0_269 = arith.constant 0 : index
    %875 = vector.load %arg11[%c6_268, %c0_269] : memref<8x32xf32, #tpu.memory_space<vmem>>, vector<1x32xf32>
    %876 = vector.broadcast %875 : vector<1x32xf32> to vector<16x32xf32>
    %877 = arith.mulf %874, %876 : vector<16x32xf32>
    %c6_270 = arith.constant 6 : index
    %c0_271 = arith.constant 0 : index
    %878 = vector.load %arg12[%c6_270, %c0_271] : memref<8x32xf32, #tpu.memory_space<vmem>>, vector<1x32xf32>
    %879 = vector.broadcast %878 : vector<1x32xf32> to vector<16x32xf32>
    %880 = arith.addf %877, %879 : vector<16x32xf32>
    %c0_272 = arith.constant 0 : index
    %c0_273 = arith.constant 0 : index
    %881 = vector.load %arg10[%c0_272, %c0_273] : memref<32x128xbf16, #tpu.memory_space<vmem>>, vector<32x128xbf16>
    %882 = arith.truncf %880 : vector<16x32xf32> to vector<16x32xbf16>
    %cst_274 = arith.constant dense<0.000000e+00> : vector<16x128xf32>
    %883 = tpu.matmul %882, %881, %cst_274 {dimension_numbers = #tpu.dot_dimension_numbers<[1], [0], [0], [1], [0, 0, 1, 1], [], []>} : vector<16x32xbf16>, vector<32x128xbf16>, vector<16x128xf32> -> vector<16x128xf32>
    %c14 = arith.constant 14 : index
    %c0_275 = arith.constant 0 : index
    %884 = vector.load %arg13[%c14, %c0_275] : memref<16x128xf32, #tpu.memory_space<vmem>>, vector<1x128xf32>
    %885 = vector.broadcast %884 : vector<1x128xf32> to vector<16x128xf32>
    %886 = arith.addf %883, %885 : vector<16x128xf32>
    %c0_276 = arith.constant 0 : index
    %c0_277 = arith.constant 0 : index
    %887 = vector.load %arg14[%c0_276, %c0_277] : memref<16x128xf32, #tpu.memory_space<vmem>>, vector<16x128xf32>
    tpu.vector_store %arg14[%c0_276, %c0_277], %886 {strides = array<i32>} : memref<16x128xf32, #tpu.memory_space<vmem>>, vector<16x128xf32>,
    return
  }
  func.func @transform_0(%arg0: i32) -> (i32, i32) {
    %c0_i32 = arith.constant 0 : i32
    %c0_i32_0 = arith.constant 0 : i32
    %c0_i32_1 = arith.constant 0 : i32
    return %c0_i32, %c0_i32_0 : i32, i32
  }
  func.func @transform_1(%arg0: i32) -> (i32, i32) {
    %c0_i32 = arith.constant 0 : i32
    %c0_i32_0 = arith.constant 0 : i32
    %c0_i32_1 = arith.constant 0 : i32
    return %c0_i32, %c0_i32_0 : i32, i32
  }
  func.func @transform_2(%arg0: i32) -> (i32, i32, i32) {
    %c0_i32 = arith.constant 0 : i32
    %c0_i32_0 = arith.constant 0 : i32
    %c0_i32_1 = arith.constant 0 : i32
    %c0_i32_2 = arith.constant 0 : i32
    return %c0_i32, %c0_i32_0, %c0_i32_1 : i32, i32, i32
  }
  func.func @transform_3(%arg0: i32) -> (i32, i32, i32) {
    %c0_i32 = arith.constant 0 : i32
    %c0_i32_0 = arith.constant 0 : i32
    %c0_i32_1 = arith.constant 0 : i32
    %c0_i32_2 = arith.constant 0 : i32
    return %c0_i32, %c0_i32_0, %c0_i32_1 : i32, i32, i32
  }
  func.func @transform_4(%arg0: i32) -> (i32, i32, i32) {
    %c0_i32 = arith.constant 0 : i32
    %c0_i32_0 = arith.constant 0 : i32
    %c0_i32_1 = arith.constant 0 : i32
    %c0_i32_2 = arith.constant 0 : i32
    return %c0_i32, %c0_i32_0, %c0_i32_1 : i32, i32, i32
  }
  func.func @transform_5(%arg0: i32) -> (i32, i32, i32) {
    %c0_i32 = arith.constant 0 : i32
    %c0_i32_0 = arith.constant 0 : i32
    %c0_i32_1 = arith.constant 0 : i32
    %c0_i32_2 = arith.constant 0 : i32
    return %c0_i32, %c0_i32_0, %c0_i32_1 : i32, i32, i32
  }
  func.func @transform_6(%arg0: i32) -> (i32, i32, i32) {
    %c0_i32 = arith.constant 0 : i32
    %c0_i32_0 = arith.constant 0 : i32
    %c0_i32_1 = arith.constant 0 : i32
    %c0_i32_2 = arith.constant 0 : i32
    return %c0_i32, %c0_i32_0, %c0_i32_1 : i32, i32, i32
  }
  func.func @transform_7(%arg0: i32) -> (i32, i32, i32) {
    %c0_i32 = arith.constant 0 : i32
    %c0_i32_0 = arith.constant 0 : i32
    %c0_i32_1 = arith.constant 0 : i32
    %c0_i32_2 = arith.constant 0 : i32
    return %c0_i32, %c0_i32_0, %c0_i32_1 : i32, i32, i32
  }
  func.func @transform_8(%arg0: i32) -> (i32, i32, i32) {
    %c0_i32 = arith.constant 0 : i32
    %c0_i32_0 = arith.constant 0 : i32
    %c0_i32_1 = arith.constant 0 : i32
    %c0_i32_2 = arith.constant 0 : i32
    return %c0_i32, %c0_i32_0, %c0_i32_1 : i32, i32, i32
  }
  func.func @transform_9(%arg0: i32) -> (i32, i32) {
    %c0_i32 = arith.constant 0 : i32
    %c0_i32_0 = arith.constant 0 : i32
    %c0_i32_1 = arith.constant 0 : i32
    return %c0_i32, %c0_i32_0 : i32, i32
  }
  func.func @transform_10(%arg0: i32) -> (i32, i32) {
    %c0_i32 = arith.constant 0 : i32
    %c0_i32_0 = arith.constant 0 : i32
    %c0_i32_1 = arith.constant 0 : i32
    return %c0_i32, %c0_i32_0 : i32, i32
  }
  func.func @transform_11(%arg0: i32) -> (i32, i32) {
    %c0_i32 = arith.constant 0 : i32
    %c0_i32_0 = arith.constant 0 : i32
    %c0_i32_1 = arith.constant 0 : i32
    return %c0_i32, %c0_i32_0 : i32, i32
  }
  func.func @transform_12(%arg0: i32) -> (i32, i32) {
    %c0_i32 = arith.constant 0 : i32
    %c0_i32_0 = arith.constant 0 : i32
    %c0_i32_1 = arith.constant 0 : i32
    return %c0_i32, %c0_i32_0 : i32, i32
  }
  func.func @transform_13(%arg0: i32) -> (i32, i32) {
    %c0_i32 = arith.constant 0 : i32
    %c0_i32_0 = arith.constant 0 : i32
    %c0_i32_1 = arith.constant 0 : i32
    return %c0_i32, %c0_i32_0 : i32, i32
  }
}

</mosaic_0001>

<bundles_post_ra>
// kernel: trocr_decoder_forward.1
= control target key start
LH: loop header
LB: loop body
LE: loop exit
PB: predicated region body
PF: predicated region fallthrough
CT: control target
= control target key end

     0   :  { %vm60_vm0 = vcmask 261120   ;;  %s7526_s0 = inlined_call_operand.vmem [shape: bf16[16,32], index: 0, kind: input, shape index: {}]   ;;  %s7527_s1 = inlined_call_operand.vmem [shape: bf16[32,48], index: 1, kind: input, shape index: {}]   ;;  %s7528_s2 = inlined_call_operand.vmem [shape: bf16[2,32,96], index: 2, kind: input, shape index: {}]   ;;  %s7529_s3 = inlined_call_operand.vmem [shape: bf16[2,32,32], index: 3, kind: input, shape index: {}]   ;;  %s7530_s4 = inlined_call_operand.vmem [shape: bf16[2,32,32], index: 4, kind: input, shape index: {}]   ;;  %s7531_s5 = inlined_call_operand.vmem [shape: bf16[2,48,64], index: 5, kind: input, shape index: {}]   ;;  %s7532_s6 = inlined_call_operand.vmem [shape: bf16[2,32,32], index: 6, kind: input, shape index: {}]   ;;  %s7533_s7 = inlined_call_operand.vmem [shape: bf16[2,32,64], index: 7, kind: input, shape index: {}]   ;;  %s7534_s8 = inlined_call_operand.vmem [shape: bf16[2,64,32], index: 8, kind: input, shape index: {}]   ;;  %s7535_s9 = inlined_call_operand.vmem [shape: bf16[32,128], index: 9, kind: input, shape index: {}]   ;;  %s7536_s10 = inlined_call_operand.vmem [shape: f32[8,32], index: 10, kind: input, shape index: {}]   ;;  %s7537_s11 = inlined_call_operand.vmem [shape: f32[8,32], index: 11, kind: input, shape index: {}]   ;;  %s7538_s12 = inlined_call_operand.vmem [shape: f32[16,128], index: 12, kind: input, shape index: {}]   ;;  %s7539_s13 = inlined_call_operand.hbm [shape: f32[16,128], index: 13, kind: output, shape index: {}]  }
   0x1   :  { %v5396_v0 = vld [vmem:[%s7526_s0] sm:$0xff]  }
   0x2   :  { %v5397_v1 = vunpack.c.l.bf16 %v5396_v0  ;;  %v5398_v2 = vunpack.c.h.bf16 %v5396_v0 }
   0x4   :  { %v61_v3 = vsel %vm60_vm0, %v5397_v1, 0.0  ;;  %v64_v4 = vsel %vm60_vm0, %v5398_v2, 0.0 }
   0x5   :  { %62 = vadd.xlane.f32.xlu0 %v61_v3 }
   0x9   :  { %65 = vadd.xlane.f32.xlu0 %v64_v4 }
   0xa   :  { %18 = vsyncpa [#allocation3], 0  ;;  %v6175_v15 = vld [vmem:[%s7528_s2] sm:$0xff]   ;;  %v6395_v16 = vmov 0.0   ;;  %vm6396_vm1 = vmmov 0   ;;  %v6176_v17 = vld [vmem:[%s7528_s2 + $0x8] sm:$0xff]  }
   0xb   :  { %5580 = vmatprep.subr.bf16.mxu0 %v6395_v16  ;;  %5584 = vmatprep.mubr.msk.bf16.mxu0 %vm6396_vm1, %v6395_v16  ;;  %v5213_v26 = vld [vmem:[%s7536_s10] ss:$0 sm:$0xff]  ;;  %s6397_s19 = smov 96   ;;  %s6398_s20 = smov 120   ;;  %vm218_vm2 = vcmask 1043456   ;;  %vm214_vm3 = vcmask 64512  }
   0xc   :  { %5581 = vmatpush3.bf16.msra.mxu0 %v6175_v15  ;;  %5588 = vmatprep.subr.bf16.mxu1 %v6395_v16  ;;  %v5214_v30 = vld [vmem:[%s7537_s11] ss:$0 sm:$0xff]  ;;  %s6399_s21 = smov 112   ;;  %s6400_s22 = smov 104   ;;  %vm665_vm5 = vcmask 130048   ;;  %vm667_vm6 = vcmask 195584  }
   0xd   :  { %5582 = vmatprep.subr.bf16.mxu0 %v6395_v16  ;;  %5590 = vmatprep.mubr.msk.bf16.mxu1 %vm6396_vm1, %v6395_v16  ;;  %v5215_v35 = vld [vmem:[%s7538_s12] ss:$0 sm:$0xff]  ;;  %s6401_s23 = smov 64   ;;  %s6403_s24 = smov 56   ;;  %vm1339_vm7 = vcmask 392192   ;;  %vm2536_vm8 = vcmask 523264  }
   0xe   :  { %s6404_s25 = smov 48   ;;  %s7540_s26 = smov 40  }
   0xf   :  { %s6406_s28 = smov 8   ;;  %s6407_s29 = smov 16  }
  0x10   :  { %5583 = vmatpush3.bf16.msra.mxu0 %v6176_v17  ;;  %v6402_v17 = vmov -1e+09   ;;  %s6408_s15 = smov 24   ;;  %s7546_s16 = smov 88  }
  0x11   :  { %5600 = vmatprep.subr.bf16.mxu0 %v6395_v16  ;;  %s7544_s17 = smov 80   ;;  %s7542_s18 = smov 72  }
  0x12   :  { %s7548_s30 = smov 40  }
  0x92   :  { %v63_v5 = vpop.xlane.xlu0 %62 }
  0x93   :  { %v68_v6 = vmul.f32 0.03125, %v63_v5 }
  0x95   :  { %v70_v7 = vsub.f32 %v5397_v1, %v68_v6 }
  0x96   :  { %v66_v8 = vpop.xlane.xlu0 %65 }
  0x97   :  { %v69_v9 = vmul.f32 0.03125, %v66_v8  ;;  %v72_v10 = vmul.f32 %v70_v7, %v70_v7 }
  0x99   :  { %v71_v11 = vsub.f32 %v5398_v2, %v69_v9  ;;  %v74_v12 = vsel %vm60_vm0, %v72_v10, 0.0 }
  0x9a   :  { %75 = vadd.xlane.f32.xlu1 %v74_v12 }
  0x9b   :  { %v73_v13 = vmul.f32 %v71_v11, %v71_v11 }
  0x9d   :  { %v77_v14 = vsel %vm60_vm0, %v73_v13, 0.0  ;;  %v46_v13 = vlaneseq }
  0x9e   :  { %78 = vadd.xlane.f32.xlu1 %v77_v14 }
  0x9f   :  { %v47_v14 = vshrl.u32 %v46_v13, 7  ;;  %v49_v15 = vand.u32 127, %v46_v13 }
  0xa1   :  { %vm50_vm4 = vcmp.ge.s32.totalorder %v47_v14, %v49_v15 }
 0x127   :  { %v76_v18 = vpop.xlane.xlu1 %75 }
 0x128   :  { %v80_v19 = vmul.f32 0.03125, %v76_v18  ;;  %v6581_v18 = vsel %vm50_vm4, 0.0, %v6402_v17 }
 0x12a   :  { %v82_v20 = vadd.f32 1e-05, %v80_v19 }
 0x12b   :  { %v79_v21 = vpop.xlane.xlu1 %78 }
 0x12c   :  { %6213 = vrsqrt.f32 %v82_v20  ;;  %v81_v22 = vmul.f32 0.03125, %v79_v21 }
 0x12e   :  { %v83_v23 = vadd.f32 1e-05, %v81_v22 }
 0x130   :  { %6215 = vrsqrt.f32 %v83_v23 }
 0x136   :  { %v6214_v24 = vpop.eup %6213 }
 0x137   :  { %v86_v25 = vmul.f32 %v6214_v24, %v70_v7 }
 0x139   :  { %v93_v29 = vmul.f32 %v5213_v26, %v86_v25 }
 0x13a   :  { %v6216_v27 = vpop.eup %6215 }
 0x13b   :  { %v87_v28 = vmul.f32 %v6216_v27, %v71_v11  ;;  %v6511_v32 = vadd.f32 %v5214_v30, %v93_v29 }
 0x13d   :  { %v94_v31 = vmul.f32 %v5213_v26, %v87_v28 }
 0x13f   :  { %v6513_v33 = vadd.f32 %v5214_v30, %v94_v31 }
 0x141   :  { %v106_v34 = vpack.c.bf16 %v6513_v33, %v6511_v32 }
 0x143   :  { %5585 = vmatmul.mubr.msk.bf16.vlgmr.msra.gmra.mrb[0].mxu0 %vm60_vm0, %v106_v34 }
 0x144   :  { %5602 = vmatprep.mubr.msk.bf16.mxu0 %vm6396_vm1, %v6395_v16 }
 0x216   :  { %v161_v36 = vpop.f32.mrb[0].mxu0 }
 0x217   :  { %v162_v37 = vadd.f32 %v5215_v35, %v161_v36  ;;  %v5586_v38 = vpop.f32.mrb[1].mxu0 }
 0x218   :  { %v164_v39 = vpop.f32.mrb[2].mxu0 }
 0x219   :  { %v165_v40 = vadd.f32 %v5215_v35, %v164_v39  ;;  %173 = vrot.lane.b32.xlu0 %v162_v37, %s6397_s19  ;;  %v5587_v41 = vpop.f32.mrb[3].mxu0  ;;  %v168_v42 = vmul.f32 0.35355338, %v162_v37 }
 0x21b   :  { %v169_v43 = vmul.f32 0.35355338, %v165_v40  ;;  %v6524_v44 = vpack.c.bf16 %v165_v40, %v162_v37  ;;  %175 = vrot.lane.b32.xlu1 %v165_v40, %s6397_s19 }
 0x21d   :  { %v170_v45 = vpack.c.bf16 %v169_v43, %v168_v42 }
 0x21f   :  { %324 = vrot.lane.b32.xlu0 %v170_v45, %s6398_s20  ;;  %v669_v58 = vrot.slane %v170_v45, 4 }
 0x223   :  { %434 = vrot.lane.b32.xlu0 %v170_v45, %s6399_s21 }
 0x227   :  { %542 = vrot.lane.b32.xlu0 %v170_v45, %s6400_s22 }
 0x28b   :  { %v174_v46 = vpop.permute.xlu0 %173 }
 0x28c   :  { %179 = vxpose.xlu1.b32.start [1/2] (short) (narrow) %v174_v46, 32 }
 0x28d   :  { %v176_v47 = vpop.permute.xlu1 %175 }
 0x290   :  { %180 = vxpose.xlu1.b32.end [2/2] (short) (narrow) %v176_v47, 32 }
 0x291   :  { %v325_v55 = vpop.permute.xlu0 %324 }
 0x295   :  { %v435_v62 = vpop.permute.xlu0 %434 }
 0x299   :  { %v543_v63 = vpop.permute.xlu0 %542 }
 0x30c   :  { %v195_v48 = vpop.trf.xlu1 }
 0x310   :  { %v196_v49 = vpop.trf.xlu1 }
 0x311   :  { %v211_v50 = vpack.c.bf16 %v196_v49, %v195_v48 }
 0x313   :  { %670 = vrot.lane.b32.xlu0 %v211_v50, %s6398_s20  ;;  %v220_v51 = vsel %vm218_vm2, %v211_v50, 0  ;;  %v327_v52 = vrot.slane %v211_v50, 4 }
 0x314   :  { %5589 = vmatpush3.bf16.msra.mxu1 %v220_v51  ;;  %v197_v53 = vpop.trf.xlu1 }
 0x315   :  { %v332_v54 = vsel %vm218_vm2, %v327_v52, 0  ;;  %5594 = vmatprep.subr.bf16.mxu1 %v6395_v16 }
 0x316   :  { %5601 = vmatpush3.bf16.msra.mxu0 %v332_v54 }
 0x317   :  { %781 = vrot.lane.b32.xlu0 %v327_v52, %s6398_s20  ;;  %5591 = vmatmul.mubr.msk.bf16.vlgmr.msra.gmra.mrb[0].mxu1 %vm214_vm3, %v170_v45 }
 0x318   :  { %v198_v56 = vpop.trf.xlu1  ;;  %5612 = vmatprep.subr.bf16.mxu0 %v6395_v16  ;;  %5596 = vmatprep.mubr.msk.bf16.mxu1 %vm6396_vm1, %v6395_v16 }
 0x319   :  { %5603 = vmatmul.mubr.msk.bf16.vlgmr.msra.gmra.mrb[4].mxu0 %vm214_vm3, %v325_v55  ;;  %v212_v57 = vpack.c.bf16 %v198_v56, %v197_v53 }
 0x31a   :  { %5614 = vmatprep.mubr.msk.bf16.mxu0 %vm6396_vm1, %v6395_v16 }
 0x31b   :  { %779 = vrot.lane.b32.xlu0 %v669_v58, %s6398_s20  ;;  %v440_v59 = vsel %vm218_vm2, %v212_v57, 0  ;;  %v545_v60 = vrot.slane %v212_v57, 4 }
 0x31c   :  { %5613 = vmatpush3.bf16.msra.mxu0 %v440_v59 }
 0x31d   :  { %5624 = vmatprep.subr.bf16.mxu0 %v6395_v16  ;;  %v550_v61 = vsel %vm218_vm2, %v545_v60, 0 }
 0x31f   :  { %891 = vrot.lane.b32.xlu0 %v212_v57, %s6398_s20 }
 0x321   :  { %5615 = vmatmul.mubr.msk.bf16.vlgmr.msra.gmra.mrb[8].mxu0 %vm214_vm3, %v435_v62 }
 0x322   :  { %5625 = vmatpush3.bf16.msra.mxu0 %v550_v61  ;;  %5626 = vmatprep.mubr.msk.bf16.mxu0 %vm6396_vm1, %v6395_v16 }
 0x323   :  { %889 = vrot.lane.b32.xlu0 %v669_v58, %s6399_s21  ;;  %5636 = vmatprep.subr.bf16.mxu0 %v6395_v16 }
 0x327   :  { %1001 = vrot.lane.b32.xlu0 %v545_v60, %s6398_s20 }
 0x329   :  { %5627 = vmatmul.mubr.msk.bf16.vlgmr.msra.gmra.mrb[12].mxu0 %vm214_vm3, %v543_v63 }
 0x32a   :  { %5638 = vmatprep.mubr.msk.bf16.mxu0 %vm6396_vm1, %v6395_v16 }
 0x32b   :  { %999 = vrot.lane.b32.xlu0 %v669_v58, %s6400_s22 }
 0x32f   :  { %275 = vrot.lane.b32.xlu0 %v6524_v44, %s6401_s23 }
 0x385   :  { %v671_v0 = vpop.permute.xlu0 %670 }
 0x386   :  { %v676_v1 = vsel %vm218_vm2, %v671_v0, 0 }
 0x387   :  { %5637 = vmatpush3.bf16.msra.mxu0 %v676_v1 }
 0x388   :  { %5648 = vmatprep.subr.bf16.mxu0 %v6395_v16 }
 0x389   :  { %v782_v2 = vpop.permute.xlu0 %781 }
 0x38a   :  { %v787_v3 = vsel %vm218_vm2, %v782_v2, 0  ;;  %5639 = vmatmul.mubr.msk.bf16.vlgmr.msra.gmra.mrb[16].mxu0 %vm214_vm3, %v669_v58 }
 0x38b   :  { %5649 = vmatpush3.bf16.msra.mxu0 %v787_v3  ;;  %5650 = vmatprep.mubr.msk.bf16.mxu0 %vm6396_vm1, %v6395_v16 }
 0x38c   :  { %5660 = vmatprep.subr.bf16.mxu0 %v6395_v16 }
 0x38d   :  { %v780_v4 = vpop.permute.xlu0 %779 }
 0x391   :  { %v892_v5 = vpop.permute.xlu0 %891 }
 0x392   :  { %v897_v6 = vsel %vm218_vm2, %v892_v5, 0  ;;  %5651 = vmatmul.mubr.msk.bf16.vlgmr.msra.gmra.mrb[20].mxu0 %vm214_vm3, %v780_v4 }
 0x393   :  { %5661 = vmatpush3.bf16.msra.mxu0 %v897_v6  ;;  %5662 = vmatprep.mubr.msk.bf16.mxu0 %vm6396_vm1, %v6395_v16 }
 0x394   :  { %5672 = vmatprep.subr.bf16.mxu0 %v6395_v16 }
 0x395   :  { %v890_v7 = vpop.permute.xlu0 %889 }
 0x399   :  { %v1002_v8 = vpop.permute.xlu0 %1001 }
 0x39a   :  { %v1007_v9 = vsel %vm218_vm2, %v1002_v8, 0  ;;  %5663 = vmatmul.mubr.msk.bf16.vlgmr.msra.gmra.mrb[24].mxu0 %vm214_vm3, %v890_v7 }
 0x39b   :  { %5673 = vmatpush3.bf16.msra.mxu0 %v1007_v9  ;;  %5674 = vmatprep.mubr.msk.bf16.mxu0 %vm6396_vm1, %v6395_v16 }
 0x39c   :  { %5684 = vmatprep.subr.bf16.mxu0 %v6395_v16 }
 0x39d   :  { %v1000_v10 = vpop.permute.xlu0 %999 }
 0x3a1   :  { %v276_v11 = vpop.permute.xlu0 %275 }
 0x3a2   :  { %v281_v12 = vsel %vm218_vm2, %v276_v11, 0  ;;  %5675 = vmatmul.mubr.msk.bf16.vlgmr.msra.gmra.mrb[28].mxu0 %vm214_vm3, %v1000_v10 }
 0x3a3   :  { %5595 = vmatpush3.bf16.msra.mxu1 %v281_v12  ;;  %5688 = vmatprep.mubr.msk.bf16.mxu0 %vm6396_vm1, %v6395_v16 }
 0x3a4   :  { %5606 = vmatprep.subr.bf16.mxu1 %v6395_v16 }
 0x3ea   :  { %v256_v19 = vpop.f32.mrb[0].mxu1 }
 0x3eb   :  { %v6584_v20 = vadd.f32 %v256_v19, %v6581_v18  ;;  %v5592_v21 = vpop.f32.mrb[1].mxu1  ;;  %v6621_v19 = vrot.slane %v6524_v44, 4 }
 0x3ec   :  { %v259_v22 = vpop.f32.mrb[2].mxu1  ;;  %v368_v23 = vpop.f32.mrb[4].mxu0 }
 0x3ed   :  { %v369_v24 = vadd.f32 %v368_v23, %v6581_v18  ;;  %v5593_v25 = vpop.f32.mrb[3].mxu1  ;;  %v5604_v26 = vpop.f32.mrb[5].mxu0  ;;  %v262_v27 = vsel %vm214_vm3, %v6584_v20, -inf }
 0x3ee   :  { %v371_v28 = vpop.f32.mrb[6].mxu0  ;;  %263 = vmax.xlane.f32.xlu0 %v262_v27 }
 0x3ef   :  { %v5605_v29 = vpop.f32.mrb[7].mxu0  ;;  %v374_v30 = vsel %vm214_vm3, %v369_v24, -inf }
 0x3f0   :  { %375 = vmax.xlane.f32.xlu1 %v374_v30 }
 0x3f4   :  { %v476_v31 = vpop.f32.mrb[8].mxu0 }
 0x3f5   :  { %v477_v34 = vadd.f32 %v476_v31, %v6581_v18  ;;  %v5616_v35 = vpop.f32.mrb[9].mxu0 }
 0x3f6   :  { %v479_v36 = vpop.f32.mrb[10].mxu0 }
 0x3f7   :  { %v5617_v37 = vpop.f32.mrb[11].mxu0  ;;  %v482_v38 = vsel %vm214_vm3, %v477_v34, -inf }
 0x3f8   :  { %483 = vmax.xlane.f32.xlu0 %v482_v38 }
 0x3fc   :  { %v586_v39 = vpop.f32.mrb[12].mxu0 }
 0x3fd   :  { %v6593_v40 = vadd.f32 %v586_v39, %v6581_v18  ;;  %v5628_v41 = vpop.f32.mrb[13].mxu0 }
 0x3fe   :  { %v589_v42 = vpop.f32.mrb[14].mxu0 }
 0x3ff   :  { %v5629_v43 = vpop.f32.mrb[15].mxu0  ;;  %v592_v45 = vsel %vm214_vm3, %v6593_v40, -inf }
 0x400   :  { %593 = vmax.xlane.f32.xlu0 %v592_v45 }
 0x401   :  { %386 = vrot.lane.b32.xlu1 %v6524_v44, %s6403_s24 }
 0x45d   :  { %v712_v46 = vpop.f32.mrb[16].mxu0 }
 0x45e   :  { %v6600_v47 = vadd.f32 %v712_v46, %v6581_v18  ;;  %v5640_v48 = vpop.f32.mrb[17].mxu0 }
 0x45f   :  { %v715_v49 = vpop.f32.mrb[18].mxu0 }
 0x460   :  { %v5641_v50 = vpop.f32.mrb[19].mxu0  ;;  %v718_v51 = vsel %vm214_vm3, %v6600_v47, -inf }
 0x461   :  { %719 = vmax.xlane.f32.xlu0 %v718_v51 }
 0x465   :  { %v823_v52 = vpop.f32.mrb[20].mxu0 }
 0x466   :  { %v824_v53 = vadd.f32 %v823_v52, %v6581_v18  ;;  %v5652_v54 = vpop.f32.mrb[21].mxu0 }
 0x467   :  { %v826_v55 = vpop.f32.mrb[22].mxu0 }
 0x468   :  { %v5653_v56 = vpop.f32.mrb[23].mxu0  ;;  %v829_v57 = vsel %vm214_vm3, %v824_v53, -inf }
 0x469   :  { %830 = vmax.xlane.f32.xlu0 %v829_v57 }
 0x46d   :  { %v933_v58 = vpop.f32.mrb[24].mxu0 }
 0x46e   :  { %v934_v59 = vadd.f32 %v933_v58, %v6581_v18  ;;  %v5664_v60 = vpop.f32.mrb[25].mxu0 }
 0x46f   :  { %v936_v61 = vpop.f32.mrb[26].mxu0 }
 0x470   :  { %v5665_v62 = vpop.f32.mrb[27].mxu0  ;;  %v939_v63 = vsel %vm214_vm3, %v934_v59, -inf }
 0x471   :  { %940 = vmax.xlane.f32.xlu0 %v939_v63 }
 0x475   :  { %v1043_v0 = vpop.f32.mrb[28].mxu0 }
 0x476   :  { %v6609_v1 = vadd.f32 %v1043_v0, %v6581_v18  ;;  %v5676_v2 = vpop.f32.mrb[29].mxu0 }
 0x477   :  { %v1046_v3 = vpop.f32.mrb[30].mxu0 }
 0x478   :  { %v5677_v4 = vpop.f32.mrb[31].mxu0  ;;  %v1049_v5 = vsel %vm214_vm3, %v6609_v1, -inf }
 0x479   :  { %1050 = vmax.xlane.f32.xlu1 %v1049_v5 }
 0x47b   :  { %v264_v10 = vpop.xlane.xlu0 %263 }
 0x47c   :  { %v265_v12 = vsub.f32 %v6584_v20, %v264_v10 }
 0x47d   :  { %v376_v6 = vpop.xlane.xlu1 %375 }
 0x47e   :  { %v377_v7 = vsub.f32 %v369_v24, %v376_v6  ;;  %v266_v14 = vmul.f32 1.442695, %v265_v12 }
 0x480   :  { %v378_v8 = vmul.f32 1.442695, %v377_v7 }
 0x481   :  { %v387_v46 = vpop.permute.xlu1 %386 }
 0x482   :  { %6217 = vpow2.f32 %v378_v8  ;;  %v392_v60 = vsel %vm218_vm2, %v387_v46, 0 }
 0x483   :  { %6219 = vpow2.f32 %v266_v14 }
 0x485   :  { %v484_v13 = vpop.xlane.xlu0 %483 }
 0x486   :  { %v485_v15 = vsub.f32 %v477_v34, %v484_v13 }
 0x487   :  { %494 = vrot.lane.b32.xlu0 %v6524_v44, %s6404_s25 }
 0x488   :  { %v486_v17 = vmul.f32 1.442695, %v485_v15 }
 0x48a   :  { %6221 = vpow2.f32 %v486_v17 }
 0x48c   :  { %v6615_v9 = vpop.eup %6217 }
 0x48d   :  { %v380_v11 = vsel %vm214_vm3, %v6615_v9, 0.0  ;;  %v6220_v21 = vpop.eup %6219  ;;  %v594_v24 = vpop.xlane.xlu0 %593 }
 0x48e   :  { %381 = vadd.xlane.f32.xlu1 %v380_v11  ;;  %v268_v22 = vsel %vm214_vm3, %v6220_v21, 0.0  ;;  %v595_v25 = vsub.f32 %v6593_v40, %v594_v24 }
 0x490   :  { %v596_v26 = vmul.f32 1.442695, %v595_v25 }
 0x492   :  { %6223 = vpow2.f32 %v596_v26 }
 0x494   :  { %v6626_v23 = vpop.eup %6221 }
 0x495   :  { %v488_v20 = vsel %vm214_vm3, %v6626_v23, 0.0 }
 0x49c   :  { %v6631_v27 = vpop.eup %6223 }
 0x49d   :  { %v598_v28 = vsel %vm214_vm3, %v6631_v27, 0.0 }
 0x49f   :  { %731 = vrot.lane.b32.xlu1 %v6621_v19, %s6401_s23 }
 0x4a6   :  { %269 = vadd.xlane.f32.xlu0 %v268_v22 }
 0x4aa   :  { %489 = vadd.xlane.f32.xlu0 %v488_v20 }
 0x4c0   :  { %604 = vrot.lane.b32.xlu0 %v6524_v44, %s7540_s26 }
 0x4c3   :  { %599 = vadd.xlane.f32.xlu1 %v598_v28 }
 0x4ee   :  { %v720_v29 = vpop.xlane.xlu0 %719 }
 0x4ef   :  { %v721_v30 = vsub.f32 %v6600_v47, %v720_v29 }
 0x4f1   :  { %v722_v31 = vmul.f32 1.442695, %v721_v30 }
 0x4f3   :  { %6225 = vpow2.f32 %v722_v31 }
 0x4f6   :  { %v831_v34 = vpop.xlane.xlu0 %830 }
 0x4f7   :  { %v832_v35 = vsub.f32 %v824_v53, %v831_v34 }
 0x4f9   :  { %v833_v36 = vmul.f32 1.442695, %v832_v35 }
 0x4fb   :  { %6227 = vpow2.f32 %v833_v36 }
 0x4fd   :  { %v6638_v37 = vpop.eup %6225 }
 0x4fe   :  { %v941_v38 = vpop.xlane.xlu0 %940  ;;  %v724_v39 = vsel %vm214_vm3, %v6638_v37, 0.0 }
 0x4ff   :  { %v942_v44 = vsub.f32 %v934_v59, %v941_v38  ;;  %725 = vadd.xlane.f32.xlu1 %v724_v39 }
 0x501   :  { %v943_v40 = vmul.f32 1.442695, %v942_v44 }
 0x502   :  { %v495_v50 = vpop.permute.xlu0 %494 }
 0x503   :  { %6229 = vpow2.f32 %v943_v40  ;;  %v500_v0 = vsel %vm218_vm2, %v495_v50, 0 }
 0x505   :  { %v6642_v41 = vpop.eup %6227 }
 0x506   :  { %v835_v42 = vsel %vm214_vm3, %v6642_v41, 0.0  ;;  %v1051_v47 = vpop.xlane.xlu1 %1050 }
 0x507   :  { %836 = vadd.xlane.f32.xlu1 %v835_v42  ;;  %v1052_v48 = vsub.f32 %v6609_v1, %v1051_v47 }
 0x509   :  { %v1053_v49 = vmul.f32 1.442695, %v1052_v48 }
 0x50b   :  { %6231 = vpow2.f32 %v1053_v49 }
 0x50d   :  { %v6646_v43 = vpop.eup %6229 }
 0x50e   :  { %v945_v45 = vsel %vm214_vm3, %v6646_v43, 0.0 }
 0x50f   :  { %946 = vadd.xlane.f32.xlu0 %v945_v45 }
 0x515   :  { %v6655_v53 = vpop.eup %6231 }
 0x516   :  { %v1055_v54 = vsel %vm214_vm3, %v6655_v53, 0.0 }
 0x518   :  { %841 = vrot.lane.b32.xlu1 %v6621_v19, %s6403_s24 }
 0x51b   :  { %v382_v52 = vpop.xlane.xlu1 %381 }
 0x51f   :  { %v732_v1 = vpop.permute.xlu1 %731 }
 0x520   :  { %v737_v10 = vsel %vm218_vm2, %v732_v1, 0 }
 0x525   :  { %951 = vrot.lane.b32.xlu0 %v6621_v19, %s6404_s25 }
 0x533   :  { %v270_v51 = vpop.xlane.xlu0 %269 }
 0x534   :  { %6233 = vrcp.f32 %v270_v51 }
 0x535   :  { %6235 = vrcp.f32 %v382_v52 }
 0x537   :  { %v490_v55 = vpop.xlane.xlu0 %489 }
 0x538   :  { %6237 = vrcp.f32 %v490_v55 }
 0x53b   :  { %v605_v3 = vpop.permute.xlu0 %604 }
 0x53c   :  { %1056 = vadd.xlane.f32.xlu1 %v1055_v54  ;;  %v610_v6 = vsel %vm218_vm2, %v605_v3, 0 }
 0x53e   :  { %v6234_v56 = vpop.eup %6233 }
 0x53f   :  { %v272_v57 = vmul.f32 %v6234_v56, %v6220_v21  ;;  %v6236_v59 = vpop.eup %6235 }
 0x540   :  { %v384_v61 = vmul.f32 %v6236_v59, %v6615_v9 }
 0x541   :  { %v273_v58 = vpack.c.bf16 %v272_v57, %v272_v57 }
 0x542   :  { %v385_v62 = vpack.c.bf16 %v384_v61, %v384_v61  ;;  %v6238_v63 = vpop.eup %6237 }
 0x543   :  { %5597 = vmatmul.mubr.msk.bf16.vlgmr.msra.gmra.mrb[4].mxu1 %vm214_vm3, %v273_v58  ;;  %v492_v2 = vmul.f32 %v6238_v63, %v6626_v23  ;;  %v6177_v58 = vld [vmem:[%s7529_s3] sm:$0xff]  }
 0x544   :  { %5607 = vmatpush3.bf16.msra.mxu1 %v392_v60  ;;  %5608 = vmatprep.mubr.msk.bf16.mxu1 %vm6396_vm1, %v6395_v16 }
 0x545   :  { %5618 = vmatprep.subr.bf16.mxu1 %v6395_v16  ;;  %v493_v5 = vpack.c.bf16 %v492_v2, %v492_v2  ;;  %5685 = vmatpush3.bf16.msra.mxu0 %v6177_v58 }
 0x546   :  { %5686 = vmatprep.subr.bf16.mxu0 %v6395_v16 }
 0x54b   :  { %5609 = vmatmul.mubr.msk.bf16.vlgmr.msra.gmra.mrb[8].mxu1 %vm214_vm3, %v385_v62 }
 0x54c   :  { %5619 = vmatpush3.bf16.msra.mxu1 %v500_v0  ;;  %5620 = vmatprep.mubr.msk.bf16.mxu1 %vm6396_vm1, %v6395_v16 }
 0x54d   :  { %1061 = vrot.lane.b32.xlu1 %v6621_v19, %s7540_s26  ;;  %5630 = vmatprep.subr.bf16.mxu1 %v6395_v16 }
 0x550   :  { %v600_v4 = vpop.xlane.xlu1 %599 }
 0x551   :  { %6239 = vrcp.f32 %v600_v4  ;;  %v6178_v4 = vld [vmem:[%s7529_s3 + $0x8] sm:$0xff]  }
 0x552   :  { %5687 = vmatpush3.bf16.msra.mxu0 %v6178_v4 }
 0x553   :  { %5621 = vmatmul.mubr.msk.bf16.vlgmr.msra.gmra.mrb[12].mxu1 %vm214_vm3, %v493_v5 }
 0x554   :  { %5631 = vmatpush3.bf16.msra.mxu1 %v610_v6  ;;  %5632 = vmatprep.mubr.msk.bf16.mxu1 %vm6396_vm1, %v6395_v16 }
 0x555   :  { %5642 = vmatprep.subr.bf16.mxu1 %v6395_v16 }
 0x55b   :  { %v6240_v7 = vpop.eup %6239 }
 0x55c   :  { %v602_v8 = vmul.f32 %v6240_v7, %v6631_v27 }
 0x55e   :  { %v603_v9 = vpack.c.bf16 %v602_v8, %v602_v8 }
 0x560   :  { %5633 = vmatmul.mubr.msk.bf16.vlgmr.msra.gmra.mrb[16].mxu1 %vm214_vm3, %v603_v9 }
 0x561   :  { %5643 = vmatpush3.bf16.msra.mxu1 %v737_v10  ;;  %5644 = vmatprep.mubr.msk.bf16.mxu1 %vm6396_vm1, %v6395_v16 }
 0x562   :  { %5654 = vmatprep.subr.bf16.mxu1 %v6395_v16 }
 0x58c   :  { %v726_v11 = vpop.xlane.xlu1 %725 }
 0x58d   :  { %6241 = vrcp.f32 %v726_v11 }
 0x594   :  { %v837_v12 = vpop.xlane.xlu1 %836 }
 0x595   :  { %6243 = vrcp.f32 %v837_v12 }
 0x597   :  { %v6242_v13 = vpop.eup %6241 }
 0x598   :  { %v728_v14 = vmul.f32 %v6242_v13, %v6638_v37  ;;  %v842_v15 = vpop.permute.xlu1 %841 }
 0x599   :  { %v847_v19 = vsel %vm218_vm2, %v842_v15, 0 }
 0x59a   :  { %v729_v17 = vpack.c.bf16 %v728_v14, %v728_v14 }
 0x59c   :  { %5645 = vmatmul.mubr.msk.bf16.vlgmr.msra.gmra.mrb[20].mxu1 %vm214_vm3, %v729_v17  ;;  %v947_v21 = vpop.xlane.xlu0 %946 }
 0x59d   :  { %5655 = vmatpush3.bf16.msra.mxu1 %v847_v19  ;;  %6245 = vrcp.f32 %v947_v21  ;;  %5656 = vmatprep.mubr.msk.bf16.mxu1 %vm6396_vm1, %v6395_v16 }
 0x59e   :  { %5666 = vmatprep.subr.bf16.mxu1 %v6395_v16 }
 0x59f   :  { %v6244_v22 = vpop.eup %6243 }
 0x5a0   :  { %v839_v23 = vmul.f32 %v6244_v22, %v6642_v41  ;;  %v952_v20 = vpop.permute.xlu0 %951 }
 0x5a1   :  { %v957_v25 = vsel %vm218_vm2, %v952_v20, 0 }
 0x5a2   :  { %v840_v24 = vpack.c.bf16 %v839_v23, %v839_v23 }
 0x5a4   :  { %5657 = vmatmul.mubr.msk.bf16.vlgmr.msra.gmra.mrb[24].mxu1 %vm214_vm3, %v840_v24 }
 0x5a5   :  { %5667 = vmatpush3.bf16.msra.mxu1 %v957_v25  ;;  %5668 = vmatprep.mubr.msk.bf16.mxu1 %vm6396_vm1, %v6395_v16 }
 0x5a6   :  { %5678 = vmatprep.subr.bf16.mxu1 %v6395_v16 }
 0x5a7   :  { %v6246_v26 = vpop.eup %6245 }
 0x5a8   :  { %v949_v27 = vmul.f32 %v6246_v26, %v6646_v43 }
 0x5aa   :  { %v950_v28 = vpack.c.bf16 %v949_v27, %v949_v27 }
 0x5ac   :  { %5669 = vmatmul.mubr.msk.bf16.vlgmr.msra.gmra.mrb[28].mxu1 %vm214_vm3, %v950_v28  ;;  %v5235_v28 = vld [vmem:[%s7538_s12 + $0x1] ss:$0 sm:$0xff] }
 0x5ad   :  { %5680 = vmatprep.mubr.msk.bf16.mxu1 %vm6396_vm1, %v6395_v16 }
 0x5c9   :  { %v1057_v29 = vpop.xlane.xlu1 %1056 }
 0x5ca   :  { %6247 = vrcp.f32 %v1057_v29 }
 0x5cd   :  { %v1062_v30 = vpop.permute.xlu1 %1061 }
 0x5ce   :  { %v1067_v31 = vsel %vm218_vm2, %v1062_v30, 0 }
 0x5cf   :  { %5679 = vmatpush3.bf16.msra.mxu1 %v1067_v31 }
 0x5d0   :  { %5692 = vmatprep.subr.bf16.mxu1 %v6395_v16 }
 0x5d4   :  { %v6248_v34 = vpop.eup %6247 }
 0x5d5   :  { %v1059_v35 = vmul.f32 %v6248_v34, %v6655_v53 }
 0x5d7   :  { %v1060_v36 = vpack.c.bf16 %v1059_v35, %v1059_v35 }
 0x5d9   :  { %5681 = vmatmul.mubr.msk.bf16.vlgmr.msra.gmra.mrb[32].mxu1 %vm214_vm3, %v1060_v36 }
 0x5da   :  { %5696 = vmatprep.mubr.msk.bf16.mxu1 %vm6396_vm1, %v6395_v16 }
 0x616   :  { %v317_v37 = vpop.f32.mrb[4].mxu1 }
 0x617   :  { %v5598_v38 = vpop.f32.mrb[5].mxu1 }
 0x618   :  { %v320_v39 = vpop.f32.mrb[6].mxu1 }
 0x619   :  { %v5599_v44 = vpop.f32.mrb[7].mxu1 }
 0x61e   :  { %v428_v40 = vpop.f32.mrb[8].mxu1 }
 0x61f   :  { %v5610_v41 = vpop.f32.mrb[9].mxu1 }
 0x620   :  { %v431_v42 = vpop.f32.mrb[10].mxu1  ;;  %v6180_v41 = vld [vmem:[%s7531_s5 + $0x8] sm:$0xff]  }
 0x621   :  { %v5611_v43 = vpop.f32.mrb[11].mxu1  ;;  %v6183_v42 = vld [vmem:[%s7527_s1 + $0x8] sm:$0xff]  }
 0x626   :  { %v536_v45 = vpop.f32.mrb[12].mxu1 }
 0x627   :  { %v5622_v46 = vpop.f32.mrb[13].mxu1 }
 0x628   :  { %v539_v47 = vpop.f32.mrb[14].mxu1 }
 0x629   :  { %v5623_v48 = vpop.f32.mrb[15].mxu1 }
 0x633   :  { %v646_v49 = vpop.f32.mrb[16].mxu1 }
 0x634   :  { %v5634_v50 = vpop.f32.mrb[17].mxu1 }
 0x635   :  { %v649_v51 = vpop.f32.mrb[18].mxu1 }
 0x636   :  { %v5635_v52 = vpop.f32.mrb[19].mxu1 }
 0x66f   :  { %v773_v53 = vpop.f32.mrb[20].mxu1 }
 0x670   :  { %v5646_v54 = vpop.f32.mrb[21].mxu1 }
 0x671   :  { %v776_v55 = vpop.f32.mrb[22].mxu1  ;;  %v6184_v54 = vld [vmem:[%s7530_s4] sm:$0xff]  }
 0x672   :  { %v5647_v56 = vpop.f32.mrb[23].mxu1  ;;  %5693 = vmatpush3.bf16.msra.mxu1 %v6184_v54  ;;  %v6185_v55 = vld [vmem:[%s7530_s4 + $0x8] sm:$0xff]  }
 0x673   :  { %5694 = vmatprep.subr.bf16.mxu1 %v6395_v16  ;;  %v5245_v56 = vld [vmem:[%s7538_s12 + $0x3] ss:$0 sm:$0xff] }
 0x676   :  { %5695 = vmatpush3.bf16.msra.mxu1 %v6185_v55 }
 0x677   :  { %v883_v57 = vpop.f32.mrb[24].mxu1  ;;  %5710 = vmatprep.subr.bf16.mxu1 %v6395_v16 }
 0x678   :  { %v6115_v59 = vpack.i.bf16 %v883_v57, %v428_v40  ;;  %v5658_v60 = vpop.f32.mrb[25].mxu1  ;;  %v6179_v40 = vld [vmem:[%s7531_s5] sm:$0xff]  }
 0x679   :  { %v886_v61 = vpop.f32.mrb[26].mxu1  ;;  %5700 = vmatprep.subr.bf16.mxu0 %v6179_v40 }
 0x67a   :  { %6116 = vrot.lane.b32.xlu0 %v6115_v59, %s6406_s28  ;;  %v5659_v62 = vpop.f32.mrb[27].mxu1 }
 0x67f   :  { %v993_v63 = vpop.f32.mrb[28].mxu1 }
 0x680   :  { %v6120_v0 = vpack.i.bf16 %v993_v63, %v536_v45  ;;  %v5670_v1 = vpop.f32.mrb[29].mxu1 }
 0x681   :  { %v996_v2 = vpop.f32.mrb[30].mxu1 }
 0x682   :  { %6121 = vrot.lane.b32.xlu1 %v6120_v0, %s6407_s29  ;;  %v5671_v3 = vpop.f32.mrb[31].mxu1 }
 0x6ac   :  { %v1103_v5 = vpop.f32.mrb[32].mxu1 }
 0x6ad   :  { %v6125_v6 = vpack.i.bf16 %v1103_v5, %v646_v49  ;;  %v5682_v7 = vpop.f32.mrb[33].mxu1 }
 0x6ae   :  { %v1106_v8 = vpop.f32.mrb[34].mxu1 }
 0x6af   :  { %6126 = vrot.lane.b32.xlu0 %v6125_v6, %s6408_s15  ;;  %v5683_v9 = vpop.f32.mrb[35].mxu1 }
 0x6ec   :  { %v6117_v10 = vpop.permute.xlu0 %6116 }
 0x6ed   :  { %v6119_v12 = vunpack.i.h.bf16 %v6117_v10  ;;  %v6118_v13 = vunpack.i.l.bf16 %v6117_v10 }
 0x6ef   :  { %v1121_v19 = vsel %vm214_vm3, %v773_v53, %v6119_v12  ;;  %v664_v21 = vsel %vm214_vm3, %v317_v37, %v6118_v13 }
 0x6f4   :  { %v6122_v11 = vpop.permute.xlu1 %6121 }
 0x6f5   :  { %v6124_v14 = vunpack.i.h.bf16 %v6122_v11  ;;  %v6123_v15 = vunpack.i.l.bf16 %v6122_v11  ;;  %v5239_v11 = vld [vmem:[%s7536_s10 + $0x1] ss:$0 sm:$0xff] }
 0x6f7   :  { %v666_v20 = vsel %vm665_vm5, %v664_v21, %v6123_v15  ;;  %v1122_v24 = vsel %vm665_vm5, %v1121_v19, %v6124_v14  ;;  %v5240_v15 = vld [vmem:[%s7537_s11 + $0x1] ss:$0 sm:$0xff] }
 0x721   :  { %v6127_v17 = vpop.permute.xlu0 %6126 }
 0x722   :  { %v6129_v22 = vunpack.i.h.bf16 %v6127_v17  ;;  %v6128_v23 = vunpack.i.l.bf16 %v6127_v17 }
 0x724   :  { %v668_v25 = vsel %vm667_vm6, %v666_v20, %v6128_v23  ;;  %v1123_v26 = vsel %vm667_vm6, %v1122_v24, %v6129_v22 }
 0x725   :  { %v1128_v27 = vpack.c.bf16 %v1123_v26, %v668_v25  ;;  %v5241_v26 = vld [vmem:[%s7538_s12 + $0x2] ss:$0 sm:$0xff] }
 0x727   :  { %5689 = vmatmul.mubr.msk.bf16.vlgmr.msra.gmra.mrb[32].mxu0 %vm60_vm0, %v1128_v27 }
 0x728   :  { %5701 = vmatpush3.bf16.msra.mxu0 %v6179_v40 }
 0x729   :  { %5702 = vmatprep.subr.bf16.mxu0 %v6180_v41 }
 0x72c   :  { %5703 = vmatpush3.bf16.msra.mxu0 %v6180_v41 }
 0x7fa   :  { %v1183_v29 = vpop.f32.mrb[32].mxu0 }
 0x7fb   :  { %v1184_v30 = vadd.f32 %v5235_v28, %v1183_v29  ;;  %v5690_v31 = vpop.f32.mrb[33].mxu0 }
 0x7fc   :  { %v1186_v34 = vpop.f32.mrb[34].mxu0 }
 0x7fd   :  { %v1187_v35 = vadd.f32 %v5235_v28, %v1186_v34  ;;  %v5691_v36 = vpop.f32.mrb[35].mxu0  ;;  %v1190_v37 = vadd.f32 %v1184_v30, %v6511_v32  ;;  %v6182_v32 = vld [vmem:[%s7527_s1] sm:$0xff]  }
 0x7fe   :  { %5706 = vmatprep.mubr.msk.bf16.mxu0 %vm1339_vm7, %v6182_v32 }
 0x7ff   :  { %v1192_v38 = vsel %vm60_vm0, %v1190_v37, 0.0  ;;  %v1191_v39 = vadd.f32 %v1187_v35, %v6513_v33  ;;  %v6181_v33 = vld [vmem:[%s7531_s5 + $0x10] sm:$0xff]  }
 0x800   :  { %1193 = vadd.xlane.f32.xlu1 %v1192_v38  ;;  %5704 = vmatprep.subr.bf16.mxu0 %v6181_v33 }
 0x801   :  { %v1195_v44 = vsel %vm60_vm0, %v1191_v39, 0.0  ;;  %5705 = vmatpush3.bf16.msra.mxu0 %v6181_v33 }
 0x802   :  { %1196 = vadd.xlane.f32.xlu0 %v1195_v44  ;;  %5716 = vmatprep.subr.bf16.mxu0 %v6395_v16 }
 0x804   :  { %5707 = vmatmul.mubr.msk.bf16.vlgmr.msra.gmra.mrb[36].mxu0 %vm1339_vm7, %v6183_v42 }
 0x805   :  { %5718 = vmatprep.mubr.msk.bf16.mxu0 %vm6396_vm1, %v6395_v16 }
 0x88d   :  { %v1194_v43 = vpop.xlane.xlu1 %1193 }
 0x88e   :  { %v1198_v45 = vmul.f32 0.03125, %v1194_v43 }
 0x88f   :  { %v1197_v46 = vpop.xlane.xlu0 %1196 }
 0x890   :  { %v1200_v47 = vsub.f32 %v1190_v37, %v1198_v45  ;;  %v1199_v48 = vmul.f32 0.03125, %v1197_v46 }
 0x892   :  { %v1201_v49 = vsub.f32 %v1191_v39, %v1199_v48  ;;  %v1202_v50 = vmul.f32 %v1200_v47, %v1200_v47 }
 0x894   :  { %v1204_v51 = vsel %vm60_vm0, %v1202_v50, 0.0  ;;  %v1203_v52 = vmul.f32 %v1201_v49, %v1201_v49 }
 0x895   :  { %1205 = vadd.xlane.f32.xlu0 %v1204_v51 }
 0x896   :  { %v1207_v53 = vsel %vm60_vm0, %v1203_v52, 0.0 }
 0x899   :  { %1208 = vadd.xlane.f32.xlu0 %v1207_v53 }
 0x8d7   :  { %v5708_v57 = vpop.f32.mrb[36].mxu0 }
 0x8d8   :  { %v1380_v58 = vpop.f32.mrb[37].mxu0  ;;  %v1389_v61 = vadd.f32 %v5708_v57, %v5245_v56 }
 0x8d9   :  { %v1381_v59 = vadd.f32 %v5245_v56, %v1380_v58  ;;  %v5709_v60 = vpop.f32.mrb[38].mxu0 }
 0x8da   :  { %v1392_v62 = vadd.f32 %v5709_v60, %v5245_v56  ;;  %v1383_v63 = vpop.f32.mrb[39].mxu0 }
 0x8db   :  { %1396 = vxpose.xlu1.b32.start [1/4] (short) (narrow) %v1381_v59, 32  ;;  %v1384_v0 = vadd.f32 %v5245_v56, %v1383_v63 }
 0x8dc   :  { %v6763_v1 = vpack.c.bf16 %v1392_v62, %v1389_v61 }
 0x8dd   :  { %v6765_v2 = vpack.c.bf16 %v1384_v0, %v1381_v59 }
 0x8df   :  { %1397 = vxpose.xlu1.b32.cont [2/4] (short) (narrow) %v1384_v0, 32 }
 0x8e3   :  { %1398 = vxpose.xlu1.b32.cont [3/4] (short) (narrow) %v1389_v61, 32 }
 0x8e7   :  { %1399 = vxpose.xlu1.b32.end [4/4] (short) (narrow) %v1392_v62, 32 }
 0x922   :  { %v1206_v3 = vpop.xlane.xlu0 %1205 }
 0x923   :  { %v1210_v4 = vmul.f32 0.03125, %v1206_v3 }
 0x925   :  { %v1212_v5 = vadd.f32 1e-05, %v1210_v4 }
 0x926   :  { %v1209_v6 = vpop.xlane.xlu0 %1208 }
 0x927   :  { %6249 = vrsqrt.f32 %v1212_v5  ;;  %v1211_v7 = vmul.f32 0.03125, %v1209_v6 }
 0x929   :  { %v1213_v8 = vadd.f32 1e-05, %v1211_v7 }
 0x92b   :  { %6251 = vrsqrt.f32 %v1213_v8 }
 0x931   :  { %v6250_v9 = vpop.eup %6249 }
 0x932   :  { %v1216_v10 = vmul.f32 %v6250_v9, %v1200_v47 }
 0x934   :  { %v1223_v13 = vmul.f32 %v5239_v11, %v1216_v10 }
 0x935   :  { %v6252_v12 = vpop.eup %6251 }
 0x936   :  { %v1217_v14 = vmul.f32 %v6252_v12, %v1201_v49  ;;  %v6773_v19 = vadd.f32 %v5240_v15, %v1223_v13 }
 0x938   :  { %v1224_v17 = vmul.f32 %v5239_v11, %v1217_v14 }
 0x93a   :  { %v6775_v21 = vadd.f32 %v5240_v15, %v1224_v17 }
 0x93c   :  { %v1236_v22 = vpack.c.bf16 %v6775_v21, %v6773_v19 }
 0x93e   :  { %5697 = vmatmul.mubr.msk.bf16.vlgmr.msra.gmra.mrb[36].mxu1 %vm60_vm0, %v1236_v22 }
 0x93f   :  { %5712 = vmatprep.mubr.msk.bf16.mxu1 %vm6396_vm1, %v6395_v16 }
 0x95b   :  { %v1412_v23 = vpop.trf.xlu1 }
 0x95f   :  { %v1413_v20 = vpop.trf.xlu1 }
 0x960   :  { %v1428_v24 = vpack.c.bf16 %v1413_v20, %v1412_v23 }
 0x962   :  { %v1436_v25 = vsel %vm218_vm2, %v1428_v24, 0  ;;  %v1541_v37 = vrot.slane %v1428_v24, 4 }
 0x963   :  { %5711 = vmatpush3.bf16.msra.mxu1 %v1436_v25  ;;  %v1414_v44 = vpop.trf.xlu1 }
 0x964   :  { %5722 = vmatprep.subr.bf16.mxu1 %v6395_v16  ;;  %v1546_v39 = vsel %vm218_vm2, %v1541_v37, 0 }
 0x967   :  { %v1415_v40 = vpop.trf.xlu1 }
 0x968   :  { %v1429_v32 = vpack.c.bf16 %v1415_v40, %v1414_v44 }
 0x96a   :  { %v1755_v33 = vrot.slane %v1429_v32, 4  ;;  %v1652_v43 = vsel %vm218_vm2, %v1429_v32, 0 }
 0x96c   :  { %v1760_v47 = vsel %vm218_vm2, %v1755_v33, 0 }
 0xa11   :  { %v1291_v27 = vpop.f32.mrb[36].mxu1 }
 0xa12   :  { %v1292_v28 = vadd.f32 %v5241_v26, %v1291_v27  ;;  %v5698_v29 = vpop.f32.mrb[37].mxu1 }
 0xa13   :  { %v1294_v30 = vpop.f32.mrb[38].mxu1 }
 0xa14   :  { %v1295_v31 = vadd.f32 %v5241_v26, %v1294_v30  ;;  %v5699_v34 = vpop.f32.mrb[39].mxu1  ;;  %v1298_v35 = vmul.f32 0.35355338, %v1292_v28 }
 0xa16   :  { %v1299_v36 = vmul.f32 0.35355338, %v1295_v31 }
 0xa18   :  { %v1395_v38 = vpack.c.bf16 %v1299_v36, %v1298_v35 }
 0xa1a   :  { %1538 = vrot.lane.b32.xlu0 %v1395_v38, %s6398_s20  ;;  %5713 = vmatmul.mubr.msk.bf16.vlgmr.msra.gmra.mrb[40].mxu1 %vm214_vm3, %v1395_v38  ;;  %v1875_v41 = vrot.slane %v1395_v38, 4 }
 0xa1b   :  { %5723 = vmatpush3.bf16.msra.mxu1 %v1546_v39  ;;  %5724 = vmatprep.mubr.msk.bf16.mxu1 %vm6396_vm1, %v6395_v16 }
 0xa1c   :  { %5734 = vmatprep.subr.bf16.mxu1 %v6395_v16 }
 0xa1e   :  { %1646 = vrot.lane.b32.xlu0 %v1395_v38, %s6399_s21 }
 0xa22   :  { %1752 = vrot.lane.b32.xlu0 %v1395_v38, %s6400_s22 }
 0xa26   :  { %1876 = vrot.lane.b32.xlu0 %v1428_v24, %s6399_s21 }
 0xa2a   :  { %1985 = vrot.lane.b32.xlu0 %v1541_v37, %s6399_s21 }
 0xa2e   :  { %1983 = vrot.lane.b32.xlu0 %v1875_v41, %s6398_s20 }
 0xa32   :  { %2093 = vrot.lane.b32.xlu0 %v1429_v32, %s6399_s21 }
 0xa36   :  { %2091 = vrot.lane.b32.xlu0 %v1875_v41, %s6399_s21 }
 0xa3a   :  { %2201 = vrot.lane.b32.xlu0 %v1755_v33, %s6399_s21 }
 0xa3e   :  { %2199 = vrot.lane.b32.xlu0 %v1875_v41, %s6400_s22 }
 0xa8c   :  { %v1539_v42 = vpop.permute.xlu0 %1538 }
 0xa8d   :  { %5725 = vmatmul.mubr.msk.bf16.vlgmr.msra.gmra.mrb[44].mxu1 %vm214_vm3, %v1539_v42 }
 0xa8e   :  { %5735 = vmatpush3.bf16.msra.mxu1 %v1652_v43  ;;  %5736 = vmatprep.mubr.msk.bf16.mxu1 %vm6396_vm1, %v6395_v16 }
 0xa8f   :  { %5746 = vmatprep.subr.bf16.mxu1 %v6395_v16 }
 0xa90   :  { %v1647_v45 = vpop.permute.xlu0 %1646 }
 0xa94   :  { %v1753_v46 = vpop.permute.xlu0 %1752 }
 0xa95   :  { %5737 = vmatmul.mubr.msk.bf16.vlgmr.msra.gmra.mrb[48].mxu1 %vm214_vm3, %v1647_v45 }
 0xa96   :  { %5747 = vmatpush3.bf16.msra.mxu1 %v1760_v47  ;;  %5748 = vmatprep.mubr.msk.bf16.mxu1 %vm6396_vm1, %v6395_v16 }
 0xa97   :  { %5758 = vmatprep.subr.bf16.mxu1 %v6395_v16 }
 0xa98   :  { %v1877_v48 = vpop.permute.xlu0 %1876 }
 0xa99   :  { %v1882_v49 = vsel %vm218_vm2, %v1877_v48, 0 }
 0xa9c   :  { %v1986_v50 = vpop.permute.xlu0 %1985 }
 0xa9d   :  { %5749 = vmatmul.mubr.msk.bf16.vlgmr.msra.gmra.mrb[52].mxu1 %vm214_vm3, %v1753_v46  ;;  %v1991_v52 = vsel %vm218_vm2, %v1986_v50, 0 }
 0xa9e   :  { %5759 = vmatpush3.bf16.msra.mxu1 %v1882_v49  ;;  %5760 = vmatprep.mubr.msk.bf16.mxu1 %vm6396_vm1, %v6395_v16 }
 0xa9f   :  { %5770 = vmatprep.subr.bf16.mxu1 %v6395_v16 }
 0xaa0   :  { %v1984_v51 = vpop.permute.xlu0 %1983 }
 0xaa4   :  { %v2094_v53 = vpop.permute.xlu0 %2093 }
 0xaa5   :  { %5761 = vmatmul.mubr.msk.bf16.vlgmr.msra.gmra.mrb[56].mxu1 %vm214_vm3, %v1875_v41  ;;  %v2099_v54 = vsel %vm218_vm2, %v2094_v53, 0 }
 0xaa6   :  { %5771 = vmatpush3.bf16.msra.mxu1 %v1991_v52  ;;  %5772 = vmatprep.mubr.msk.bf16.mxu1 %vm6396_vm1, %v6395_v16 }
 0xaa7   :  { %5782 = vmatprep.subr.bf16.mxu1 %v6395_v16 }
 0xaa8   :  { %v2092_v55 = vpop.permute.xlu0 %2091 }
 0xaac   :  { %v2202_v56 = vpop.permute.xlu0 %2201 }
 0xaad   :  { %5773 = vmatmul.mubr.msk.bf16.vlgmr.msra.gmra.mrb[60].mxu1 %vm214_vm3, %v1984_v51  ;;  %v2207_v57 = vsel %vm218_vm2, %v2202_v56, 0 }
 0xaae   :  { %5783 = vmatpush3.bf16.msra.mxu1 %v2099_v54  ;;  %5784 = vmatprep.mubr.msk.bf16.mxu1 %vm6396_vm1, %v6395_v16 }
 0xaaf   :  { %5794 = vmatprep.subr.bf16.mxu1 %v6395_v16 }
 0xab0   :  { %v2200_v58 = vpop.permute.xlu0 %2199 }
 0xab5   :  { %5785 = vmatmul.mubr.msk.bf16.vlgmr.msra.gmra.mrb[64].mxu1 %vm214_vm3, %v2092_v55 }
 0xab6   :  { %5795 = vmatpush3.bf16.msra.mxu1 %v2207_v57  ;;  %5796 = vmatprep.mubr.msk.bf16.mxu1 %vm6396_vm1, %v6395_v16 }
 0xab7   :  { %5806 = vmatprep.subr.bf16.mxu1 %v6395_v16 }
 0xabd   :  { %5797 = vmatmul.mubr.msk.bf16.vlgmr.msra.gmra.mrb[68].mxu1 %vm214_vm3, %v2200_v58 }
 0xabe   :  { %5810 = vmatprep.mubr.msk.bf16.mxu1 %vm6396_vm1, %v6395_v16 }
 0xaed   :  { %v1472_v59 = vpop.f32.mrb[40].mxu1 }
 0xaee   :  { %v5714_v60 = vpop.f32.mrb[41].mxu1  ;;  %v1478_v61 = vsel %vm665_vm5, %v1472_v59, -inf }
 0xaef   :  { %v1475_v62 = vpop.f32.mrb[42].mxu1  ;;  %1479 = vmax.xlane.f32.xlu0 %v1478_v61 }
 0xaf0   :  { %v5715_v63 = vpop.f32.mrb[43].mxu1 }
 0xb60   :  { %v1582_v0 = vpop.f32.mrb[44].mxu1 }
 0xb61   :  { %v5726_v3 = vpop.f32.mrb[45].mxu1  ;;  %v1588_v4 = vsel %vm665_vm5, %v1582_v0, -inf }
 0xb62   :  { %1589 = vmax.xlane.f32.xlu1 %v1588_v4  ;;  %v1585_v5 = vpop.f32.mrb[46].mxu1 }
 0xb63   :  { %v5727_v6 = vpop.f32.mrb[47].mxu1 }
 0xb68   :  { %v1688_v7 = vpop.f32.mrb[48].mxu1 }
 0xb69   :  { %v5738_v8 = vpop.f32.mrb[49].mxu1  ;;  %v1694_v9 = vsel %vm665_vm5, %v1688_v7, -inf }
 0xb6a   :  { %1695 = vmax.xlane.f32.xlu0 %v1694_v9  ;;  %v1691_v10 = vpop.f32.mrb[50].mxu1 }
 0xb6b   :  { %v5739_v11 = vpop.f32.mrb[51].mxu1 }
 0xb70   :  { %v1796_v12 = vpop.f32.mrb[52].mxu1 }
 0xb71   :  { %v5750_v13 = vpop.f32.mrb[53].mxu1  ;;  %v1802_v14 = vsel %vm665_vm5, %v1796_v12, -inf }
 0xb72   :  { %1803 = vmax.xlane.f32.xlu0 %v1802_v14  ;;  %v1799_v15 = vpop.f32.mrb[54].mxu1 }
 0xb73   :  { %v5751_v17 = vpop.f32.mrb[55].mxu1 }
 0xb78   :  { %v1918_v22 = vpop.f32.mrb[56].mxu1 }
 0xb79   :  { %v5762_v23 = vpop.f32.mrb[57].mxu1  ;;  %v1924_v20 = vsel %vm665_vm5, %v1918_v22, -inf }
 0xb7a   :  { %1925 = vmax.xlane.f32.xlu0 %v1924_v20  ;;  %v1921_v24 = vpop.f32.mrb[58].mxu1 }
 0xb7b   :  { %v5763_v25 = vpop.f32.mrb[59].mxu1 }
 0xb7c   :  { %v1480_v41 = vpop.xlane.xlu0 %1479 }
 0xb7d   :  { %v1481_v32 = vsub.f32 %v1472_v59, %v1480_v41 }
 0xb7f   :  { %v1482_v33 = vmul.f32 1.442695, %v1481_v32 }
 0xb80   :  { %v6840_v26 = vpop.f32.mrb[60].mxu1 }
 0xb81   :  { %v5774_v27 = vpop.f32.mrb[61].mxu1  ;;  %v2033_v28 = vsel %vm665_vm5, %v6840_v26, -inf  ;;  %6253 = vpow2.f32 %v1482_v33 }
 0xb82   :  { %2034 = vmax.xlane.f32.xlu1 %v2033_v28  ;;  %v2030_v29 = vpop.f32.mrb[62].mxu1 }
 0xb83   :  { %v5775_v30 = vpop.f32.mrb[63].mxu1 }
 0xb88   :  { %v2135_v31 = vpop.f32.mrb[64].mxu1 }
 0xb89   :  { %v5786_v34 = vpop.f32.mrb[65].mxu1  ;;  %v2141_v35 = vsel %vm665_vm5, %v2135_v31, -inf }
 0xb8a   :  { %2142 = vmax.xlane.f32.xlu0 %v2141_v35  ;;  %v2138_v36 = vpop.f32.mrb[66].mxu1 }
 0xb8b   :  { %v5787_v37 = vpop.f32.mrb[67].mxu1  ;;  %v6853_v43 = vpop.eup %6253 }
 0xb8c   :  { %v1484_v45 = vsel %vm665_vm5, %v6853_v43, 0.0 }
 0xb90   :  { %v6845_v38 = vpop.f32.mrb[68].mxu1 }
 0xb91   :  { %v5798_v39 = vpop.f32.mrb[69].mxu1  ;;  %v2249_v42 = vsel %vm665_vm5, %v6845_v38, -inf }
 0xb92   :  { %v2246_v44 = vpop.f32.mrb[70].mxu1 }
 0xb93   :  { %v5799_v40 = vpop.f32.mrb[71].mxu1  ;;  %1600 = vrot.lane.b32.xlu1 %v6765_v2, %s7546_s16 }
 0xba0   :  { %1491 = vrot.lane.b32.xlu0 %v6765_v2, %s6397_s19 }
 0xbb7   :  { %2250 = vmax.xlane.f32.xlu1 %v2249_v42 }
 0xbbf   :  { %1485 = vadd.xlane.f32.xlu0 %v1484_v45 }
 0xbc8   :  { %1706 = vrot.lane.b32.xlu1 %v6765_v2, %s7544_s17 }
 0xbef   :  { %v1590_v46 = vpop.xlane.xlu1 %1589 }
 0xbf0   :  { %v1591_v47 = vsub.f32 %v1582_v0, %v1590_v46 }
 0xbf2   :  { %v1592_v48 = vmul.f32 1.442695, %v1591_v47 }
 0xbf4   :  { %6255 = vpow2.f32 %v1592_v48 }
 0xbf7   :  { %v1696_v49 = vpop.xlane.xlu0 %1695 }
 0xbf8   :  { %v1697_v50 = vsub.f32 %v1688_v7, %v1696_v49 }
 0xbfa   :  { %v1698_v51 = vmul.f32 1.442695, %v1697_v50 }
 0xbfc   :  { %6257 = vpow2.f32 %v1698_v51 }
 0xbfe   :  { %v6859_v52 = vpop.eup %6255 }
 0xbff   :  { %v1804_v53 = vpop.xlane.xlu0 %1803  ;;  %v1594_v54 = vsel %vm665_vm5, %v6859_v52, 0.0 }
 0xc00   :  { %v1805_v55 = vsub.f32 %v1796_v12, %v1804_v53  ;;  %1595 = vadd.xlane.f32.xlu1 %v1594_v54 }
 0xc02   :  { %v1806_v56 = vmul.f32 1.442695, %v1805_v55 }
 0xc04   :  { %6259 = vpow2.f32 %v1806_v56 }
 0xc06   :  { %v6863_v57 = vpop.eup %6257 }
 0xc07   :  { %v1926_v58 = vpop.xlane.xlu0 %1925  ;;  %v1700_v59 = vsel %vm665_vm5, %v6863_v57, 0.0 }
 0xc08   :  { %v1927_v60 = vsub.f32 %v1918_v22, %v1926_v58  ;;  %1701 = vadd.xlane.f32.xlu0 %v1700_v59 }
 0xc0a   :  { %v1928_v61 = vmul.f32 1.442695, %v1927_v60 }
 0xc0c   :  { %6261 = vpow2.f32 %v1928_v61 }
 0xc0e   :  { %v6867_v62 = vpop.eup %6259 }
 0xc0f   :  { %v1808_v63 = vsel %vm665_vm5, %v6867_v62, 0.0  ;;  %v2035_v8 = vpop.xlane.xlu1 %2034 }
 0xc10   :  { %1809 = vadd.xlane.f32.xlu1 %v1808_v63  ;;  %v2036_v10 = vsub.f32 %v6840_v26, %v2035_v8 }
 0xc12   :  { %v2037_v12 = vmul.f32 1.442695, %v2036_v10 }
 0xc13   :  { %v1601_v15 = vpop.permute.xlu1 %1600 }
 0xc16   :  { %v6871_v0 = vpop.eup %6261 }
 0xc17   :  { %v2143_v3 = vpop.xlane.xlu0 %2142  ;;  %v1930_v4 = vsel %vm665_vm5, %v6871_v0, 0.0 }
 0xc18   :  { %v2144_v5 = vsub.f32 %v2135_v31, %v2143_v3  ;;  %1931 = vadd.xlane.f32.xlu1 %v1930_v4 }
 0xc1a   :  { %v2145_v6 = vmul.f32 1.442695, %v2144_v5 }
 0xc1b   :  { %v1492_v7 = vpop.permute.xlu0 %1491 }
 0xc1c   :  { %6263 = vpow2.f32 %v2145_v6  ;;  %5717 = vmatpush3.bf16.msra.mxu0 %v1492_v7 }
 0xc1d   :  { %5728 = vmatprep.subr.bf16.mxu0 %v6395_v16  ;;  %6265 = vpow2.f32 %v2037_v12 }
 0xc1e   :  { %1814 = vrot.lane.b32.xlu0 %v6765_v2, %s7542_s18 }
 0xc26   :  { %v6878_v9 = vpop.eup %6263 }
 0xc27   :  { %v2147_v11 = vsel %vm665_vm5, %v6878_v9, 0.0  ;;  %v6883_v13 = vpop.eup %6265 }
 0xc28   :  { %2148 = vadd.xlane.f32.xlu1 %v2147_v11  ;;  %v2039_v14 = vsel %vm665_vm5, %v6883_v13, 0.0 }
 0xc3d   :  { %2040 = vadd.xlane.f32.xlu0 %v2039_v14 }
 0xc44   :  { %v2251_v17 = vpop.xlane.xlu1 %2250 }
 0xc45   :  { %v2252_v2 = vsub.f32 %v6845_v38, %v2251_v17 }
 0xc47   :  { %v2253_v22 = vmul.f32 1.442695, %v2252_v2 }
 0xc48   :  { %v1707_v28 = vpop.permute.xlu1 %1706 }
 0xc49   :  { %6267 = vpow2.f32 %v2253_v22 }
 0xc4c   :  { %v1486_v23 = vpop.xlane.xlu0 %1485 }
 0xc4d   :  { %6269 = vrcp.f32 %v1486_v23 }
 0xc53   :  { %v6888_v20 = vpop.eup %6267  ;;  %2045 = vrot.lane.b32.xlu0 %v6763_v1, %s7546_s16 }
 0xc54   :  { %v2255_v24 = vsel %vm665_vm5, %v6888_v20, 0.0 }
 0xc55   :  { %2256 = vadd.xlane.f32.xlu1 %v2255_v24 }
 0xc57   :  { %v6270_v25 = vpop.eup %6269  ;;  %2153 = vrot.lane.b32.xlu0 %v6763_v1, %s7544_s17 }
 0xc58   :  { %v1488_v26 = vmul.f32 %v6270_v25, %v6853_v43 }
 0xc5a   :  { %v1489_v27 = vpack.c.bf16 %v1488_v26, %v1488_v26 }
 0xc5b   :  { %2261 = vrot.lane.b32.xlu0 %v6763_v1, %s7542_s18 }
 0xc5c   :  { %5719 = vmatmul.mubr.msk.bf16.vlgmr.msra.gmra.mrb[40].mxu0 %vm665_vm5, %v1489_v27 }
 0xc5d   :  { %5729 = vmatpush3.bf16.msra.mxu0 %v1601_v15  ;;  %5730 = vmatprep.mubr.msk.bf16.mxu0 %vm6396_vm1, %v6395_v16 }
 0xc5e   :  { %5740 = vmatprep.subr.bf16.mxu0 %v6395_v16 }
 0xc66   :  { %1937 = vrot.lane.b32.xlu1 %v6763_v1, %s6397_s19 }
 0xc8d   :  { %v1596_v29 = vpop.xlane.xlu1 %1595 }
 0xc8e   :  { %6271 = vrcp.f32 %v1596_v29 }
 0xc95   :  { %v1702_v30 = vpop.xlane.xlu0 %1701 }
 0xc96   :  { %6273 = vrcp.f32 %v1702_v30 }
 0xc98   :  { %v6272_v31 = vpop.eup %6271 }
 0xc99   :  { %v1598_v34 = vmul.f32 %v6272_v31, %v6859_v52  ;;  %v1815_v39 = vpop.permute.xlu0 %1814 }
 0xc9b   :  { %v1599_v35 = vpack.c.bf16 %v1598_v34, %v1598_v34 }
 0xc9d   :  { %v1810_v36 = vpop.xlane.xlu1 %1809  ;;  %5731 = vmatmul.mubr.msk.bf16.vlgmr.msra.gmra.mrb[44].mxu0 %vm665_vm5, %v1599_v35 }
 0xc9e   :  { %6275 = vrcp.f32 %v1810_v36  ;;  %5741 = vmatpush3.bf16.msra.mxu0 %v1707_v28  ;;  %5742 = vmatprep.mubr.msk.bf16.mxu0 %vm6396_vm1, %v6395_v16  ;;  %v6187_v28 = vld [vmem:[%s7532_s6 + $0x8] sm:$0xff]  }
 0xc9f   :  { %5752 = vmatprep.subr.bf16.mxu0 %v6395_v16 }
 0xca0   :  { %v6274_v1 = vpop.eup %6273 }
 0xca1   :  { %v1704_v37 = vmul.f32 %v6274_v1, %v6863_v57 }
 0xca3   :  { %v1705_v38 = vpack.c.bf16 %v1704_v37, %v1704_v37 }
 0xca5   :  { %5743 = vmatmul.mubr.msk.bf16.vlgmr.msra.gmra.mrb[48].mxu0 %vm665_vm5, %v1705_v38  ;;  %v1932_v32 = vpop.xlane.xlu1 %1931 }
 0xca6   :  { %5753 = vmatpush3.bf16.msra.mxu0 %v1815_v39  ;;  %5754 = vmatprep.mubr.msk.bf16.mxu0 %vm6396_vm1, %v6395_v16  ;;  %6277 = vrcp.f32 %v1932_v32 }
 0xca7   :  { %5764 = vmatprep.subr.bf16.mxu0 %v6395_v16 }
 0xca8   :  { %v6276_v44 = vpop.eup %6275 }
 0xca9   :  { %v1812_v40 = vmul.f32 %v6276_v44, %v6867_v62 }
 0xcab   :  { %v1813_v41 = vpack.c.bf16 %v1812_v40, %v1812_v40 }
 0xcad   :  { %5755 = vmatmul.mubr.msk.bf16.vlgmr.msra.gmra.mrb[52].mxu0 %vm665_vm5, %v1813_v41 }
 0xcae   :  { %5766 = vmatprep.mubr.msk.bf16.mxu0 %vm6396_vm1, %v6395_v16 }
 0xcb0   :  { %v6278_v43 = vpop.eup %6277 }
 0xcb1   :  { %v1934_v46 = vmul.f32 %v6278_v43, %v6871_v0 }
 0xcb3   :  { %v1935_v48 = vpack.c.bf16 %v1934_v46, %v1934_v46 }
 0xcb5   :  { %v2149_v42 = vpop.xlane.xlu1 %2148 }
 0xcca   :  { %v2041_v33 = vpop.xlane.xlu0 %2040 }
 0xccb   :  { %6279 = vrcp.f32 %v2041_v33 }
 0xccc   :  { %6281 = vrcp.f32 %v2149_v42 }
 0xcce   :  { %v2046_v50 = vpop.permute.xlu0 %2045 }
 0xcd2   :  { %v2154_v54 = vpop.permute.xlu0 %2153 }
 0xcd5   :  { %v6280_v49 = vpop.eup %6279 }
 0xcd6   :  { %v2043_v51 = vmul.f32 %v6280_v49, %v6883_v13  ;;  %v6282_v53 = vpop.eup %6281  ;;  %v2262_v58 = vpop.permute.xlu0 %2261 }
 0xcd7   :  { %v2151_v55 = vmul.f32 %v6282_v53, %v6878_v9 }
 0xcd8   :  { %v2044_v52 = vpack.c.bf16 %v2043_v51, %v2043_v51 }
 0xcd9   :  { %v2152_v56 = vpack.c.bf16 %v2151_v55, %v2151_v55 }
 0xce2   :  { %v2257_v45 = vpop.xlane.xlu1 %2256 }
 0xce3   :  { %6283 = vrcp.f32 %v2257_v45 }
 0xce6   :  { %v1938_v47 = vpop.permute.xlu1 %1937 }
 0xce7   :  { %5765 = vmatpush3.bf16.msra.mxu0 %v1938_v47 }
 0xce8   :  { %5776 = vmatprep.subr.bf16.mxu0 %v6395_v16 }
 0xcea   :  { %5767 = vmatmul.mubr.msk.bf16.vlgmr.msra.gmra.mrb[56].mxu0 %vm665_vm5, %v1935_v48 }
 0xceb   :  { %5777 = vmatpush3.bf16.msra.mxu0 %v2046_v50  ;;  %5778 = vmatprep.mubr.msk.bf16.mxu0 %vm6396_vm1, %v6395_v16 }
 0xcec   :  { %5788 = vmatprep.subr.bf16.mxu0 %v6395_v16 }
 0xced   :  { %v6284_v57 = vpop.eup %6283 }
 0xcee   :  { %v2259_v59 = vmul.f32 %v6284_v57, %v6888_v20  ;;  %v6186_v20 = vld [vmem:[%s7532_s6] sm:$0xff]  }
 0xcef   :  { %5807 = vmatpush3.bf16.msra.mxu1 %v6186_v20 }
 0xcf0   :  { %v2260_v60 = vpack.c.bf16 %v2259_v59, %v2259_v59  ;;  %5808 = vmatprep.subr.bf16.mxu1 %v6395_v16 }
 0xcf2   :  { %5779 = vmatmul.mubr.msk.bf16.vlgmr.msra.gmra.mrb[60].mxu0 %vm665_vm5, %v2044_v52 }
 0xcf3   :  { %5789 = vmatpush3.bf16.msra.mxu0 %v2154_v54  ;;  %5790 = vmatprep.mubr.msk.bf16.mxu0 %vm6396_vm1, %v6395_v16  ;;  %v5269_v54 = vld [vmem:[%s7538_s12 + $0x4] ss:$0 sm:$0xff] }
 0xcf4   :  { %5800 = vmatprep.subr.bf16.mxu0 %v6395_v16  ;;  %5809 = vmatpush3.bf16.msra.mxu1 %v6187_v28 }
 0xcf5   :  { %5822 = vmatprep.subr.bf16.mxu1 %v6395_v16 }
 0xcfa   :  { %5791 = vmatmul.mubr.msk.bf16.vlgmr.msra.gmra.mrb[64].mxu0 %vm665_vm5, %v2152_v56 }
 0xcfb   :  { %5801 = vmatpush3.bf16.msra.mxu0 %v2262_v58  ;;  %5802 = vmatprep.mubr.msk.bf16.mxu0 %vm6396_vm1, %v6395_v16 }
 0xcfc   :  { %5814 = vmatprep.subr.bf16.mxu0 %v6395_v16 }
 0xd02   :  { %5803 = vmatmul.mubr.msk.bf16.vlgmr.msra.gmra.mrb[68].mxu0 %vm665_vm5, %v2260_v60 }
 0xd03   :  { %5818 = vmatprep.mubr.msk.bf16.mxu0 %vm6396_vm1, %v6395_v16 }
 0xd2f   :  { %v1531_v61 = vpop.f32.mrb[40].mxu0 }
 0xd30   :  { %v5720_v62 = vpop.f32.mrb[41].mxu0 }
 0xd31   :  { %v1534_v63 = vpop.f32.mrb[42].mxu0 }
 0xd32   :  { %v5721_v0 = vpop.f32.mrb[43].mxu0 }
 0xd70   :  { %v1640_v3 = vpop.f32.mrb[44].mxu0 }
 0xd71   :  { %v5732_v4 = vpop.f32.mrb[45].mxu0 }
 0xd72   :  { %v1643_v5 = vpop.f32.mrb[46].mxu0 }
 0xd73   :  { %v5733_v6 = vpop.f32.mrb[47].mxu0 }
 0xd78   :  { %v1746_v7 = vpop.f32.mrb[48].mxu0 }
 0xd79   :  { %v5744_v8 = vpop.f32.mrb[49].mxu0 }
 0xd7a   :  { %v1749_v9 = vpop.f32.mrb[50].mxu0 }
 0xd7b   :  { %v5745_v10 = vpop.f32.mrb[51].mxu0 }
 0xd80   :  { %v1854_v11 = vpop.f32.mrb[52].mxu0 }
 0xd81   :  { %v5756_v12 = vpop.f32.mrb[53].mxu0 }
 0xd82   :  { %v1857_v13 = vpop.f32.mrb[54].mxu0  ;;  %v6189_v12 = vld [vmem:[%s7533_s7 + $0x8] sm:$0xff]  }
 0xd83   :  { %v5757_v14 = vpop.f32.mrb[55].mxu0  ;;  %v6190_v13 = vld [vmem:[%s7534_s8] sm:$0xff]  }
 0xd84   :  { %v6191_v14 = vld [vmem:[%s7534_s8 + $0x8] sm:$0xff]  }
 0xdbd   :  { %v1977_v15 = vpop.f32.mrb[56].mxu0 }
 0xdbe   :  { %v5768_v17 = vpop.f32.mrb[57].mxu0 }
 0xdbf   :  { %v1980_v2 = vpop.f32.mrb[58].mxu0 }
 0xdc0   :  { %v5769_v22 = vpop.f32.mrb[59].mxu0 }
 0xdc5   :  { %v2085_v23 = vpop.f32.mrb[60].mxu0 }
 0xdc6   :  { %v6130_v24 = vpack.i.bf16 %v2085_v23, %v1640_v3  ;;  %v5780_v25 = vpop.f32.mrb[61].mxu0 }
 0xdc7   :  { %v2088_v26 = vpop.f32.mrb[62].mxu0 }
 0xdc8   :  { %6131 = vrot.lane.b32.xlu1 %v6130_v24, %s6406_s28  ;;  %v5781_v27 = vpop.f32.mrb[63].mxu0  ;;  %v5273_v26 = vld [vmem:[%s7536_s10 + $0x2] ss:$0 sm:$0xff] }
 0xdcd   :  { %v2193_v29 = vpop.f32.mrb[64].mxu0 }
 0xdce   :  { %v6135_v30 = vpack.i.bf16 %v2193_v29, %v1746_v7  ;;  %v5792_v31 = vpop.f32.mrb[65].mxu0 }
 0xdcf   :  { %v2196_v34 = vpop.f32.mrb[66].mxu0 }
 0xdd0   :  { %6136 = vrot.lane.b32.xlu0 %v6135_v30, %s6407_s29  ;;  %v5793_v35 = vpop.f32.mrb[67].mxu0  ;;  %v5274_v30 = vld [vmem:[%s7537_s11 + $0x2] ss:$0 sm:$0xff] }
 0xdd5   :  { %v2301_v36 = vpop.f32.mrb[68].mxu0 }
 0xdd6   :  { %v6140_v1 = vpack.i.bf16 %v2301_v36, %v1854_v11  ;;  %v5804_v37 = vpop.f32.mrb[69].mxu0 }
 0xdd7   :  { %v2304_v38 = vpop.f32.mrb[70].mxu0  ;;  %v6193_v37 = vld [vmem:[%s7534_s8 + $0x18] sm:$0xff]  }
 0xdd8   :  { %6141 = vrot.lane.b32.xlu1 %v6140_v1, %s6408_s15  ;;  %v5805_v39 = vpop.f32.mrb[71].mxu0  ;;  %v6192_v1 = vld [vmem:[%s7534_s8 + $0x10] sm:$0xff]   ;;  %v5275_v38 = vld [vmem:[%s7538_s12 + $0x5] ss:$0 sm:$0xff] }
 0xe3a   :  { %v6132_v44 = vpop.permute.xlu1 %6131 }
 0xe3b   :  { %v6134_v41 = vunpack.i.h.bf16 %v6132_v44  ;;  %v6133_v32 = vunpack.i.l.bf16 %v6132_v44 }
 0xe3d   :  { %v2319_v45 = vsel %vm214_vm3, %v1977_v15, %v6134_v41  ;;  %v1872_v46 = vsel %vm214_vm3, %v1531_v61, %v6133_v32 }
 0xe42   :  { %v6137_v40 = vpop.permute.xlu0 %6136 }
 0xe43   :  { %v6139_v33 = vunpack.i.h.bf16 %v6137_v40  ;;  %v6138_v42 = vunpack.i.l.bf16 %v6137_v40 }
 0xe45   :  { %v2320_v49 = vsel %vm665_vm5, %v2319_v45, %v6139_v33  ;;  %v1873_v50 = vsel %vm665_vm5, %v1872_v46, %v6138_v42  ;;  %v5279_v46 = vld [vmem:[%s7538_s12 + $0x6] ss:$0 sm:$0xff] }
 0xe4a   :  { %v6142_v43 = vpop.permute.xlu1 %6141 }
 0xe4b   :  { %v6144_v47 = vunpack.i.h.bf16 %v6142_v43  ;;  %v6143_v48 = vunpack.i.l.bf16 %v6142_v43 }
 0xe4d   :  { %v1874_v51 = vsel %vm667_vm6, %v1873_v50, %v6143_v48  ;;  %v2321_v52 = vsel %vm667_vm6, %v2320_v49, %v6144_v47 }
 0xe4e   :  { %v2326_v53 = vpack.c.bf16 %v2321_v52, %v1874_v51 }
 0xe50   :  { %5811 = vmatmul.mubr.msk.bf16.vlgmr.msra.gmra.mrb[72].mxu1 %vm60_vm0, %v2326_v53 }
 0xe51   :  { %5830 = vmatprep.mubr.msk.bf16.mxu1 %vm6396_vm1, %v6395_v16  ;;  %5823 = vmatpush3.bf16.msra.mxu1 %v6190_v13 }
 0xe52   :  { %5824 = vmatprep.subr.bf16.mxu1 %v6395_v16 }
 0xe55   :  { %5825 = vmatpush3.bf16.msra.mxu1 %v6191_v14 }
 0xe56   :  { %5826 = vmatprep.subr.bf16.mxu1 %v6395_v16 }
 0xe59   :  { %5827 = vmatpush3.bf16.msra.mxu1 %v6192_v1 }
 0xe5a   :  { %5828 = vmatprep.subr.bf16.mxu1 %v6395_v16 }
 0xe5d   :  { %5829 = vmatpush3.bf16.msra.mxu1 %v6193_v37 }
 0xe5e   :  { %5848 = vmatprep.subr.bf16.mxu1 %v6395_v16 }
 0xf23   :  { %v2381_v55 = vpop.f32.mrb[72].mxu1 }
 0xf24   :  { %v2382_v56 = vadd.f32 %v5269_v54, %v2381_v55  ;;  %v5812_v57 = vpop.f32.mrb[73].mxu1 }
 0xf25   :  { %v2384_v58 = vpop.f32.mrb[74].mxu1 }
 0xf26   :  { %v2388_v59 = vadd.f32 %v2382_v56, %v6773_v19  ;;  %v2385_v60 = vadd.f32 %v5269_v54, %v2384_v58  ;;  %v5813_v61 = vpop.f32.mrb[75].mxu1 }
 0xf28   :  { %v2390_v62 = vsel %vm60_vm0, %v2388_v59, 0.0  ;;  %v2389_v63 = vadd.f32 %v2385_v60, %v6775_v21  ;;  %v6188_v21 = vld [vmem:[%s7533_s7] sm:$0xff]  }
 0xf29   :  { %2391 = vadd.xlane.f32.xlu0 %v2390_v62  ;;  %5815 = vmatpush3.bf16.msra.mxu0 %v6188_v21 }
 0xf2a   :  { %v2393_v0 = vsel %vm60_vm0, %v2389_v63, 0.0  ;;  %5816 = vmatprep.subr.bf16.mxu0 %v6395_v16 }
 0xf2b   :  { %2394 = vadd.xlane.f32.xlu1 %v2393_v0 }
 0xf2d   :  { %5817 = vmatpush3.bf16.msra.mxu0 %v6189_v12  ;;  %v5285_v12 = vld [vmem:[%s7536_s10 + $0x3] ss:$0 sm:$0xff] }
 0xf2e   :  { %5834 = vmatprep.subr.bf16.mxu0 %v6395_v16 }
 0xfb6   :  { %v2392_v3 = vpop.xlane.xlu0 %2391 }
 0xfb7   :  { %v2396_v4 = vmul.f32 0.03125, %v2392_v3 }
 0xfb8   :  { %v2395_v5 = vpop.xlane.xlu1 %2394 }
 0xfb9   :  { %v2398_v6 = vsub.f32 %v2388_v59, %v2396_v4  ;;  %v2397_v7 = vmul.f32 0.03125, %v2395_v5  ;;  %v6194_v5 = vld [vmem:[%s7528_s2 + $0x10] sm:$0xff]  }
 0xfbb   :  { %v2399_v8 = vsub.f32 %v2389_v63, %v2397_v7  ;;  %v2400_v9 = vmul.f32 %v2398_v6, %v2398_v6 }
 0xfbd   :  { %v2402_v10 = vsel %vm60_vm0, %v2400_v9, 0.0  ;;  %v2401_v19 = vmul.f32 %v2399_v8, %v2399_v8 }
 0xfbe   :  { %2403 = vadd.xlane.f32.xlu0 %v2402_v10 }
 0xfbf   :  { %v2405_v11 = vsel %vm60_vm0, %v2401_v19, 0.0 }
 0xfc2   :  { %2406 = vadd.xlane.f32.xlu0 %v2405_v11 }
0x104b   :  { %v2404_v15 = vpop.xlane.xlu0 %2403 }
0x104c   :  { %v2408_v17 = vmul.f32 0.03125, %v2404_v15 }
0x104e   :  { %v2410_v2 = vadd.f32 1e-05, %v2408_v17 }
0x104f   :  { %v2407_v22 = vpop.xlane.xlu0 %2406 }
0x1050   :  { %6285 = vrsqrt.f32 %v2410_v2  ;;  %v2409_v23 = vmul.f32 0.03125, %v2407_v22  ;;  %v5286_v2 = vld [vmem:[%s7537_s11 + $0x3] ss:$0 sm:$0xff] }
0x1052   :  { %v2411_v20 = vadd.f32 1e-05, %v2409_v23 }
0x1054   :  { %6287 = vrsqrt.f32 %v2411_v20 }
0x105a   :  { %v6286_v24 = vpop.eup %6285 }
0x105b   :  { %v2414_v25 = vmul.f32 %v6286_v24, %v2398_v6  ;;  %v6195_v6 = vld [vmem:[%s7528_s2 + $0x18] sm:$0xff]  }
0x105d   :  { %v2421_v28 = vmul.f32 %v5273_v26, %v2414_v25  ;;  %v5291_v25 = vld [vmem:[%s7538_s12 + $0x7] ss:$0 sm:$0xff] }
0x105e   :  { %v6288_v27 = vpop.eup %6287 }
0x105f   :  { %v2415_v29 = vmul.f32 %v6288_v27, %v2399_v8  ;;  %v2428_v34 = vadd.f32 %v5274_v30, %v2421_v28 }
0x1061   :  { %v2422_v31 = vmul.f32 %v5273_v26, %v2415_v29 }
0x1063   :  { %v2429_v35 = vadd.f32 %v5274_v30, %v2422_v31 }
0x1065   :  { %v2434_v36 = vpack.c.bf16 %v2429_v35, %v2428_v34 }
0x1067   :  { %5819 = vmatmul.mubr.msk.bf16.vlgmr.msra.gmra.mrb[72].mxu0 %vm60_vm0, %v2434_v36 }
0x1068   :  { %5838 = vmatprep.mubr.msk.bf16.mxu0 %vm6396_vm1, %v6395_v16  ;;  %5835 = vmatpush3.bf16.msra.mxu0 %v6194_v5 }
0x1069   :  { %5836 = vmatprep.subr.bf16.mxu0 %v6395_v16 }
0x106c   :  { %5837 = vmatpush3.bf16.msra.mxu0 %v6195_v6 }
0x106d   :  { %5842 = vmatprep.subr.bf16.mxu0 %v6395_v16 }
0x113a   :  { %v2489_v39 = vpop.f32.mrb[72].mxu0 }
0x113b   :  { %v2490_v44 = vadd.f32 %v5275_v38, %v2489_v39  ;;  %v5820_v40 = vpop.f32.mrb[73].mxu0 }
0x113c   :  { %v2492_v41 = vpop.f32.mrb[74].mxu0 }
0x113d   :  { %v2493_v32 = vadd.f32 %v5275_v38, %v2492_v41  ;;  %v5821_v33 = vpop.f32.mrb[75].mxu0  ;;  %v2496_v42 = vmax.f32 %v2490_v44, 0.0 }
0x113f   :  { %v2497_v43 = vmax.f32 %v2493_v32, 0.0 }
0x1141   :  { %v2506_v45 = vpack.c.bf16 %v2497_v43, %v2496_v42 }
0x1143   :  { %5831 = vmatmul.mubr.msk.bf16.vlgmr.msra.gmra.mrb[76].mxu1 %vm2536_vm8, %v2506_v45 }
0x1144   :  { %5850 = vmatprep.mubr.msk.bf16.mxu1 %vm6396_vm1, %v6395_v16 }
0x1216   :  { %v2574_v47 = vpop.f32.mrb[76].mxu1 }
0x1217   :  { %v2575_v48 = vadd.f32 %v5279_v46, %v2574_v47  ;;  %v5832_v49 = vpop.f32.mrb[77].mxu1 }
0x1218   :  { %v2577_v50 = vpop.f32.mrb[78].mxu1 }
0x1219   :  { %v2578_v51 = vadd.f32 %v5279_v46, %v2577_v50  ;;  %v5833_v52 = vpop.f32.mrb[79].mxu1  ;;  %v2581_v53 = vadd.f32 %v2575_v48, %v2428_v34 }
0x121b   :  { %v2582_v54 = vadd.f32 %v2578_v51, %v2429_v35  ;;  %v2583_v55 = vsel %vm60_vm0, %v2581_v53, 0.0 }
0x121c   :  { %2584 = vadd.xlane.f32.xlu1 %v2583_v55 }
0x121d   :  { %v2586_v56 = vsel %vm60_vm0, %v2582_v54, 0.0 }
0x121e   :  { %2587 = vadd.xlane.f32.xlu0 %v2586_v56 }
0x12a9   :  { %v2585_v57 = vpop.xlane.xlu1 %2584 }
0x12aa   :  { %v2589_v58 = vmul.f32 0.03125, %v2585_v57 }
0x12ab   :  { %v2588_v59 = vpop.xlane.xlu0 %2587 }
0x12ac   :  { %v2591_v60 = vsub.f32 %v2581_v53, %v2589_v58  ;;  %v2590_v61 = vmul.f32 0.03125, %v2588_v59 }
0x12ae   :  { %v2592_v62 = vsub.f32 %v2582_v54, %v2590_v61  ;;  %v2593_v63 = vmul.f32 %v2591_v60, %v2591_v60 }
0x12b0   :  { %v2595_v0 = vsel %vm60_vm0, %v2593_v63, 0.0  ;;  %v2594_v3 = vmul.f32 %v2592_v62, %v2592_v62 }
0x12b1   :  { %2596 = vadd.xlane.f32.xlu1 %v2595_v0 }
0x12b2   :  { %v2598_v4 = vsel %vm60_vm0, %v2594_v3, 0.0 }
0x12b3   :  { %2599 = vadd.xlane.f32.xlu0 %v2598_v4 }
0x133e   :  { %v2597_v7 = vpop.xlane.xlu1 %2596 }
0x133f   :  { %v2601_v8 = vmul.f32 0.03125, %v2597_v7 }
0x1340   :  { %v2600_v9 = vpop.xlane.xlu0 %2599 }
0x1341   :  { %v2603_v10 = vadd.f32 1e-05, %v2601_v8  ;;  %v2602_v19 = vmul.f32 0.03125, %v2600_v9 }
0x1343   :  { %6289 = vrsqrt.f32 %v2603_v10  ;;  %v2604_v11 = vadd.f32 1e-05, %v2602_v19 }
0x1345   :  { %6291 = vrsqrt.f32 %v2604_v11 }
0x134d   :  { %v6290_v21 = vpop.eup %6289 }
0x134e   :  { %v2607_v13 = vmul.f32 %v6290_v21, %v2591_v60 }
0x134f   :  { %v6292_v14 = vpop.eup %6291 }
0x1350   :  { %v2614_v15 = vmul.f32 %v5285_v12, %v2607_v13  ;;  %v2608_v17 = vmul.f32 %v6292_v14, %v2592_v62 }
0x1352   :  { %v2615_v22 = vmul.f32 %v5285_v12, %v2608_v17  ;;  %v7028_v23 = vadd.f32 %v5286_v2, %v2614_v15 }
0x1354   :  { %v7030_v20 = vadd.f32 %v5286_v2, %v2615_v22 }
0x1356   :  { %v2628_v24 = vpack.c.bf16 %v7030_v20, %v7028_v23 }
0x1358   :  { %5839 = vmatmul.mubr.msk.bf16.vlgmr.msra.gmra.mrb[76].mxu0 %vm60_vm0, %v2628_v24 }
0x1359   :  { %5844 = vmatprep.mubr.msk.bf16.mxu0 %vm6396_vm1, %v6395_v16 }
0x142b   :  { %v2683_v26 = vpop.f32.mrb[76].mxu0 }
0x142c   :  { %v2684_v27 = vadd.f32 %v5291_v25, %v2683_v26  ;;  %v5840_v28 = vpop.f32.mrb[77].mxu0 }
0x142d   :  { %v2686_v29 = vpop.f32.mrb[78].mxu0 }
0x142e   :  { %v2687_v30 = vadd.f32 %v5291_v25, %v2686_v29  ;;  %2695 = vrot.lane.b32.xlu1 %v2684_v27, %s6397_s19  ;;  %v5841_v31 = vpop.f32.mrb[79].mxu0  ;;  %v2690_v34 = vmul.f32 0.35355338, %v2684_v27 }
0x1430   :  { %v2691_v35 = vmul.f32 0.35355338, %v2687_v30  ;;  %v7041_v36 = vpack.c.bf16 %v2687_v30, %v2684_v27  ;;  %2697 = vrot.lane.b32.xlu0 %v2687_v30, %s6397_s19 }
0x1432   :  { %v2692_v1 = vpack.c.bf16 %v2691_v35, %v2690_v34 }
0x1434   :  { %2844 = vrot.lane.b32.xlu0 %v2692_v1, %s6398_s20  ;;  %v3187_v45 = vrot.slane %v2692_v1, 4 }
0x1438   :  { %2954 = vrot.lane.b32.xlu0 %v2692_v1, %s6399_s21 }
0x143c   :  { %3062 = vrot.lane.b32.xlu0 %v2692_v1, %s6400_s22 }
0x14a0   :  { %v2696_v37 = vpop.permute.xlu1 %2695 }
0x14a1   :  { %2701 = vxpose.xlu1.b32.start [1/2] (short) (narrow) %v2696_v37, 32 }
0x14a2   :  { %v2698_v38 = vpop.permute.xlu0 %2697 }
0x14a5   :  { %2702 = vxpose.xlu1.b32.end [2/2] (short) (narrow) %v2698_v38, 32 }
0x14a6   :  { %v2845_v48 = vpop.permute.xlu0 %2844 }
0x14aa   :  { %v2955_v51 = vpop.permute.xlu0 %2954 }
0x14ae   :  { %v3063_v52 = vpop.permute.xlu0 %3062 }
0x1521   :  { %v2717_v39 = vpop.trf.xlu1 }
0x1525   :  { %v2718_v44 = vpop.trf.xlu1 }
0x1526   :  { %v2733_v40 = vpack.c.bf16 %v2718_v44, %v2717_v39 }
0x1528   :  { %v2847_v41 = vrot.slane %v2733_v40, 4  ;;  %3188 = vrot.lane.b32.xlu0 %v2733_v40, %s6398_s20  ;;  %v2740_v32 = vsel %vm218_vm2, %v2733_v40, 0 }
0x1529   :  { %5843 = vmatpush3.bf16.msra.mxu0 %v2740_v32  ;;  %v2719_v33 = vpop.trf.xlu1 }
0x152a   :  { %5854 = vmatprep.subr.bf16.mxu0 %v6395_v16  ;;  %v2852_v42 = vsel %vm218_vm2, %v2847_v41, 0 }
0x152c   :  { %3299 = vrot.lane.b32.xlu0 %v2847_v41, %s6398_s20  ;;  %5845 = vmatmul.mubr.msk.bf16.vlgmr.msra.gmra.mrb[80].mxu0 %vm214_vm3, %v2692_v1 }
0x152d   :  { %5855 = vmatpush3.bf16.msra.mxu0 %v2852_v42  ;;  %v2720_v43 = vpop.trf.xlu1  ;;  %5856 = vmatprep.mubr.msk.bf16.mxu0 %vm6396_vm1, %v6395_v16 }
0x152e   :  { %5866 = vmatprep.subr.bf16.mxu0 %v6395_v16  ;;  %v2734_v46 = vpack.c.bf16 %v2720_v43, %v2719_v33 }
0x1530   :  { %3297 = vrot.lane.b32.xlu0 %v3187_v45, %s6398_s20  ;;  %v2960_v47 = vsel %vm218_vm2, %v2734_v46, 0  ;;  %v3065_v49 = vrot.slane %v2734_v46, 4 }
0x1532   :  { %v3070_v50 = vsel %vm218_vm2, %v3065_v49, 0 }
0x1534   :  { %3409 = vrot.lane.b32.xlu0 %v2734_v46, %s6398_s20  ;;  %5857 = vmatmul.mubr.msk.bf16.vlgmr.msra.gmra.mrb[84].mxu0 %vm214_vm3, %v2845_v48 }
0x1535   :  { %5867 = vmatpush3.bf16.msra.mxu0 %v2960_v47  ;;  %5868 = vmatprep.mubr.msk.bf16.mxu0 %vm6396_vm1, %v6395_v16 }
0x1536   :  { %5878 = vmatprep.subr.bf16.mxu0 %v6395_v16 }
0x1538   :  { %3407 = vrot.lane.b32.xlu0 %v3187_v45, %s6399_s21 }
0x153c   :  { %3519 = vrot.lane.b32.xlu0 %v3065_v49, %s6398_s20  ;;  %5869 = vmatmul.mubr.msk.bf16.vlgmr.msra.gmra.mrb[88].mxu0 %vm214_vm3, %v2955_v51 }
0x153d   :  { %5879 = vmatpush3.bf16.msra.mxu0 %v3070_v50  ;;  %5880 = vmatprep.mubr.msk.bf16.mxu0 %vm6396_vm1, %v6395_v16 }
0x153e   :  { %5890 = vmatprep.subr.bf16.mxu0 %v6395_v16 }
0x1540   :  { %3517 = vrot.lane.b32.xlu0 %v3187_v45, %s6400_s22 }
0x1544   :  { %5881 = vmatmul.mubr.msk.bf16.vlgmr.msra.gmra.mrb[92].mxu0 %vm214_vm3, %v3063_v52 }
0x1545   :  { %5892 = vmatprep.mubr.msk.bf16.mxu0 %vm6396_vm1, %v6395_v16 }
0x159a   :  { %v3189_v53 = vpop.permute.xlu0 %3188 }
0x159b   :  { %v3194_v54 = vsel %vm218_vm2, %v3189_v53, 0 }
0x159c   :  { %5891 = vmatpush3.bf16.msra.mxu0 %v3194_v54 }
0x159d   :  { %5902 = vmatprep.subr.bf16.mxu0 %v6395_v16 }
0x159e   :  { %v3300_v55 = vpop.permute.xlu0 %3299 }
0x159f   :  { %v3305_v56 = vsel %vm218_vm2, %v3300_v55, 0  ;;  %5893 = vmatmul.mubr.msk.bf16.vlgmr.msra.gmra.mrb[96].mxu0 %vm214_vm3, %v3187_v45 }
0x15a0   :  { %5903 = vmatpush3.bf16.msra.mxu0 %v3305_v56  ;;  %5904 = vmatprep.mubr.msk.bf16.mxu0 %vm6396_vm1, %v6395_v16 }
0x15a1   :  { %5914 = vmatprep.subr.bf16.mxu0 %v6395_v16 }
0x15a2   :  { %v3298_v57 = vpop.permute.xlu0 %3297 }
0x15a6   :  { %v3410_v58 = vpop.permute.xlu0 %3409 }
0x15a7   :  { %v3415_v59 = vsel %vm218_vm2, %v3410_v58, 0  ;;  %5905 = vmatmul.mubr.msk.bf16.vlgmr.msra.gmra.mrb[100].mxu0 %vm214_vm3, %v3298_v57 }
0x15a8   :  { %5915 = vmatpush3.bf16.msra.mxu0 %v3415_v59  ;;  %5916 = vmatprep.mubr.msk.bf16.mxu0 %vm6396_vm1, %v6395_v16 }
0x15a9   :  { %5926 = vmatprep.subr.bf16.mxu0 %v6395_v16 }
0x15aa   :  { %v3408_v60 = vpop.permute.xlu0 %3407 }
0x15ae   :  { %v3520_v61 = vpop.permute.xlu0 %3519 }
0x15af   :  { %v3525_v62 = vsel %vm218_vm2, %v3520_v61, 0  ;;  %5917 = vmatmul.mubr.msk.bf16.vlgmr.msra.gmra.mrb[104].mxu0 %vm214_vm3, %v3408_v60 }
0x15b0   :  { %5927 = vmatpush3.bf16.msra.mxu0 %v3525_v62  ;;  %5928 = vmatprep.mubr.msk.bf16.mxu0 %vm6396_vm1, %v6395_v16 }
0x15b1   :  { %5938 = vmatprep.subr.bf16.mxu0 %v6395_v16 }
0x15b2   :  { %v3518_v63 = vpop.permute.xlu0 %3517 }
0x15b7   :  { %5929 = vmatmul.mubr.msk.bf16.vlgmr.msra.gmra.mrb[108].mxu0 %vm214_vm3, %v3518_v63 }
0x15b8   :  { %5942 = vmatprep.mubr.msk.bf16.mxu0 %vm6396_vm1, %v6395_v16 }
0x15ff   :  { %v2776_v0 = vpop.f32.mrb[80].mxu0 }
0x1600   :  { %v2777_v3 = vadd.f32 %v2776_v0, %v6581_v18  ;;  %v5846_v4 = vpop.f32.mrb[81].mxu0 }
0x1601   :  { %v2779_v5 = vpop.f32.mrb[82].mxu0 }
0x1602   :  { %v5847_v6 = vpop.f32.mrb[83].mxu0  ;;  %v2782_v7 = vsel %vm214_vm3, %v2777_v3, -inf }
0x1603   :  { %2783 = vmax.xlane.f32.xlu1 %v2782_v7 }
0x1607   :  { %v2888_v8 = vpop.f32.mrb[84].mxu0 }
0x1608   :  { %v2889_v9 = vadd.f32 %v2888_v8, %v6581_v18  ;;  %v5858_v10 = vpop.f32.mrb[85].mxu0 }
0x1609   :  { %v2891_v19 = vpop.f32.mrb[86].mxu0 }
0x160a   :  { %v5859_v11 = vpop.f32.mrb[87].mxu0  ;;  %v2894_v21 = vsel %vm214_vm3, %v2889_v9, -inf }
0x160b   :  { %2895 = vmax.xlane.f32.xlu0 %v2894_v21 }
0x160f   :  { %v2996_v12 = vpop.f32.mrb[88].mxu0 }
0x1610   :  { %v2997_v13 = vadd.f32 %v2996_v12, %v6581_v18  ;;  %v5870_v14 = vpop.f32.mrb[89].mxu0 }
0x1611   :  { %v2999_v15 = vpop.f32.mrb[90].mxu0 }
0x1612   :  { %v5871_v17 = vpop.f32.mrb[91].mxu0  ;;  %v3002_v2 = vsel %vm214_vm3, %v2997_v13, -inf }
0x1613   :  { %3003 = vmax.xlane.f32.xlu0 %v3002_v2 }
0x1617   :  { %v3106_v22 = vpop.f32.mrb[92].mxu0 }
0x1618   :  { %v3107_v24 = vadd.f32 %v3106_v22, %v6581_v18  ;;  %v5882_v25 = vpop.f32.mrb[93].mxu0 }
0x1619   :  { %v3109_v26 = vpop.f32.mrb[94].mxu0 }
0x161a   :  { %v5883_v27 = vpop.f32.mrb[95].mxu0  ;;  %v3112_v28 = vsel %vm214_vm3, %v3107_v24, -inf }
0x161b   :  { %3113 = vmax.xlane.f32.xlu0 %v3112_v28 }
0x1672   :  { %v3230_v29 = vpop.f32.mrb[96].mxu0 }
0x1673   :  { %v3231_v30 = vadd.f32 %v3230_v29, %v6581_v18  ;;  %v5894_v31 = vpop.f32.mrb[97].mxu0 }
0x1674   :  { %v3233_v34 = vpop.f32.mrb[98].mxu0 }
0x1675   :  { %v5895_v35 = vpop.f32.mrb[99].mxu0  ;;  %v3236_v1 = vsel %vm214_vm3, %v3231_v30, -inf }
0x1676   :  { %3237 = vmax.xlane.f32.xlu0 %v3236_v1 }
0x167a   :  { %v3341_v37 = vpop.f32.mrb[100].mxu0 }
0x167b   :  { %v3342_v38 = vadd.f32 %v3341_v37, %v6581_v18  ;;  %v5906_v39 = vpop.f32.mrb[101].mxu0 }
0x167c   :  { %v3344_v44 = vpop.f32.mrb[102].mxu0 }
0x167d   :  { %v5907_v40 = vpop.f32.mrb[103].mxu0  ;;  %v3347_v41 = vsel %vm214_vm3, %v3342_v38, -inf }
0x167e   :  { %3348 = vmax.xlane.f32.xlu0 %v3347_v41 }
0x1682   :  { %v3451_v32 = vpop.f32.mrb[104].mxu0 }
0x1683   :  { %v3452_v33 = vadd.f32 %v3451_v32, %v6581_v18  ;;  %v5918_v42 = vpop.f32.mrb[105].mxu0 }
0x1684   :  { %v3454_v43 = vpop.f32.mrb[106].mxu0 }
0x1685   :  { %v5919_v45 = vpop.f32.mrb[107].mxu0  ;;  %v3457_v46 = vsel %vm214_vm3, %v3452_v33, -inf }
0x1686   :  { %3458 = vmax.xlane.f32.xlu1 %v3457_v46 }
0x168a   :  { %v3561_v47 = vpop.f32.mrb[108].mxu0 }
0x168b   :  { %v5930_v48 = vpop.f32.mrb[109].mxu0  ;;  %v3562_v60 = vadd.f32 %v3561_v47, %v6581_v18 }
0x168c   :  { %v3564_v49 = vpop.f32.mrb[110].mxu0 }
0x168d   :  { %v5931_v50 = vpop.f32.mrb[111].mxu0  ;;  %v3567_v61 = vsel %vm214_vm3, %v3562_v60, -inf }
0x1690   :  { %v2784_v53 = vpop.xlane.xlu1 %2783 }
0x1691   :  { %v2785_v54 = vsub.f32 %v2777_v3, %v2784_v53 }
0x1693   :  { %v2786_v57 = vmul.f32 1.442695, %v2785_v54 }
0x1694   :  { %2906 = vrot.lane.b32.xlu0 %v7041_v36, %s6403_s24 }
0x1697   :  { %2795 = vrot.lane.b32.xlu1 %v7041_v36, %s6401_s23 }
0x1698   :  { %v2896_v51 = vpop.xlane.xlu0 %2895 }
0x1699   :  { %v2897_v52 = vsub.f32 %v2889_v9, %v2896_v51 }
0x169b   :  { %v2898_v55 = vmul.f32 1.442695, %v2897_v52 }
0x169d   :  { %6293 = vpow2.f32 %v2898_v55 }
0x169e   :  { %6295 = vpow2.f32 %v2786_v57 }
0x16a0   :  { %v3004_v56 = vpop.xlane.xlu0 %3003 }
0x16a1   :  { %v3005_v58 = vsub.f32 %v2997_v13, %v3004_v56 }
0x16a3   :  { %v3006_v59 = vmul.f32 1.442695, %v3005_v58 }
0x16a5   :  { %6297 = vpow2.f32 %v3006_v59 }
0x16a7   :  { %v7114_v62 = vpop.eup %6293 }
0x16a8   :  { %v2900_v63 = vsel %vm214_vm3, %v7114_v62, 0.0  ;;  %v6296_v0 = vpop.eup %6295  ;;  %v3114_v18 = vpop.xlane.xlu0 %3113 }
0x16a9   :  { %v2788_v3 = vsel %vm214_vm3, %v6296_v0, 0.0  ;;  %v3115_v6 = vsub.f32 %v3107_v24, %v3114_v18 }
0x16ab   :  { %v3116_v7 = vmul.f32 1.442695, %v3115_v6 }
0x16ad   :  { %6299 = vpow2.f32 %v3116_v7 }
0x16af   :  { %v7119_v4 = vpop.eup %6297 }
0x16b0   :  { %v3008_v5 = vsel %vm214_vm3, %v7119_v4, 0.0 }
0x16b3   :  { %3568 = vmax.xlane.f32.xlu0 %v3567_v61 }
0x16b7   :  { %2901 = vadd.xlane.f32.xlu0 %v2900_v63  ;;  %v7127_v8 = vpop.eup %6299 }
0x16b8   :  { %v3118_v9 = vsel %vm214_vm3, %v7127_v8, 0.0 }
0x16bb   :  { %2789 = vadd.xlane.f32.xlu1 %v2788_v3 }
0x16bf   :  { %3009 = vadd.xlane.f32.xlu1 %v3008_v5 }
0x16cd   :  { %3014 = vrot.lane.b32.xlu0 %v7041_v36, %s6404_s25 }
0x16d0   :  { %3124 = vrot.lane.b32.xlu1 %v7041_v36, %s7548_s30 }
0x16ec   :  { %3119 = vadd.xlane.f32.xlu0 %v3118_v9 }
0x1703   :  { %v3238_v10 = vpop.xlane.xlu0 %3237 }
0x1704   :  { %v3239_v19 = vsub.f32 %v3231_v30, %v3238_v10  ;;  %v3248_v30 = vrot.slane %v7041_v36, 4 }
0x1706   :  { %v3240_v11 = vmul.f32 1.442695, %v3239_v19 }
0x1708   :  { %6301 = vpow2.f32 %v3240_v11 }
0x170b   :  { %v3349_v21 = vpop.xlane.xlu0 %3348 }
0x170c   :  { %v3350_v12 = vsub.f32 %v3342_v38, %v3349_v21 }
0x170e   :  { %v3351_v13 = vmul.f32 1.442695, %v3350_v12 }
0x170f   :  { %v2907_v31 = vpop.permute.xlu0 %2906 }
0x1710   :  { %6303 = vpow2.f32 %v3351_v13  ;;  %v2912_v42 = vsel %vm218_vm2, %v2907_v31, 0 }
0x1712   :  { %v7131_v14 = vpop.eup %6301 }
0x1713   :  { %v3459_v15 = vpop.xlane.xlu1 %3458  ;;  %v3242_v17 = vsel %vm214_vm3, %v7131_v14, 0.0 }
0x1714   :  { %v3460_v2 = vsub.f32 %v3452_v33, %v3459_v15  ;;  %3243 = vadd.xlane.f32.xlu0 %v3242_v17 }
0x1716   :  { %v3461_v22 = vmul.f32 1.442695, %v3460_v2 }
0x1717   :  { %v2796_v24 = vpop.permute.xlu1 %2795 }
0x1718   :  { %6305 = vpow2.f32 %v3461_v22  ;;  %v2801_v25 = vsel %vm218_vm2, %v2796_v24, 0 }
0x1719   :  { %5849 = vmatpush3.bf16.msra.mxu1 %v2801_v25 }
0x171a   :  { %v7136_v26 = vpop.eup %6303  ;;  %5860 = vmatprep.subr.bf16.mxu1 %v6395_v16 }
0x171b   :  { %v3353_v27 = vsel %vm214_vm3, %v7136_v26, 0.0 }
0x171c   :  { %3354 = vadd.xlane.f32.xlu1 %v3353_v27 }
0x1722   :  { %v7141_v28 = vpop.eup %6305 }
0x1723   :  { %v3463_v29 = vsel %vm214_vm3, %v7141_v28, 0.0 }
0x1724   :  { %3464 = vadd.xlane.f32.xlu0 %v3463_v29 }
0x172d   :  { %3359 = vrot.lane.b32.xlu1 %v3248_v30, %s6403_s24 }
0x1731   :  { %3469 = vrot.lane.b32.xlu1 %v3248_v30, %s6404_s25 }
0x1735   :  { %3579 = vrot.lane.b32.xlu1 %v3248_v30, %s7548_s30 }
0x1740   :  { %v3569_v34 = vpop.xlane.xlu0 %3568 }
0x1741   :  { %v3570_v35 = vsub.f32 %v3562_v60, %v3569_v34 }
0x1743   :  { %v3571_v1 = vmul.f32 1.442695, %v3570_v35 }
0x1744   :  { %v2902_v38 = vpop.xlane.xlu0 %2901 }
0x1745   :  { %6307 = vpow2.f32 %v3571_v1 }
0x1748   :  { %v2790_v37 = vpop.xlane.xlu1 %2789  ;;  %v3015_v45 = vpop.permute.xlu0 %3014 }
0x1749   :  { %6309 = vrcp.f32 %v2790_v37  ;;  %v3020_v48 = vsel %vm218_vm2, %v3015_v45, 0 }
0x174a   :  { %6311 = vrcp.f32 %v2902_v38 }
0x174c   :  { %v3010_v44 = vpop.xlane.xlu1 %3009 }
0x174d   :  { %6313 = vrcp.f32 %v3010_v44 }
0x174f   :  { %v7149_v39 = vpop.eup %6307 }
0x1750   :  { %v3573_v36 = vsel %vm214_vm3, %v7149_v39, 0.0  ;;  %v3125_v50 = vpop.permute.xlu1 %3124 }
0x1751   :  { %3574 = vadd.xlane.f32.xlu0 %v3573_v36  ;;  %v3130_v52 = vsel %vm218_vm2, %v3125_v50, 0 }
0x1753   :  { %v6310_v40 = vpop.eup %6309 }
0x1754   :  { %v2792_v41 = vmul.f32 %v6310_v40, %v6296_v0  ;;  %v6312_v33 = vpop.eup %6311 }
0x1755   :  { %v2904_v43 = vmul.f32 %v6312_v33, %v7114_v62 }
0x1756   :  { %v2793_v32 = vpack.c.bf16 %v2792_v41, %v2792_v41 }
0x1757   :  { %v2905_v46 = vpack.c.bf16 %v2904_v43, %v2904_v43  ;;  %v6314_v47 = vpop.eup %6313 }
0x1758   :  { %5851 = vmatmul.mubr.msk.bf16.vlgmr.msra.gmra.mrb[80].mxu1 %vm214_vm3, %v2793_v32  ;;  %v3012_v49 = vmul.f32 %v6314_v47, %v7119_v4  ;;  %v6196_v32 = vld [vmem:[%s7529_s3 + $0x10] sm:$0xff]  }
0x1759   :  { %5861 = vmatpush3.bf16.msra.mxu1 %v2912_v42  ;;  %5862 = vmatprep.mubr.msk.bf16.mxu1 %vm6396_vm1, %v6395_v16 }
0x175a   :  { %5872 = vmatprep.subr.bf16.mxu1 %v6395_v16  ;;  %v3013_v51 = vpack.c.bf16 %v3012_v49, %v3012_v49  ;;  %5939 = vmatpush3.bf16.msra.mxu0 %v6196_v32 }
0x175b   :  { %5940 = vmatprep.subr.bf16.mxu0 %v6395_v16 }
0x1760   :  { %5863 = vmatmul.mubr.msk.bf16.vlgmr.msra.gmra.mrb[84].mxu1 %vm214_vm3, %v2905_v46  ;;  %v6197_v46 = vld [vmem:[%s7529_s3 + $0x18] sm:$0xff]  }
0x1761   :  { %5873 = vmatpush3.bf16.msra.mxu1 %v3020_v48  ;;  %5874 = vmatprep.mubr.msk.bf16.mxu1 %vm6396_vm1, %v6395_v16 }
0x1762   :  { %5884 = vmatprep.subr.bf16.mxu1 %v6395_v16  ;;  %5941 = vmatpush3.bf16.msra.mxu0 %v6197_v46 }
0x1767   :  { %3249 = vrot.lane.b32.xlu0 %v3248_v30, %s6401_s23 }
0x1768   :  { %5875 = vmatmul.mubr.msk.bf16.vlgmr.msra.gmra.mrb[88].mxu1 %vm214_vm3, %v3013_v51 }
0x1769   :  { %5885 = vmatpush3.bf16.msra.mxu1 %v3130_v52  ;;  %5886 = vmatprep.mubr.msk.bf16.mxu1 %vm6396_vm1, %v6395_v16 }
0x176a   :  { %5896 = vmatprep.subr.bf16.mxu1 %v6395_v16 }
0x1779   :  { %v3120_v53 = vpop.xlane.xlu0 %3119 }
0x177a   :  { %6315 = vrcp.f32 %v3120_v53 }
0x1784   :  { %v6316_v54 = vpop.eup %6315 }
0x1785   :  { %v3122_v55 = vmul.f32 %v6316_v54, %v7127_v8 }
0x1787   :  { %v3123_v56 = vpack.c.bf16 %v3122_v55, %v3122_v55 }
0x1789   :  { %5887 = vmatmul.mubr.msk.bf16.vlgmr.msra.gmra.mrb[92].mxu1 %vm214_vm3, %v3123_v56 }
0x178a   :  { %5898 = vmatprep.mubr.msk.bf16.mxu1 %vm6396_vm1, %v6395_v16 }
0x17a1   :  { %v3244_v57 = vpop.xlane.xlu0 %3243 }
0x17a2   :  { %6317 = vrcp.f32 %v3244_v57 }
0x17a9   :  { %v3355_v58 = vpop.xlane.xlu1 %3354 }
0x17aa   :  { %6319 = vrcp.f32 %v3355_v58 }
0x17ac   :  { %v6318_v60 = vpop.eup %6317 }
0x17ad   :  { %v3246_v62 = vmul.f32 %v6318_v60, %v7131_v14  ;;  %v3360_v3 = vpop.permute.xlu1 %3359 }
0x17ae   :  { %v3365_v18 = vsel %vm218_vm2, %v3360_v3, 0 }
0x17af   :  { %v3247_v4 = vpack.c.bf16 %v3246_v62, %v3246_v62 }
0x17b1   :  { %v3465_v59 = vpop.xlane.xlu0 %3464  ;;  %v3470_v7 = vpop.permute.xlu1 %3469 }
0x17b2   :  { %6321 = vrcp.f32 %v3465_v59  ;;  %v3475_v10 = vsel %vm218_vm2, %v3470_v7, 0 }
0x17b4   :  { %v6320_v5 = vpop.eup %6319 }
0x17b5   :  { %v3357_v6 = vmul.f32 %v6320_v5, %v7136_v26  ;;  %v3580_v11 = vpop.permute.xlu1 %3579 }
0x17b6   :  { %v3585_v13 = vsel %vm218_vm2, %v3580_v11, 0 }
0x17b7   :  { %v3358_v8 = vpack.c.bf16 %v3357_v6, %v3357_v6 }
0x17bc   :  { %v6322_v9 = vpop.eup %6321 }
0x17bd   :  { %v3467_v19 = vmul.f32 %v6322_v9, %v7141_v28 }
0x17bf   :  { %v3468_v21 = vpack.c.bf16 %v3467_v19, %v3467_v19  ;;  %v5315_v19 = vld [vmem:[%s7538_s12 + $0x8] ss:$0 sm:$0xff] }
0x17de   :  { %v3575_v61 = vpop.xlane.xlu0 %3574 }
0x17df   :  { %6323 = vrcp.f32 %v3575_v61 }
0x17e2   :  { %v3250_v63 = vpop.permute.xlu0 %3249 }
0x17e3   :  { %v3255_v0 = vsel %vm218_vm2, %v3250_v63, 0 }
0x17e4   :  { %5897 = vmatpush3.bf16.msra.mxu1 %v3255_v0 }
0x17e5   :  { %5908 = vmatprep.subr.bf16.mxu1 %v6395_v16 }
0x17e7   :  { %5899 = vmatmul.mubr.msk.bf16.vlgmr.msra.gmra.mrb[96].mxu1 %vm214_vm3, %v3247_v4 }
0x17e8   :  { %5909 = vmatpush3.bf16.msra.mxu1 %v3365_v18  ;;  %5910 = vmatprep.mubr.msk.bf16.mxu1 %vm6396_vm1, %v6395_v16 }
0x17e9   :  { %5920 = vmatprep.subr.bf16.mxu1 %v6395_v16  ;;  %v6324_v12 = vpop.eup %6323 }
0x17ea   :  { %v3577_v14 = vmul.f32 %v6324_v12, %v7149_v39 }
0x17ec   :  { %v3578_v15 = vpack.c.bf16 %v3577_v14, %v3577_v14 }
0x17ef   :  { %5911 = vmatmul.mubr.msk.bf16.vlgmr.msra.gmra.mrb[100].mxu1 %vm214_vm3, %v3358_v8 }
0x17f0   :  { %5921 = vmatpush3.bf16.msra.mxu1 %v3475_v10  ;;  %5922 = vmatprep.mubr.msk.bf16.mxu1 %vm6396_vm1, %v6395_v16  ;;  %v6369_v10 = vld [vmem:[%s7527_s1] sm:$0xff]  }
0x17f1   :  { %5932 = vmatprep.subr.bf16.mxu1 %v6395_v16 }
0x17f7   :  { %5923 = vmatmul.mubr.msk.bf16.vlgmr.msra.gmra.mrb[104].mxu1 %vm214_vm3, %v3468_v21 }
0x17f8   :  { %5933 = vmatpush3.bf16.msra.mxu1 %v3585_v13  ;;  %5934 = vmatprep.mubr.msk.bf16.mxu1 %vm6396_vm1, %v6395_v16 }
0x17f9   :  { %5946 = vmatprep.subr.bf16.mxu1 %v6395_v16 }
0x17ff   :  { %5935 = vmatmul.mubr.msk.bf16.vlgmr.msra.gmra.mrb[108].mxu1 %vm214_vm3, %v3578_v15 }
0x1800   :  { %5950 = vmatprep.mubr.msk.bf16.mxu1 %vm6396_vm1, %v6395_v16 }
0x182b   :  { %v2837_v17 = vpop.f32.mrb[80].mxu1 }
0x182c   :  { %v5852_v2 = vpop.f32.mrb[81].mxu1 }
0x182d   :  { %v2840_v22 = vpop.f32.mrb[82].mxu1 }
0x182e   :  { %v5853_v24 = vpop.f32.mrb[83].mxu1 }
0x1833   :  { %v2948_v25 = vpop.f32.mrb[84].mxu1 }
0x1834   :  { %v5864_v26 = vpop.f32.mrb[85].mxu1 }
0x1835   :  { %v2951_v27 = vpop.f32.mrb[86].mxu1  ;;  %v6199_v26 = vld [vmem:[%s7531_s5 + $0x20] sm:$0xff]  }
0x1836   :  { %v5865_v28 = vpop.f32.mrb[87].mxu1 }
0x183b   :  { %v3056_v29 = vpop.f32.mrb[88].mxu1 }
0x183c   :  { %v5876_v30 = vpop.f32.mrb[89].mxu1 }
0x183d   :  { %v3059_v31 = vpop.f32.mrb[90].mxu1 }
0x183e   :  { %v5877_v34 = vpop.f32.mrb[91].mxu1 }
0x185c   :  { %v3166_v35 = vpop.f32.mrb[92].mxu1 }
0x185d   :  { %v5888_v1 = vpop.f32.mrb[93].mxu1 }
0x185e   :  { %v3169_v37 = vpop.f32.mrb[94].mxu1 }
0x185f   :  { %v5889_v38 = vpop.f32.mrb[95].mxu1 }
0x18ba   :  { %v3291_v39 = vpop.f32.mrb[96].mxu1 }
0x18bb   :  { %v5900_v36 = vpop.f32.mrb[97].mxu1 }
0x18bc   :  { %v3294_v44 = vpop.f32.mrb[98].mxu1  ;;  %v6202_v36 = vld [vmem:[%s7530_s4 + $0x18] sm:$0xff]  }
0x18bd   :  { %v5901_v40 = vpop.f32.mrb[99].mxu1  ;;  %v5335_v44 = vld [vmem:[%s7538_s12 + $0xa] ss:$0 sm:$0xff] }
0x18c2   :  { %v3401_v41 = vpop.f32.mrb[100].mxu1 }
0x18c3   :  { %v6145_v33 = vpack.i.bf16 %v3401_v41, %v2948_v25  ;;  %v5912_v42 = vpop.f32.mrb[101].mxu1  ;;  %v6198_v25 = vld [vmem:[%s7531_s5 + $0x18] sm:$0xff]  }
0x18c4   :  { %v3404_v43 = vpop.f32.mrb[102].mxu1  ;;  %5954 = vmatprep.subr.bf16.mxu0 %v6198_v25 }
0x18c5   :  { %6146 = vrot.lane.b32.xlu1 %v6145_v33, %s6406_s28  ;;  %v5913_v45 = vpop.f32.mrb[103].mxu1 }
0x18ca   :  { %v3511_v47 = vpop.f32.mrb[104].mxu1 }
0x18cb   :  { %v6150_v48 = vpack.i.bf16 %v3511_v47, %v3056_v29  ;;  %v5924_v49 = vpop.f32.mrb[105].mxu1 }
0x18cc   :  { %v3514_v50 = vpop.f32.mrb[106].mxu1 }
0x18cd   :  { %6151 = vrot.lane.b32.xlu1 %v6150_v48, %s6407_s29  ;;  %v5925_v51 = vpop.f32.mrb[107].mxu1 }
0x18d2   :  { %v3621_v52 = vpop.f32.mrb[108].mxu1 }
0x18d3   :  { %v6155_v53 = vpack.i.bf16 %v3621_v52, %v3166_v35  ;;  %v5936_v54 = vpop.f32.mrb[109].mxu1 }
0x18d4   :  { %v3624_v55 = vpop.f32.mrb[110].mxu1 }
0x18d5   :  { %6156 = vrot.lane.b32.xlu0 %v6155_v53, %s6408_s15  ;;  %v5937_v56 = vpop.f32.mrb[111].mxu1 }
0x18d6   :  { %v5319_v56 = vld [vmem:[%s7536_s10 + $0x4] ss:$0 sm:$0xff] }
0x1937   :  { %v6147_v57 = vpop.permute.xlu1 %6146 }
0x1938   :  { %v6149_v59 = vunpack.i.h.bf16 %v6147_v57  ;;  %v6148_v60 = vunpack.i.l.bf16 %v6147_v57 }
0x193a   :  { %v3639_v0 = vsel %vm214_vm3, %v3291_v39, %v6149_v59  ;;  %v3184_v3 = vsel %vm214_vm3, %v2837_v17, %v6148_v60  ;;  %v6201_v39 = vld [vmem:[%s7530_s4 + $0x10] sm:$0xff]  }
0x193b   :  { %5947 = vmatpush3.bf16.msra.mxu1 %v6201_v39 }
0x193c   :  { %5948 = vmatprep.subr.bf16.mxu1 %v6395_v16 }
0x193f   :  { %v6152_v58 = vpop.permute.xlu1 %6151  ;;  %5949 = vmatpush3.bf16.msra.mxu1 %v6202_v36 }
0x1940   :  { %v6154_v61 = vunpack.i.h.bf16 %v6152_v58  ;;  %v6153_v62 = vunpack.i.l.bf16 %v6152_v58  ;;  %5964 = vmatprep.subr.bf16.mxu1 %v6395_v16 }
0x1942   :  { %v3640_v18 = vsel %vm665_vm5, %v3639_v0, %v6154_v61  ;;  %v3185_v6 = vsel %vm665_vm5, %v3184_v3, %v6153_v62  ;;  %v5320_v61 = vld [vmem:[%s7537_s11 + $0x4] ss:$0 sm:$0xff] }
0x1947   :  { %v6157_v63 = vpop.permute.xlu0 %6156 }
0x1948   :  { %v6159_v4 = vunpack.i.h.bf16 %v6157_v63  ;;  %v6158_v5 = vunpack.i.l.bf16 %v6157_v63 }
0x194a   :  { %v3641_v7 = vsel %vm667_vm6, %v3640_v18, %v6159_v4  ;;  %v3186_v8 = vsel %vm667_vm6, %v3185_v6, %v6158_v5 }
0x194b   :  { %v3647_v9 = vpack.c.bf16 %v3641_v7, %v3186_v8 }
0x194d   :  { %5943 = vmatmul.mubr.msk.bf16.vlgmr.msra.gmra.mrb[112].mxu0 %vm60_vm0, %v3647_v9  ;;  %v5325_v9 = vld [vmem:[%s7538_s12 + $0x9] ss:$0 sm:$0xff] }
0x194e   :  { %5960 = vmatprep.mubr.msk.bf16.mxu0 %vm1339_vm7, %v6369_v10  ;;  %5955 = vmatpush3.bf16.msra.mxu0 %v6198_v25 }
0x194f   :  { %5956 = vmatprep.subr.bf16.mxu0 %v6199_v26 }
0x1952   :  { %5957 = vmatpush3.bf16.msra.mxu0 %v6199_v26 }
0x1a20   :  { %v3702_v11 = vpop.f32.mrb[112].mxu0 }
0x1a21   :  { %v3703_v21 = vadd.f32 %v5315_v19, %v3702_v11  ;;  %v5944_v12 = vpop.f32.mrb[113].mxu0 }
0x1a22   :  { %v3705_v13 = vpop.f32.mrb[114].mxu0 }
0x1a23   :  { %v3709_v14 = vadd.f32 %v3703_v21, %v7028_v23  ;;  %v3706_v15 = vadd.f32 %v5315_v19, %v3705_v13  ;;  %v5945_v17 = vpop.f32.mrb[115].mxu0  ;;  %v6200_v23 = vld [vmem:[%s7531_s5 + $0x28] sm:$0xff]  }
0x1a24   :  { %5958 = vmatprep.subr.bf16.mxu0 %v6200_v23 }
0x1a25   :  { %v3710_v2 = vadd.f32 %v3706_v15, %v7030_v20  ;;  %v3711_v22 = vsel %vm60_vm0, %v3709_v14, 0.0  ;;  %5959 = vmatpush3.bf16.msra.mxu0 %v6200_v23  ;;  %v6370_v20 = vld [vmem:[%s7527_s1 + $0x8] sm:$0xff]  }
0x1a26   :  { %3712 = vadd.xlane.f32.xlu1 %v3711_v22  ;;  %5976 = vmatprep.subr.bf16.mxu0 %v6395_v16 }
0x1a27   :  { %v3714_v24 = vsel %vm60_vm0, %v3710_v2, 0.0 }
0x1a28   :  { %3715 = vadd.xlane.f32.xlu0 %v3714_v24  ;;  %5961 = vmatmul.mubr.msk.bf16.vlgmr.msra.gmra.mrb[116].mxu0 %vm1339_vm7, %v6370_v20 }
0x1a29   :  { %5978 = vmatprep.mubr.msk.bf16.mxu0 %vm6396_vm1, %v6395_v16 }
0x1ab3   :  { %v3713_v27 = vpop.xlane.xlu1 %3712 }
0x1ab4   :  { %v3717_v28 = vmul.f32 0.03125, %v3713_v27 }
0x1ab5   :  { %v3716_v29 = vpop.xlane.xlu0 %3715 }
0x1ab6   :  { %v3719_v30 = vsub.f32 %v3709_v14, %v3717_v28  ;;  %v3718_v31 = vmul.f32 0.03125, %v3716_v29 }
0x1ab8   :  { %v3720_v34 = vsub.f32 %v3710_v2, %v3718_v31  ;;  %v3721_v35 = vmul.f32 %v3719_v30, %v3719_v30 }
0x1aba   :  { %v3723_v1 = vsel %vm60_vm0, %v3721_v35, 0.0  ;;  %v3722_v37 = vmul.f32 %v3720_v34, %v3720_v34 }
0x1abb   :  { %3724 = vadd.xlane.f32.xlu0 %v3723_v1 }
0x1abc   :  { %v3726_v38 = vsel %vm60_vm0, %v3722_v37, 0.0 }
0x1abd   :  { %3727 = vadd.xlane.f32.xlu1 %v3726_v38 }
0x1afb   :  { %v5962_v40 = vpop.f32.mrb[116].mxu0 }
0x1afc   :  { %v3884_v41 = vpop.f32.mrb[117].mxu0  ;;  %v3893_v42 = vadd.f32 %v5962_v40, %v5335_v44 }
0x1afd   :  { %v3885_v32 = vadd.f32 %v5335_v44, %v3884_v41  ;;  %v5963_v33 = vpop.f32.mrb[118].mxu0 }
0x1afe   :  { %v3896_v43 = vadd.f32 %v5963_v33, %v5335_v44  ;;  %v3887_v45 = vpop.f32.mrb[119].mxu0 }
0x1aff   :  { %3900 = vxpose.xlu0.b32.start [1/4] (short) (narrow) %v3885_v32, 32  ;;  %v3888_v46 = vadd.f32 %v5335_v44, %v3887_v45 }
0x1b00   :  { %v7256_v47 = vpack.c.bf16 %v3896_v43, %v3893_v42 }
0x1b01   :  { %v7258_v48 = vpack.c.bf16 %v3888_v46, %v3885_v32 }
0x1b03   :  { %3901 = vxpose.xlu0.b32.cont [2/4] (short) (narrow) %v3888_v46, 32 }
0x1b07   :  { %3902 = vxpose.xlu0.b32.cont [3/4] (short) (narrow) %v3893_v42, 32 }
0x1b0b   :  { %3903 = vxpose.xlu0.b32.end [4/4] (short) (narrow) %v3896_v43, 32 }
0x1b48   :  { %v3725_v49 = vpop.xlane.xlu0 %3724 }
0x1b49   :  { %v3729_v50 = vmul.f32 0.03125, %v3725_v49 }
0x1b4a   :  { %v3728_v51 = vpop.xlane.xlu1 %3727 }
0x1b4b   :  { %v3731_v52 = vadd.f32 1e-05, %v3729_v50  ;;  %v3730_v53 = vmul.f32 0.03125, %v3728_v51 }
0x1b4d   :  { %6325 = vrsqrt.f32 %v3731_v52  ;;  %v3732_v54 = vadd.f32 1e-05, %v3730_v53 }
0x1b4f   :  { %6327 = vrsqrt.f32 %v3732_v54 }
0x1b57   :  { %v6326_v55 = vpop.eup %6325 }
0x1b58   :  { %v3735_v57 = vmul.f32 %v6326_v55, %v3719_v30 }
0x1b59   :  { %v6328_v58 = vpop.eup %6327 }
0x1b5a   :  { %v3742_v59 = vmul.f32 %v5319_v56, %v3735_v57  ;;  %v3736_v60 = vmul.f32 %v6328_v58, %v3720_v34 }
0x1b5c   :  { %v3743_v62 = vmul.f32 %v5319_v56, %v3736_v60  ;;  %v7266_v63 = vadd.f32 %v5320_v61, %v3742_v59 }
0x1b5e   :  { %v7268_v0 = vadd.f32 %v5320_v61, %v3743_v62 }
0x1b60   :  { %v3756_v3 = vpack.c.bf16 %v7268_v0, %v7266_v63 }
0x1b62   :  { %5951 = vmatmul.mubr.msk.bf16.vlgmr.msra.gmra.mrb[112].mxu1 %vm60_vm0, %v3756_v3 }
0x1b63   :  { %5966 = vmatprep.mubr.msk.bf16.mxu1 %vm6396_vm1, %v6395_v16 }
0x1b7f   :  { %v3916_v4 = vpop.trf.xlu0 }
0x1b83   :  { %v3917_v5 = vpop.trf.xlu0 }
0x1b84   :  { %v3932_v18 = vpack.c.bf16 %v3917_v5, %v3916_v4 }
0x1b86   :  { %v3940_v6 = vsel %vm218_vm2, %v3932_v18, 0  ;;  %v4045_v7 = vrot.slane %v3932_v18, 4 }
0x1b87   :  { %5965 = vmatpush3.bf16.msra.mxu1 %v3940_v6  ;;  %v3918_v2 = vpop.trf.xlu0 }
0x1b88   :  { %5970 = vmatprep.subr.bf16.mxu1 %v6395_v16  ;;  %v4050_v8 = vsel %vm218_vm2, %v4045_v7, 0 }
0x1b89   :  { %5977 = vmatpush3.bf16.msra.mxu0 %v4050_v8 }
0x1b8a   :  { %5988 = vmatprep.subr.bf16.mxu0 %v6395_v16 }
0x1b8b   :  { %v3919_v22 = vpop.trf.xlu0 }
0x1b8c   :  { %v3933_v25 = vpack.c.bf16 %v3919_v22, %v3918_v2 }
0x1b8e   :  { %v4259_v26 = vrot.slane %v3933_v25, 4  ;;  %v4156_v20 = vsel %vm218_vm2, %v3933_v25, 0 }
0x1b90   :  { %v4264_v29 = vsel %vm218_vm2, %v4259_v26, 0 }
0x1c35   :  { %v3811_v10 = vpop.f32.mrb[112].mxu1 }
0x1c36   :  { %v3812_v19 = vadd.f32 %v5325_v9, %v3811_v10  ;;  %v5952_v11 = vpop.f32.mrb[113].mxu1 }
0x1c37   :  { %v3814_v21 = vpop.f32.mrb[114].mxu1 }
0x1c38   :  { %v3815_v12 = vadd.f32 %v5325_v9, %v3814_v21  ;;  %v5953_v13 = vpop.f32.mrb[115].mxu1  ;;  %v3818_v14 = vmul.f32 0.35355338, %v3812_v19 }
0x1c3a   :  { %v3819_v15 = vmul.f32 0.35355338, %v3815_v12 }
0x1c3c   :  { %v3899_v17 = vpack.c.bf16 %v3819_v15, %v3818_v14 }
0x1c3e   :  { %4042 = vrot.lane.b32.xlu1 %v3899_v17, %s6398_s20  ;;  %5967 = vmatmul.mubr.msk.bf16.vlgmr.msra.gmra.mrb[116].mxu1 %vm214_vm3, %v3899_v17  ;;  %v4379_v24 = vrot.slane %v3899_v17, 4 }
0x1c3f   :  { %5972 = vmatprep.mubr.msk.bf16.mxu1 %vm6396_vm1, %v6395_v16 }
0x1c42   :  { %4150 = vrot.lane.b32.xlu1 %v3899_v17, %s6399_s21 }
0x1c46   :  { %4256 = vrot.lane.b32.xlu1 %v3899_v17, %s6400_s22 }
0x1c4a   :  { %4380 = vrot.lane.b32.xlu1 %v3932_v18, %s6399_s21 }
0x1c4e   :  { %4489 = vrot.lane.b32.xlu1 %v4045_v7, %s6399_s21 }
0x1c52   :  { %4487 = vrot.lane.b32.xlu1 %v4379_v24, %s6398_s20  ;;  %s7549_s20 = smov 88  }
0x1c56   :  { %4597 = vrot.lane.b32.xlu1 %v3933_v25, %s6399_s21 }
0x1c5a   :  { %4595 = vrot.lane.b32.xlu1 %v4379_v24, %s6399_s21 }
0x1c5e   :  { %4705 = vrot.lane.b32.xlu1 %v4259_v26, %s6399_s21  ;;  %s7550_s21 = smov 80  }
0x1c62   :  { %4703 = vrot.lane.b32.xlu1 %v4379_v24, %s6400_s22  ;;  %s7551_s22 = smov 72  }
0x1cb0   :  { %v4043_v23 = vpop.permute.xlu1 %4042 }
0x1cb1   :  { %5979 = vmatmul.mubr.msk.bf16.vlgmr.msra.gmra.mrb[120].mxu0 %vm214_vm3, %v4043_v23 }
0x1cb2   :  { %5989 = vmatpush3.bf16.msra.mxu0 %v4156_v20  ;;  %5990 = vmatprep.mubr.msk.bf16.mxu0 %vm6396_vm1, %v6395_v16 }
0x1cb3   :  { %6000 = vmatprep.subr.bf16.mxu0 %v6395_v16 }
0x1cb4   :  { %v4151_v27 = vpop.permute.xlu1 %4150 }
0x1cb8   :  { %v4257_v28 = vpop.permute.xlu1 %4256 }
0x1cb9   :  { %5991 = vmatmul.mubr.msk.bf16.vlgmr.msra.gmra.mrb[124].mxu0 %vm214_vm3, %v4151_v27 }
0x1cba   :  { %6001 = vmatpush3.bf16.msra.mxu0 %v4264_v29  ;;  %6002 = vmatprep.mubr.msk.bf16.mxu0 %vm6396_vm1, %v6395_v16 }
0x1cbb   :  { %6012 = vmatprep.subr.bf16.mxu0 %v6395_v16 }
0x1cbc   :  { %v4381_v30 = vpop.permute.xlu1 %4380 }
0x1cbd   :  { %v4386_v31 = vsel %vm218_vm2, %v4381_v30, 0 }
0x1cc0   :  { %v4490_v34 = vpop.permute.xlu1 %4489 }
0x1cc1   :  { %6003 = vmatmul.mubr.msk.bf16.vlgmr.msra.gmra.mrb[128].mxu0 %vm214_vm3, %v4257_v28  ;;  %v4495_v1 = vsel %vm218_vm2, %v4490_v34, 0 }
0x1cc2   :  { %6013 = vmatpush3.bf16.msra.mxu0 %v4386_v31  ;;  %6014 = vmatprep.mubr.msk.bf16.mxu0 %vm6396_vm1, %v6395_v16 }
0x1cc3   :  { %6024 = vmatprep.subr.bf16.mxu0 %v6395_v16 }
0x1cc4   :  { %v4488_v35 = vpop.permute.xlu1 %4487 }
0x1cc8   :  { %v4598_v37 = vpop.permute.xlu1 %4597 }
0x1cc9   :  { %6015 = vmatmul.mubr.msk.bf16.vlgmr.msra.gmra.mrb[132].mxu0 %vm214_vm3, %v4379_v24  ;;  %v4603_v38 = vsel %vm218_vm2, %v4598_v37, 0 }
0x1cca   :  { %6025 = vmatpush3.bf16.msra.mxu0 %v4495_v1  ;;  %6026 = vmatprep.mubr.msk.bf16.mxu0 %vm6396_vm1, %v6395_v16 }
0x1ccb   :  { %6036 = vmatprep.subr.bf16.mxu0 %v6395_v16 }
0x1ccc   :  { %v4596_v39 = vpop.permute.xlu1 %4595 }
0x1cd0   :  { %v4706_v36 = vpop.permute.xlu1 %4705 }
0x1cd1   :  { %6027 = vmatmul.mubr.msk.bf16.vlgmr.msra.gmra.mrb[136].mxu0 %vm214_vm3, %v4488_v35  ;;  %v4711_v44 = vsel %vm218_vm2, %v4706_v36, 0 }
0x1cd2   :  { %6037 = vmatpush3.bf16.msra.mxu0 %v4603_v38  ;;  %6038 = vmatprep.mubr.msk.bf16.mxu0 %vm6396_vm1, %v6395_v16 }
0x1cd3   :  { %6048 = vmatprep.subr.bf16.mxu0 %v6395_v16 }
0x1cd4   :  { %v4704_v40 = vpop.permute.xlu1 %4703 }
0x1cd9   :  { %6039 = vmatmul.mubr.msk.bf16.vlgmr.msra.gmra.mrb[140].mxu0 %vm214_vm3, %v4596_v39 }
0x1cda   :  { %6049 = vmatpush3.bf16.msra.mxu0 %v4711_v44  ;;  %6050 = vmatprep.mubr.msk.bf16.mxu0 %vm6396_vm1, %v6395_v16 }
0x1cdb   :  { %6060 = vmatprep.subr.bf16.mxu0 %v6395_v16 }
0x1ce1   :  { %6051 = vmatmul.mubr.msk.bf16.vlgmr.msra.gmra.mrb[144].mxu0 %vm214_vm3, %v4704_v40 }
0x1ce2   :  { %6064 = vmatprep.mubr.msk.bf16.mxu0 %vm6396_vm1, %v6395_v16 }
0x1d11   :  { %v3976_v41 = vpop.f32.mrb[116].mxu1 }
0x1d12   :  { %v5968_v32 = vpop.f32.mrb[117].mxu1  ;;  %v3982_v33 = vsel %vm665_vm5, %v3976_v41, -inf }
0x1d13   :  { %3983 = vmax.xlane.f32.xlu1 %v3982_v33  ;;  %v3979_v42 = vpop.f32.mrb[118].mxu1 }
0x1d14   :  { %v5969_v43 = vpop.f32.mrb[119].mxu1 }
0x1d84   :  { %v4086_v45 = vpop.f32.mrb[120].mxu0 }
0x1d85   :  { %v5980_v46 = vpop.f32.mrb[121].mxu0  ;;  %v4092_v49 = vsel %vm665_vm5, %v4086_v45, -inf }
0x1d86   :  { %4093 = vmax.xlane.f32.xlu0 %v4092_v49  ;;  %v4089_v50 = vpop.f32.mrb[122].mxu0 }
0x1d87   :  { %v5981_v51 = vpop.f32.mrb[123].mxu0 }
0x1d8c   :  { %v4192_v52 = vpop.f32.mrb[124].mxu0 }
0x1d8d   :  { %v5992_v53 = vpop.f32.mrb[125].mxu0  ;;  %v4198_v54 = vsel %vm665_vm5, %v4192_v52, -inf }
0x1d8e   :  { %v4195_v55 = vpop.f32.mrb[126].mxu0  ;;  %4199 = vmax.xlane.f32.xlu1 %v4198_v54 }
0x1d8f   :  { %v5993_v56 = vpop.f32.mrb[127].mxu0 }
0x1d94   :  { %v4300_v57 = vpop.f32.mrb[128].mxu0 }
0x1d95   :  { %v6004_v58 = vpop.f32.mrb[129].mxu0  ;;  %v4306_v59 = vsel %vm665_vm5, %v4300_v57, -inf }
0x1d96   :  { %v4303_v60 = vpop.f32.mrb[130].mxu0  ;;  %4307 = vmax.xlane.f32.xlu1 %v4306_v59 }
0x1d97   :  { %v6005_v61 = vpop.f32.mrb[131].mxu0 }
0x1d9c   :  { %v4422_v62 = vpop.f32.mrb[132].mxu0 }
0x1d9d   :  { %v6016_v3 = vpop.f32.mrb[133].mxu0  ;;  %v4428_v4 = vsel %vm665_vm5, %v4422_v62, -inf }
0x1d9e   :  { %v4425_v5 = vpop.f32.mrb[134].mxu0  ;;  %4429 = vmax.xlane.f32.xlu1 %v4428_v4 }
0x1d9f   :  { %v6017_v18 = vpop.f32.mrb[135].mxu0 }
0x1da0   :  { %v3984_v22 = vpop.xlane.xlu1 %3983 }
0x1da1   :  { %v3985_v24 = vsub.f32 %v3976_v41, %v3984_v22 }
0x1da3   :  { %v3986_v25 = vmul.f32 1.442695, %v3985_v24 }
0x1da4   :  { %v4531_v6 = vpop.f32.mrb[136].mxu0 }
0x1da5   :  { %v6028_v7 = vpop.f32.mrb[137].mxu0  ;;  %v4537_v8 = vsel %vm665_vm5, %v4531_v6, -inf  ;;  %6329 = vpow2.f32 %v3986_v25 }
0x1da6   :  { %4538 = vmax.xlane.f32.xlu0 %v4537_v8  ;;  %v4534_v9 = vpop.f32.mrb[138].mxu0 }
0x1da7   :  { %v6029_v10 = vpop.f32.mrb[139].mxu0 }
0x1dac   :  { %v4639_v19 = vpop.f32.mrb[140].mxu0 }
0x1dad   :  { %v6040_v11 = vpop.f32.mrb[141].mxu0  ;;  %v4645_v21 = vsel %vm665_vm5, %v4639_v19, -inf }
0x1dae   :  { %v4642_v12 = vpop.f32.mrb[142].mxu0  ;;  %4646 = vmax.xlane.f32.xlu1 %v4645_v21 }
0x1daf   :  { %v6041_v13 = vpop.f32.mrb[143].mxu0  ;;  %v7343_v23 = vpop.eup %6329 }
0x1db0   :  { %v3988_v20 = vsel %vm665_vm5, %v7343_v23, 0.0 }
0x1db4   :  { %v7335_v14 = vpop.f32.mrb[144].mxu0 }
0x1db5   :  { %v6052_v15 = vpop.f32.mrb[145].mxu0  ;;  %v4753_v26 = vsel %vm665_vm5, %v7335_v14, -inf }
0x1db6   :  { %v4750_v17 = vpop.f32.mrb[146].mxu0 }
0x1db7   :  { %v6053_v2 = vpop.f32.mrb[147].mxu0 }
0x1dbc   :  { %4104 = vrot.lane.b32.xlu0 %v7258_v48, %s7549_s20 }
0x1dbf   :  { %3995 = vrot.lane.b32.xlu1 %v7258_v48, %s6397_s19 }
0x1ddb   :  { %4754 = vmax.xlane.f32.xlu0 %v4753_v26 }
0x1de3   :  { %3989 = vadd.xlane.f32.xlu1 %v3988_v20 }
0x1e13   :  { %v4094_v27 = vpop.xlane.xlu0 %4093 }
0x1e14   :  { %v4095_v28 = vsub.f32 %v4086_v45, %v4094_v27 }
0x1e16   :  { %v4096_v29 = vmul.f32 1.442695, %v4095_v28 }
0x1e18   :  { %6331 = vpow2.f32 %v4096_v29 }
0x1e1b   :  { %v4200_v30 = vpop.xlane.xlu1 %4199 }
0x1e1c   :  { %v4201_v31 = vsub.f32 %v4192_v52, %v4200_v30 }
0x1e1e   :  { %v4202_v34 = vmul.f32 1.442695, %v4201_v31 }
0x1e20   :  { %6333 = vpow2.f32 %v4202_v34 }
0x1e22   :  { %v7347_v35 = vpop.eup %6331 }
0x1e23   :  { %v4098_v1 = vsel %vm665_vm5, %v7347_v35, 0.0  ;;  %v4308_v39 = vpop.xlane.xlu1 %4307 }
0x1e24   :  { %4099 = vadd.xlane.f32.xlu0 %v4098_v1  ;;  %v4309_v41 = vsub.f32 %v4300_v57, %v4308_v39 }
0x1e26   :  { %v4310_v32 = vmul.f32 1.442695, %v4309_v41 }
0x1e28   :  { %6335 = vpow2.f32 %v4310_v32 }
0x1e2a   :  { %v7351_v37 = vpop.eup %6333 }
0x1e2b   :  { %v4204_v38 = vsel %vm665_vm5, %v7351_v37, 0.0  ;;  %v4430_v36 = vpop.xlane.xlu1 %4429 }
0x1e2c   :  { %4205 = vadd.xlane.f32.xlu1 %v4204_v38  ;;  %v4431_v33 = vsub.f32 %v4422_v62, %v4430_v36 }
0x1e2e   :  { %v4432_v45 = vmul.f32 1.442695, %v4431_v33 }
0x1e30   :  { %6337 = vpow2.f32 %v4432_v45 }
0x1e32   :  { %v6336_v51 = vpop.eup %6335 }
0x1e33   :  { %v4539_v42 = vpop.xlane.xlu0 %4538 }
0x1e34   :  { %v4540_v43 = vsub.f32 %v4531_v6, %v4539_v42 }
0x1e36   :  { %v4541_v49 = vmul.f32 1.442695, %v4540_v43 }
0x1e37   :  { %v4105_v58 = vpop.permute.xlu0 %4104 }
0x1e38   :  { %6339 = vpow2.f32 %v4541_v49 }
0x1e3a   :  { %4210 = vrot.lane.b32.xlu0 %v7258_v48, %s7550_s21  ;;  %v7361_v52 = vpop.eup %6337 }
0x1e3b   :  { %v4647_v44 = vpop.xlane.xlu1 %4646  ;;  %v4434_v54 = vsel %vm665_vm5, %v7361_v52, 0.0 }
0x1e3c   :  { %v4648_v46 = vsub.f32 %v4639_v19, %v4647_v44 }
0x1e3d   :  { %4318 = vrot.lane.b32.xlu1 %v7258_v48, %s7551_s22  ;;  %v4312_v48 = vsel %vm665_vm5, %v6336_v51, 0.0 }
0x1e3e   :  { %v4649_v50 = vmul.f32 1.442695, %v4648_v46 }
0x1e3f   :  { %v3996_v40 = vpop.permute.xlu1 %3995 }
0x1e40   :  { %5971 = vmatpush3.bf16.msra.mxu1 %v3996_v40  ;;  %6341 = vpow2.f32 %v4649_v50 }
0x1e41   :  { %5982 = vmatprep.subr.bf16.mxu1 %v6395_v16 }
0x1e42   :  { %v7363_v53 = vpop.eup %6339 }
0x1e43   :  { %v4543_v56 = vsel %vm665_vm5, %v7363_v53, 0.0 }
0x1e4a   :  { %v7367_v55 = vpop.eup %6341 }
0x1e4b   :  { %v4651_v57 = vsel %vm665_vm5, %v7367_v55, 0.0 }
0x1e59   :  { %4313 = vadd.xlane.f32.xlu0 %v4312_v48 }
0x1e5d   :  { %4435 = vadd.xlane.f32.xlu0 %v4434_v54 }
0x1e61   :  { %4544 = vadd.xlane.f32.xlu1 %v4543_v56  ;;  %4652 = vadd.xlane.f32.xlu0 %v4651_v57 }
0x1e68   :  { %v4755_v59 = vpop.xlane.xlu0 %4754 }
0x1e69   :  { %v4756_v60 = vsub.f32 %v7335_v14, %v4755_v59 }
0x1e6b   :  { %v4757_v61 = vmul.f32 1.442695, %v4756_v60 }
0x1e6d   :  { %6343 = vpow2.f32 %v4757_v61 }
0x1e70   :  { %v3990_v62 = vpop.xlane.xlu1 %3989 }
0x1e71   :  { %6345 = vrcp.f32 %v3990_v62  ;;  %v6203_v62 = vld [vmem:[%s7532_s6 + $0x10] sm:$0xff]  }
0x1e72   :  { %4549 = vrot.lane.b32.xlu1 %v7256_v47, %s7549_s20  ;;  %6061 = vmatpush3.bf16.msra.mxu0 %v6203_v62 }
0x1e73   :  { %6062 = vmatprep.subr.bf16.mxu0 %v6395_v16 }
0x1e76   :  { %4657 = vrot.lane.b32.xlu1 %v7256_v47, %s7550_s21 }
0x1e77   :  { %v7378_v3 = vpop.eup %6343 }
0x1e78   :  { %v4759_v4 = vsel %vm665_vm5, %v7378_v3, 0.0 }
0x1e79   :  { %4760 = vadd.xlane.f32.xlu0 %v4759_v4 }
0x1e7a   :  { %4765 = vrot.lane.b32.xlu1 %v7256_v47, %s7551_s22 }
0x1e7b   :  { %v6346_v5 = vpop.eup %6345 }
0x1e7c   :  { %v3992_v18 = vmul.f32 %v6346_v5, %v7343_v23 }
0x1e7e   :  { %v3993_v6 = vpack.c.bf16 %v3992_v18, %v3992_v18 }
0x1e80   :  { %5973 = vmatmul.mubr.msk.bf16.vlgmr.msra.gmra.mrb[120].mxu1 %vm665_vm5, %v3993_v6  ;;  %v6204_v6 = vld [vmem:[%s7532_s6 + $0x18] sm:$0xff]  }
0x1e81   :  { %5983 = vmatpush3.bf16.msra.mxu1 %v4105_v58  ;;  %5984 = vmatprep.mubr.msk.bf16.mxu1 %vm6396_vm1, %v6395_v16 }
0x1e82   :  { %5994 = vmatprep.subr.bf16.mxu1 %v6395_v16  ;;  %6063 = vmatpush3.bf16.msra.mxu0 %v6204_v6 }
0x1e83   :  { %6076 = vmatprep.subr.bf16.mxu0 %v6395_v16 }
0x1e8f   :  { %4441 = vrot.lane.b32.xlu0 %v7256_v47, %s6397_s19 }
0x1eb1   :  { %v4100_v7 = vpop.xlane.xlu0 %4099 }
0x1eb2   :  { %6347 = vrcp.f32 %v4100_v7 }
0x1eb5   :  { %v4211_v11 = vpop.permute.xlu0 %4210 }
0x1eb9   :  { %v4206_v8 = vpop.xlane.xlu1 %4205 }
0x1eba   :  { %6349 = vrcp.f32 %v4206_v8 }
0x1ebc   :  { %v6348_v9 = vpop.eup %6347 }
0x1ebd   :  { %v4102_v10 = vmul.f32 %v6348_v9, %v7347_v35  ;;  %v4319_v13 = vpop.permute.xlu1 %4318 }
0x1ebf   :  { %v4103_v19 = vpack.c.bf16 %v4102_v10, %v4102_v10 }
0x1ec1   :  { %5985 = vmatmul.mubr.msk.bf16.vlgmr.msra.gmra.mrb[124].mxu1 %vm665_vm5, %v4103_v19 }
0x1ec2   :  { %5995 = vmatpush3.bf16.msra.mxu1 %v4211_v11  ;;  %5996 = vmatprep.mubr.msk.bf16.mxu1 %vm6396_vm1, %v6395_v16 }
0x1ec3   :  { %6006 = vmatprep.subr.bf16.mxu1 %v6395_v16 }
0x1ec4   :  { %v6350_v21 = vpop.eup %6349 }
0x1ec5   :  { %v4208_v47 = vmul.f32 %v6350_v21, %v7351_v37 }
0x1ec7   :  { %v4209_v12 = vpack.c.bf16 %v4208_v47, %v4208_v47 }
0x1ec9   :  { %5997 = vmatmul.mubr.msk.bf16.vlgmr.msra.gmra.mrb[128].mxu1 %vm665_vm5, %v4209_v12 }
0x1eca   :  { %6007 = vmatpush3.bf16.msra.mxu1 %v4319_v13  ;;  %6008 = vmatprep.mubr.msk.bf16.mxu1 %vm6396_vm1, %v6395_v16 }
0x1ecb   :  { %6018 = vmatprep.subr.bf16.mxu1 %v6395_v16 }
0x1ee6   :  { %v4314_v14 = vpop.xlane.xlu0 %4313 }
0x1ee7   :  { %6351 = vrcp.f32 %v4314_v14 }
0x1eea   :  { %v4436_v22 = vpop.xlane.xlu0 %4435 }
0x1eeb   :  { %6353 = vrcp.f32 %v4436_v22 }
0x1eee   :  { %v4545_v24 = vpop.xlane.xlu1 %4544  ;;  %v4653_v25 = vpop.xlane.xlu0 %4652 }
0x1eef   :  { %6355 = vrcp.f32 %v4545_v24 }
0x1ef0   :  { %6357 = vrcp.f32 %v4653_v25 }
0x1ef1   :  { %v6352_v15 = vpop.eup %6351 }
0x1ef2   :  { %v4316_v17 = vmul.f32 %v6352_v15, %v6336_v51  ;;  %v4550_v30 = vpop.permute.xlu1 %4549 }
0x1ef4   :  { %v4317_v2 = vpack.c.bf16 %v4316_v17, %v4316_v17 }
0x1ef5   :  { %v6354_v26 = vpop.eup %6353 }
0x1ef6   :  { %6009 = vmatmul.mubr.msk.bf16.vlgmr.msra.gmra.mrb[132].mxu1 %vm665_vm5, %v4317_v2  ;;  %v4438_v20 = vmul.f32 %v6354_v26, %v7361_v52  ;;  %v4658_v1 = vpop.permute.xlu1 %4657 }
0x1ef7   :  { %6020 = vmatprep.mubr.msk.bf16.mxu1 %vm6396_vm1, %v6395_v16 }
0x1ef8   :  { %v4439_v28 = vpack.c.bf16 %v4438_v20, %v4438_v20 }
0x1ef9   :  { %v6356_v29 = vpop.eup %6355 }
0x1efa   :  { %v4547_v31 = vmul.f32 %v6356_v29, %v7363_v53  ;;  %v6358_v35 = vpop.eup %6357  ;;  %v4766_v36 = vpop.permute.xlu1 %4765 }
0x1efb   :  { %v4655_v37 = vmul.f32 %v6358_v35, %v7367_v55  ;;  %v5361_v35 = vld [vmem:[%s7538_s12 + $0xb] ss:$0 sm:$0xff] }
0x1efc   :  { %v4548_v34 = vpack.c.bf16 %v4547_v31, %v4547_v31 }
0x1efd   :  { %v4656_v38 = vpack.c.bf16 %v4655_v37, %v4655_v37 }
0x1f06   :  { %v4761_v23 = vpop.xlane.xlu0 %4760 }
0x1f07   :  { %6359 = vrcp.f32 %v4761_v23 }
0x1f0a   :  { %v4442_v27 = vpop.permute.xlu0 %4441 }
0x1f0b   :  { %6019 = vmatpush3.bf16.msra.mxu1 %v4442_v27 }
0x1f0c   :  { %6030 = vmatprep.subr.bf16.mxu1 %v6395_v16 }
0x1f0e   :  { %6021 = vmatmul.mubr.msk.bf16.vlgmr.msra.gmra.mrb[136].mxu1 %vm665_vm5, %v4439_v28 }
0x1f0f   :  { %6031 = vmatpush3.bf16.msra.mxu1 %v4550_v30  ;;  %6032 = vmatprep.mubr.msk.bf16.mxu1 %vm6396_vm1, %v6395_v16 }
0x1f10   :  { %6042 = vmatprep.subr.bf16.mxu1 %v6395_v16 }
0x1f11   :  { %v6360_v39 = vpop.eup %6359 }
0x1f12   :  { %v4763_v44 = vmul.f32 %v6360_v39, %v7378_v3 }
0x1f14   :  { %v4764_v40 = vpack.c.bf16 %v4763_v44, %v4763_v44 }
0x1f16   :  { %6033 = vmatmul.mubr.msk.bf16.vlgmr.msra.gmra.mrb[140].mxu1 %vm665_vm5, %v4548_v34 }
0x1f17   :  { %6043 = vmatpush3.bf16.msra.mxu1 %v4658_v1  ;;  %6044 = vmatprep.mubr.msk.bf16.mxu1 %vm6396_vm1, %v6395_v16 }
0x1f18   :  { %6054 = vmatprep.subr.bf16.mxu1 %v6395_v16 }
0x1f1e   :  { %6045 = vmatmul.mubr.msk.bf16.vlgmr.msra.gmra.mrb[144].mxu1 %vm665_vm5, %v4656_v38 }
0x1f1f   :  { %6055 = vmatpush3.bf16.msra.mxu1 %v4766_v36  ;;  %6056 = vmatprep.mubr.msk.bf16.mxu1 %vm6396_vm1, %v6395_v16 }
0x1f20   :  { %6068 = vmatprep.subr.bf16.mxu1 %v6395_v16 }
0x1f26   :  { %6057 = vmatmul.mubr.msk.bf16.vlgmr.msra.gmra.mrb[148].mxu1 %vm665_vm5, %v4764_v40 }
0x1f27   :  { %6072 = vmatprep.mubr.msk.bf16.mxu1 %vm6396_vm1, %v6395_v16 }
0x1f53   :  { %v4035_v41 = vpop.f32.mrb[120].mxu1 }
0x1f54   :  { %v5974_v32 = vpop.f32.mrb[121].mxu1 }
0x1f55   :  { %v4038_v33 = vpop.f32.mrb[122].mxu1 }
0x1f56   :  { %v5975_v42 = vpop.f32.mrb[123].mxu1 }
0x1f94   :  { %v4144_v43 = vpop.f32.mrb[124].mxu1 }
0x1f95   :  { %v5986_v45 = vpop.f32.mrb[125].mxu1 }
0x1f96   :  { %v4147_v46 = vpop.f32.mrb[126].mxu1 }
0x1f97   :  { %v5987_v49 = vpop.f32.mrb[127].mxu1 }
0x1f9c   :  { %v4250_v50 = vpop.f32.mrb[128].mxu1 }
0x1f9d   :  { %v5998_v51 = vpop.f32.mrb[129].mxu1 }
0x1f9e   :  { %v4253_v48 = vpop.f32.mrb[130].mxu1 }
0x1f9f   :  { %v5999_v52 = vpop.f32.mrb[131].mxu1 }
0x1fc9   :  { %v4358_v53 = vpop.f32.mrb[132].mxu1 }
0x1fca   :  { %v6010_v54 = vpop.f32.mrb[133].mxu1 }
0x1fcb   :  { %v4361_v55 = vpop.f32.mrb[134].mxu1  ;;  %v6207_v54 = vld [vmem:[%s7534_s8 + $0x20] sm:$0xff]  }
0x1fcc   :  { %v6011_v56 = vpop.f32.mrb[135].mxu1  ;;  %v6208_v55 = vld [vmem:[%s7534_s8 + $0x28] sm:$0xff]  }
0x1fe1   :  { %v4481_v57 = vpop.f32.mrb[136].mxu1 }
0x1fe2   :  { %v6022_v58 = vpop.f32.mrb[137].mxu1 }
0x1fe3   :  { %v4484_v59 = vpop.f32.mrb[138].mxu1 }
0x1fe4   :  { %v6023_v60 = vpop.f32.mrb[139].mxu1 }
0x1fe9   :  { %v4589_v61 = vpop.f32.mrb[140].mxu1 }
0x1fea   :  { %v6160_v3 = vpack.i.bf16 %v4589_v61, %v4144_v43  ;;  %v6034_v4 = vpop.f32.mrb[141].mxu1 }
0x1feb   :  { %v4592_v5 = vpop.f32.mrb[142].mxu1  ;;  %v5365_v4 = vld [vmem:[%s7536_s10 + $0x5] ss:$0 sm:$0xff] }
0x1fec   :  { %6161 = vrot.lane.b32.xlu1 %v6160_v3, %s6406_s28  ;;  %v6035_v18 = vpop.f32.mrb[143].mxu1 }
0x1ff1   :  { %v4697_v7 = vpop.f32.mrb[144].mxu1 }
0x1ff2   :  { %v6165_v8 = vpack.i.bf16 %v4697_v7, %v4250_v50  ;;  %v6046_v9 = vpop.f32.mrb[145].mxu1  ;;  %v5366_v7 = vld [vmem:[%s7537_s11 + $0x5] ss:$0 sm:$0xff] }
0x1ff3   :  { %v4700_v10 = vpop.f32.mrb[146].mxu1 }
0x1ff4   :  { %6166 = vrot.lane.b32.xlu1 %v6165_v8, %s6407_s29  ;;  %v6047_v19 = vpop.f32.mrb[147].mxu1 }
0x1ff9   :  { %v4805_v11 = vpop.f32.mrb[148].mxu1 }
0x1ffa   :  { %v6170_v21 = vpack.i.bf16 %v4805_v11, %v4358_v53  ;;  %v6058_v47 = vpop.f32.mrb[149].mxu1  ;;  %v6206_v53 = vld [vmem:[%s7533_s7 + $0x18] sm:$0xff]   ;;  %v6209_v11 = vld [vmem:[%s7534_s8 + $0x30] sm:$0xff]  }
0x1ffb   :  { %v4808_v12 = vpop.f32.mrb[150].mxu1  ;;  %v5371_v47 = vld [vmem:[%s7538_s12 + $0xc] ss:$0 sm:$0xff] }
0x1ffc   :  { %6171 = vrot.lane.b32.xlu1 %v6170_v21, %s6408_s15  ;;  %v6059_v13 = vpop.f32.mrb[151].mxu1  ;;  %v6210_v21 = vld [vmem:[%s7534_s8 + $0x38] sm:$0xff]  }
0x205e   :  { %v6162_v14 = vpop.permute.xlu1 %6161 }
0x205f   :  { %v6164_v17 = vunpack.i.h.bf16 %v6162_v14  ;;  %v6163_v2 = vunpack.i.l.bf16 %v6162_v14 }
0x2061   :  { %v4823_v26 = vsel %vm214_vm3, %v4481_v57, %v6164_v17  ;;  %v4376_v23 = vsel %vm214_vm3, %v4035_v41, %v6163_v2 }
0x2066   :  { %v6167_v15 = vpop.permute.xlu1 %6166 }
0x2067   :  { %v6169_v22 = vunpack.i.h.bf16 %v6167_v15  ;;  %v6168_v24 = vunpack.i.l.bf16 %v6167_v15 }
0x2069   :  { %v4824_v28 = vsel %vm665_vm5, %v4823_v26, %v6169_v22  ;;  %v4377_v29 = vsel %vm665_vm5, %v4376_v23, %v6168_v24  ;;  %v5383_v26 = vld [vmem:[%s7538_s12 + $0xd] ss:$0 sm:$0xff] }
0x206e   :  { %v6172_v25 = vpop.permute.xlu1 %6171 }
0x206f   :  { %v6174_v20 = vunpack.i.h.bf16 %v6172_v25  ;;  %v6173_v27 = vunpack.i.l.bf16 %v6172_v25 }
0x2071   :  { %v4825_v30 = vsel %vm667_vm6, %v4824_v28, %v6174_v20  ;;  %v4378_v31 = vsel %vm667_vm6, %v4377_v29, %v6173_v27 }
0x2072   :  { %v4831_v34 = vpack.c.bf16 %v4825_v30, %v4378_v31 }
0x2074   :  { %6065 = vmatmul.mubr.msk.bf16.vlgmr.msra.gmra.mrb[148].mxu0 %vm60_vm0, %v4831_v34 }
0x2075   :  { %6084 = vmatprep.mubr.msk.bf16.mxu0 %vm6396_vm1, %v6395_v16  ;;  %6077 = vmatpush3.bf16.msra.mxu0 %v6207_v54 }
0x2076   :  { %6078 = vmatprep.subr.bf16.mxu0 %v6395_v16 }
0x2079   :  { %6079 = vmatpush3.bf16.msra.mxu0 %v6208_v55 }
0x207a   :  { %6080 = vmatprep.subr.bf16.mxu0 %v6395_v16 }
0x207d   :  { %6081 = vmatpush3.bf16.msra.mxu0 %v6209_v11 }
0x207e   :  { %6082 = vmatprep.subr.bf16.mxu0 %v6395_v16 }
0x2081   :  { %6083 = vmatpush3.bf16.msra.mxu0 %v6210_v21 }
0x2147   :  { %v4886_v1 = vpop.f32.mrb[148].mxu0 }
0x2148   :  { %v4887_v37 = vadd.f32 %v5361_v35, %v4886_v1  ;;  %v6066_v38 = vpop.f32.mrb[149].mxu0 }
0x2149   :  { %v4889_v39 = vpop.f32.mrb[150].mxu0 }
0x214a   :  { %v4893_v36 = vadd.f32 %v4887_v37, %v7266_v63  ;;  %v4890_v44 = vadd.f32 %v5361_v35, %v4889_v39  ;;  %v6067_v40 = vpop.f32.mrb[151].mxu0 }
0x214c   :  { %v4894_v41 = vadd.f32 %v4890_v44, %v7268_v0  ;;  %v4895_v32 = vsel %vm60_vm0, %v4893_v36, 0.0  ;;  %v6205_v0 = vld [vmem:[%s7533_s7 + $0x10] sm:$0xff]  }
0x214d   :  { %4896 = vadd.xlane.f32.xlu0 %v4895_v32  ;;  %6069 = vmatpush3.bf16.msra.mxu1 %v6205_v0  ;;  %v5389_v0 = vld [vmem:[%s7536_s10 + $0x6] ss:$0 sm:$0xff]  ;;  %s6412_s10 = smov [#allocation2]  }
0x214e   :  { %v4898_v33 = vsel %vm60_vm0, %v4894_v41, 0.0  ;;  %6070 = vmatprep.subr.bf16.mxu1 %v6395_v16  ;;  %s5202_s14 = sshll.u32 %s6412_s10, 4  ;;  %s5203_s14 = int_to_ptr.vmem [resolvable:$true] %s5202_s14 }
0x214f   :  { %4899 = vadd.xlane.f32.xlu1 %v4898_v33  ;;  %p6376_p1 = scmp.lt.s32.totalorder %s5203_s14, %s5203_s14 }
0x2151   :  { %6071 = vmatpush3.bf16.msra.mxu1 %v6206_v53 }
0x2152   :  { %6088 = vmatprep.subr.bf16.mxu1 %v6395_v16 }
0x21da   :  { %v4897_v42 = vpop.xlane.xlu0 %4896 }
0x21db   :  { %v4901_v43 = vmul.f32 0.03125, %v4897_v42 }
0x21dc   :  { %v4900_v45 = vpop.xlane.xlu1 %4899 }
0x21dd   :  { %v4903_v46 = vsub.f32 %v4893_v36, %v4901_v43  ;;  %v4902_v49 = vmul.f32 0.03125, %v4900_v45  ;;  %v6211_v43 = vld [vmem:[%s7535_s9] sm:$0xff]   ;;  %v6212_v45 = vld [vmem:[%s7535_s9 + $0x8] sm:$0xff]  }
0x21df   :  { %v4904_v50 = vsub.f32 %v4894_v41, %v4902_v49  ;;  %v4905_v51 = vmul.f32 %v4903_v46, %v4903_v46 }
0x21e1   :  { %v4907_v48 = vsel %vm60_vm0, %v4905_v51, 0.0  ;;  %v4906_v63 = vmul.f32 %v4904_v50, %v4904_v50 }
0x21e2   :  { %4908 = vadd.xlane.f32.xlu0 %v4907_v48 }
0x21e3   :  { %v4910_v52 = vsel %vm60_vm0, %v4906_v63, 0.0 }
0x21e6   :  { %4911 = vadd.xlane.f32.xlu0 %v4910_v52 }
0x226f   :  { %v4909_v56 = vpop.xlane.xlu0 %4908 }
0x2270   :  { %v4913_v57 = vmul.f32 0.03125, %v4909_v56 }
0x2272   :  { %v4915_v58 = vadd.f32 1e-05, %v4913_v57 }
0x2273   :  { %v4912_v59 = vpop.xlane.xlu0 %4911 }
0x2274   :  { %6361 = vrsqrt.f32 %v4915_v58  ;;  %v4914_v60 = vmul.f32 0.03125, %v4912_v59 }
0x2276   :  { %v4916_v61 = vadd.f32 1e-05, %v4914_v60 }
0x2278   :  { %6363 = vrsqrt.f32 %v4916_v61  ;;  %v5391_v61 = vld [vmem:[%s7538_s12 + $0xe] ss:$0 sm:$0xff] }
0x227e   :  { %v6362_v62 = vpop.eup %6361 }
0x227f   :  { %v4919_v3 = vmul.f32 %v6362_v62, %v4903_v46 }
0x2281   :  { %v4926_v18 = vmul.f32 %v5365_v4, %v4919_v3 }
0x2282   :  { %v6364_v5 = vpop.eup %6363 }
0x2283   :  { %v4920_v6 = vmul.f32 %v6364_v5, %v4904_v50  ;;  %v4933_v9 = vadd.f32 %v5366_v7, %v4926_v18 }
0x2285   :  { %v4927_v8 = vmul.f32 %v5365_v4, %v4920_v6 }
0x2287   :  { %v4934_v10 = vadd.f32 %v5366_v7, %v4927_v8 }
0x2289   :  { %v4940_v19 = vpack.c.bf16 %v4934_v10, %v4933_v9 }
0x228b   :  { %6073 = vmatmul.mubr.msk.bf16.vlgmr.msra.gmra.mrb[152].mxu1 %vm60_vm0, %v4940_v19 }
0x228c   :  { %6092 = vmatprep.mubr.msk.bf16.mxu1 %vm6396_vm1, %v6395_v16  ;;  %6089 = vmatpush3.bf16.msra.mxu1 %v6211_v43 }
0x228d   :  { %6090 = vmatprep.subr.bf16.mxu1 %v6395_v16  ;;  %v5390_v16 = vld [vmem:[%s7537_s11 + $0x6] ss:$0 sm:$0xff]  ;;  %s6371_s11 = scalar_lea.vmem %s5203_s14, 256 }
0x228e   :  { %p6372_p0 = scmp.ne.s32.totalorder %s5203_s14, %s6371_s11  ;;  %p6377_p2 = scmp.lt.s32.totalorder %s6371_s11, %s6371_s11 }
0x2290   :  { %6091 = vmatpush3.bf16.msra.mxu1 %v6212_v45  ;;  %p6378_p3 = por %p6377_p2, %p6376_p1 }
0x2292   :  { %p6379_p4 = pnand %p6378_p3, %p6372_p0 }
0x235e   :  { %v4995_v12 = vpop.f32.mrb[152].mxu1 }
0x235f   :  { %v4996_v13 = vadd.f32 %v5371_v47, %v4995_v12  ;;  %v6074_v14 = vpop.f32.mrb[153].mxu1 }
0x2360   :  { %v4998_v15 = vpop.f32.mrb[154].mxu1 }
0x2361   :  { %v4999_v17 = vadd.f32 %v5371_v47, %v4998_v15  ;;  %v6075_v2 = vpop.f32.mrb[155].mxu1  ;;  %v5002_v22 = vmax.f32 %v4996_v13, 0.0 }
0x2363   :  { %v5003_v24 = vmax.f32 %v4999_v17, 0.0 }
0x2365   :  { %v5013_v25 = vpack.c.bf16 %v5003_v24, %v5002_v22 }
0x2367   :  { %6085 = vmatmul.mubr.msk.bf16.vlgmr.msra.gmra.mrb[152].mxu0 %vm2536_vm8, %v5013_v25 }
0x243a   :  { %v5080_v23 = vpop.f32.mrb[152].mxu0 }
0x243b   :  { %v5081_v20 = vadd.f32 %v5383_v26, %v5080_v23  ;;  %v6086_v27 = vpop.f32.mrb[153].mxu0 }
0x243c   :  { %v5083_v28 = vpop.f32.mrb[154].mxu0 }
0x243d   :  { %v5087_v29 = vadd.f32 %v5081_v20, %v4933_v9  ;;  %v5084_v30 = vadd.f32 %v5383_v26, %v5083_v28  ;;  %v6087_v31 = vpop.f32.mrb[155].mxu0 }
0x243f   :  { %v5088_v34 = vadd.f32 %v5084_v30, %v4934_v10  ;;  %v5089_v35 = vsel %vm60_vm0, %v5087_v29, 0.0 }
0x2440   :  { %5090 = vadd.xlane.f32.xlu0 %v5089_v35 }
0x2441   :  { %v5092_v1 = vsel %vm60_vm0, %v5088_v34, 0.0 }
0x2442   :  { %5093 = vadd.xlane.f32.xlu1 %v5092_v1 }
0x24cd   :  { %v5091_v37 = vpop.xlane.xlu0 %5090 }
0x24ce   :  { %v5095_v38 = vmul.f32 0.03125, %v5091_v37 }
0x24cf   :  { %v5094_v39 = vpop.xlane.xlu1 %5093 }
0x24d0   :  { %v5097_v36 = vsub.f32 %v5087_v29, %v5095_v38  ;;  %v5096_v44 = vmul.f32 0.03125, %v5094_v39 }
0x24d2   :  { %v5098_v40 = vsub.f32 %v5088_v34, %v5096_v44  ;;  %v5099_v41 = vmul.f32 %v5097_v36, %v5097_v36 }
0x24d4   :  { %v5101_v32 = vsel %vm60_vm0, %v5099_v41, 0.0  ;;  %v5100_v33 = vmul.f32 %v5098_v40, %v5098_v40 }
0x24d5   :  { %5102 = vadd.xlane.f32.xlu0 %v5101_v32 }
0x24d6   :  { %v5104_v42 = vsel %vm60_vm0, %v5100_v33, 0.0 }
0x24d7   :  { %5105 = vadd.xlane.f32.xlu1 %v5104_v42 }
0x2562   :  { %v5103_v46 = vpop.xlane.xlu0 %5102 }
0x2563   :  { %v5107_v49 = vmul.f32 0.03125, %v5103_v46 }
0x2564   :  { %v5106_v50 = vpop.xlane.xlu1 %5105 }
0x2565   :  { %v5109_v51 = vadd.f32 1e-05, %v5107_v49  ;;  %v5108_v48 = vmul.f32 0.03125, %v5106_v50 }
0x2567   :  { %6365 = vrsqrt.f32 %v5109_v51  ;;  %v5110_v63 = vadd.f32 1e-05, %v5108_v48 }
0x2569   :  { %6367 = vrsqrt.f32 %v5110_v63 }
0x2571   :  { %v6366_v52 = vpop.eup %6365 }
0x2572   :  { %v5113_v53 = vmul.f32 %v6366_v52, %v5097_v36 }
0x2573   :  { %v6368_v54 = vpop.eup %6367 }
0x2574   :  { %v5120_v55 = vmul.f32 %v5389_v0, %v5113_v53  ;;  %v5114_v56 = vmul.f32 %v6368_v54, %v5098_v40 }
0x2576   :  { %v5121_v57 = vmul.f32 %v5389_v0, %v5114_v56  ;;  %v5127_v58 = vadd.f32 %v5390_v16, %v5120_v55 }
0x2578   :  { %v5128_v59 = vadd.f32 %v5390_v16, %v5121_v57 }
0x257a   :  { %v5133_v60 = vpack.c.bf16 %v5128_v59, %v5127_v58 }
0x257c   :  { %6093 = vmatmul.mubr.msk.bf16.vlgmr.msra.gmra.mrb[156].mxu1 %vm60_vm0, %v5133_v60 }
0x264f   :  { %v5188_v62 = vpop.f32.mrb[156].mxu1 }
0x2650   :  { %v5189_v3 = vadd.f32 %v5391_v61, %v5188_v62  ;;  %v6094_v4 = vpop.f32.mrb[157].mxu1 }
0x2651   :  { %v5191_v5 = vpop.f32.mrb[158].mxu1 }
0x2652   :  { %5195 = vst [vmem:[#allocation2] sm:$0xff] %v5189_v3  ;;  %v5192_v18 = vadd.f32 %v5391_v61, %v5191_v5  ;;  %v6095_v6 = vpop.f32.mrb[159].mxu1 }
0x2654   :  { %5196 = vst [vmem:[#allocation2 + $0x8] sm:$0xff] %v5192_v18 }
0x2655   :  { %6382 = shalt.err (!%p6379_p4)
}
0x2656   :  { %s6383_s0 = scalar_lea.hbm %s7539_s13, 256 }
0x2657   :  { %p6384_p5 = scmp.ne.s32.totalorder %s7539_s13, %s6383_s0  ;;  %p6387_p6 = scmp.lt.u32.totalorder %s6383_s0, %s7539_s13 }
0x2659   :  { %p6389_p7 = pnand %p6387_p6, %p6384_p5 }
0x265b   :  { %6392 = shalt.err (!%p6389_p7)
}
0x265c   :  { %s6413_s2 = smov 128  }
0x265d   :  { %5208 = dma.vmem_to_hbm [thread:$0]  %s5203_s14, 256, %s7539_s13, [#allocation3], %s6413_s2, %s6413_s2, %s6406_s28  }
0x265e   :  { %6393 = dma.done.wait [#allocation3], 256  }
0x265f   :  { %6394 = vsyncadd [#allocation3], 4294967040 }
0x2660   :  { %5212 = vsyncpa [#allocation3], 1 }

</bundles_post_ra>
